<compile_context>
chip_gen: v7x
topology: tpu7x:2x2x1
jax: 0.10.0
libtpu: 0.0.40
codegen_flags: <defaults>
</compile_context>

<pallas_src>
import functools

import jax
import jax.numpy as jnp
from jax.experimental import pallas as pl
from jax.experimental.pallas import tpu as pltpu

LANE = 128


# ------------------------------- fused kernel ------------------------------- #

def _cnn_kernel(x1_ref, w1c_ref, b1c_ref, w2c_ref, b2c_ref,
                w1f_ref, b1f_ref, w2f_ref, b2f_ref, w3f_ref, b3f_ref,
                out_ref, pre1_ref, pooled1_ref, a2_ref, out2_ref, fcin_ref, *, bb):
    """Full forward pass for a block of `bb` images (32x32x3 input).

    x1_ref:   (bb, 800, 128) bf16  conv1 im2col; rows = q*200 + hp*14 + wp (q = 2x2 pool
                                   position), cols = (kh*5+kw)*3 + cin (75 real, rest 0)
    w1c_ref:  (128, 128) bf16      conv1 weights, rows match x1 cols, cols = cout (6 real)
    w2c_ref:  (5, 128, 128) bf16   conv2 weights per kw, rows = kh*8 + cin, cols = cout
    w1f_ref:  (3200, 128) bf16     fc1 with flatten folded in: rows = (hp*5+wp)*128 + c
    w2f/w3f:  (128, 128) bf16      fc2 / fc3
    out_ref:  (1, mr, 128) f32     row i (< bb) = logits of image i, lanes >= 10 are zero
    """
    fcin_ref[...] = jnp.zeros_like(fcin_ref)
    b1 = jnp.broadcast_to(b1c_ref[...], (40, LANE))   # hoisted bias broadcasts
    b2 = jnp.broadcast_to(b2c_ref[...], (5, LANE))

    for i in range(bb):
        # ---- conv1: one (800,128)x(128,128) GEMM (K = 75 taps*cin, padded to 128) ----
        pre1_ref[...] = jnp.dot(x1_ref[i], w1c_ref[...],
                                preferred_element_type=jnp.float32)

        # ---- 2x2 max-pool + bias + relu: pool partners are the 4 contiguous q-blocks ----
        for c in range(5):
            r = c * 40
            m01 = jnp.maximum(pre1_ref[pl.ds(r, 40), :], pre1_ref[pl.ds(200 + r, 40), :])
            m23 = jnp.maximum(pre1_ref[pl.ds(400 + r, 40), :], pre1_ref[pl.ds(600 + r, 40), :])
            pooled1_ref[pl.ds(r, 40), :] = jnp.maximum(jnp.maximum(m01, m23) + b1, 0.0)

        # ---- conv2: pack (kh, cin) into the contraction dim, fold kw via row shifts ----
        a2_ref[...] = jnp.zeros_like(a2_ref)
        for kh in range(5):
            a2_ref[:, pl.ds(kh * 8, 8)] = pooled1_ref[pl.ds(kh * 14, 144), pl.ds(0, 8)]
        acc = None
        for kw in range(5):
            lhs = a2_ref[pl.ds(kw, 140), :].astype(jnp.bfloat16)
            d = jnp.dot(lhs, w2c_ref[kw], preferred_element_type=jnp.float32)
            acc = d if acc is None else acc + d
        out2_ref[pl.ds(0, 140), :] = acc   # rows m = ho*14 + wo (wo >= 10 is unused)

        # ---- 2x2 max-pool + bias + relu, scatter pooled rows into the fc input row ----
        for hp in range(5):
            e = (2 * hp) * 14
            o = (2 * hp + 1) * 14
            pooled = jnp.maximum(
                jnp.maximum(out2_ref[pl.ds(e, 5, stride=2), :],
                            out2_ref[pl.ds(e + 1, 5, stride=2), :]),
                jnp.maximum(out2_ref[pl.ds(o, 5, stride=2), :],
                            out2_ref[pl.ds(o + 1, 5, stride=2), :]))
            act = jnp.maximum(pooled + b2, 0.0)                      # (5, 128) f32
            for wp in range(5):
                p = hp * 5 + wp
                # full-width, 128-lane-aligned store (fc1 flatten folded into w1f)
                fcin_ref[pl.ds(i, 1), pl.ds(p * LANE, LANE)] = act[wp:wp + 1, :]

    # ---- fused fc1 -> relu -> fc2 -> relu -> fc3 -> relu over the batch block ----
    h = fcin_ref[...].astype(jnp.bfloat16)
    h = jnp.maximum(jnp.dot(h, w1f_ref[...], preferred_element_type=jnp.float32)
                    + b1f_ref[...], 0.0)
    h = jnp.maximum(jnp.dot(h.astype(jnp.bfloat16), w2f_ref[...],
                            preferred_element_type=jnp.float32) + b2f_ref[...], 0.0)
    h = jnp.maximum(jnp.dot(h.astype(jnp.bfloat16), w3f_ref[...],
                            preferred_element_type=jnp.float32) + b3f_ref[...], 0.0)
    out_ref[0, :, :] = h


# --------------------------------- wrappers --------------------------------- #

def _pick_bb(n):
    """Images per grid step; keep the grid >= 2 so v7x still splits across both TCs."""
    for cand in (4, 2):
        if n % cand == 0 and n // cand >= 2:
            return cand
    return 1


def _conv1_im2col(x_nchw):
    """(N,3,32,32) -> (N, 800, 128) bf16 im2col for conv1.

    Rows are ordered q*200 + hp*14 + wp (q = position inside the 2x2 pool window) so the
    in-kernel max-pool is 4 contiguous reads; columns are (kh*5+kw)*3 + cin padded to 128.
    """
    n = x_nchw.shape[0]
    x = jnp.transpose(x_nchw, (0, 2, 3, 1)).astype(jnp.float32)          # (N,32,32,3)
    taps = [x[:, kh:kh + 28, kw:kw + 28, :] for kh in range(5) for kw in range(5)]
    im = jnp.concatenate(taps, axis=-1)                                   # (N,28,28,75)
    im = im.reshape(n, 14, 2, 14, 2, 75).transpose(0, 2, 4, 1, 3, 5)      # (N,dh,dw,hp,wp,75)
    im = im.reshape(n, 4, 196, 75)
    im = jnp.pad(im, ((0, 0), (0, 0), (0, 4), (0, 53)))                   # (N,4,200,128)
    return im.reshape(n, 800, 128).astype(jnp.bfloat16)


@jax.jit
def cnn_forward(x_nchw, pp):
    n, c, h, w = x_nchw.shape
    assert (c, h, w) == (3, 32, 32), "fc1 (16*5*5) requires 3x32x32 inputs"
    bb = _pick_bb(n)
    nb = n // bb
    mr = max(bb, 8)

    x1 = _conv1_im2col(x_nchw)

    kern = functools.partial(_cnn_kernel, bb=bb)
    out = pl.pallas_call(
        kern,
        out_shape=jax.ShapeDtypeStruct((nb, mr, LANE), jnp.float32),
        grid=(nb,),
        in_specs=[
            pl.BlockSpec((bb, 800, LANE), lambda i: (i, 0, 0)),   # conv1 im2col block
            pl.BlockSpec((LANE, LANE), lambda i: (0, 0)),         # conv1 weights (resident)
            pl.BlockSpec((1, LANE), lambda i: (0, 0)),
            pl.BlockSpec((5, LANE, LANE), lambda i: (0, 0, 0)),   # conv2 weights
            pl.BlockSpec((1, LANE), lambda i: (0, 0)),
            pl.BlockSpec((25 * LANE, LANE), lambda i: (0, 0)),    # fc1 (flatten folded in)
            pl.BlockSpec((1, LANE), lambda i: (0, 0)),
            pl.BlockSpec((LANE, LANE), lambda i: (0, 0)),         # fc2
            pl.BlockSpec((1, LANE), lambda i: (0, 0)),
            pl.BlockSpec((LANE, LANE), lambda i: (0, 0)),         # fc3
            pl.BlockSpec((1, LANE), lambda i: (0, 0)),
        ],
        out_specs=pl.BlockSpec((1, mr, LANE), lambda i: (i, 0, 0)),
        scratch_shapes=[
            pltpu.VMEM((800, LANE), jnp.float32),   # conv1 pre-activations
            pltpu.VMEM((200, LANE), jnp.float32),   # conv1 pooled (14x14, row-major)
            pltpu.VMEM((144, LANE), jnp.float32),   # conv2 (kh,cin)-packed im2col
            pltpu.VMEM((144, LANE), jnp.float32),   # conv2 pre-activations
            pltpu.VMEM((mr, 25 * LANE), jnp.float32),  # fc input rows (one per image)
        ],
        compiler_params=pltpu.CompilerParams(dimension_semantics=("parallel",)),
    )(x1, pp["w1c"], pp["b1c"], pp["w2c"], pp["b2c"],
      pp["w1f"], pp["b1f"], pp["w2f"], pp["b2f"], pp["w3f"], pp["b3f"])

    return out[:, :bb, :].reshape(n, LANE)[:, :10]


# ------------------------ one-time parameter preparation -------------------- #

def prepare_params(p):
    """Hoist all weight reshuffling / padding / dtype casts out of the forward pass."""
    def vec(b):
        return jnp.pad(b, (0, LANE - b.shape[0])).reshape(1, LANE).astype(jnp.float32)

    # conv1: rows = (kh*5+kw)*3 + cin, cols = cout
    w1c = jnp.transpose(p["conv1_w"], (2, 3, 1, 0)).reshape(75, 6)
    w1c = jnp.pad(w1c, ((0, 53), (0, 122))).astype(jnp.bfloat16)          # (128,128)

    # conv2: one weight matrix per kw, rows = kh*8 + cin, cols = cout
    w2c = jnp.transpose(p["conv2_w"], (3, 2, 1, 0))                        # (kw,kh,cin,cout)
    w2c = jnp.pad(w2c, ((0, 0), (0, 0), (0, 2), (0, 112))).reshape(5, 40, LANE)
    w2c = jnp.pad(w2c, ((0, 0), (0, 88), (0, 0))).astype(jnp.bfloat16)     # (5,128,128)

    # fc1 with the conv2 flatten folded in: rows = (hp*5+wp)*128 + cout2
    w1f = p["fc1_w"].reshape(120, 16, 5, 5).transpose(2, 3, 1, 0)          # (hp,wp,c,j)
    w1f = jnp.pad(w1f, ((0, 0), (0, 0), (0, 112), (0, 8)))                 # (5,5,128,128)
    w1f = w1f.reshape(25 * LANE, LANE).astype(jnp.bfloat16)

    w2f = jnp.pad(p["fc2_w"].T, ((0, 8), (0, 44))).astype(jnp.bfloat16)    # (128,128)
    w3f = jnp.pad(p["fc3_w"].T, ((0, 44), (0, 118))).astype(jnp.bfloat16)  # (128,128)

    return {"w1c": w1c, "b1c": vec(p["conv1_b"]),
            "w2c": w2c, "b2c": vec(p["conv2_b"]),
            "w1f": w1f, "b1f": vec(p["fc1_b"]),
            "w2f": w2f, "b2f": vec(p["fc2_b"]),
            "w3f": w3f, "b3f": vec(p["fc3_b"])}


def init_params(key):
    ks = jax.random.split(key, 10)
    s = 0.1
    return {
        "conv1_w": s * jax.random.normal(ks[0], (6, 3, 5, 5), jnp.float32),
        "conv1_b": s * jax.random.normal(ks[1], (6,), jnp.float32),
        "conv2_w": s * jax.random.normal(ks[2], (16, 6, 5, 5), jnp.float32),
        "conv2_b": s * jax.random.normal(ks[3], (16,), jnp.float32),
        "fc1_w": s * jax.random.normal(ks[4], (120, 400), jnp.float32),
        "fc1_b": s * jax.random.normal(ks[5], (120,), jnp.float32),
        "fc2_w": s * jax.random.normal(ks[6], (84, 120), jnp.float32),
        "fc2_b": s * jax.random.normal(ks[7], (84,), jnp.float32),
        "fc3_w": s * jax.random.normal(ks[8], (10, 84), jnp.float32),
        "fc3_b": s * jax.random.normal(ks[9], (10,), jnp.float32),
    }


# -------------------------- pure-JAX reference (f32) ------------------------ #

def cnn_reference(x, p):
    hi = jax.lax.Precision.HIGHEST
    y = jax.lax.conv_general_dilated(x, p["conv1_w"], (1, 1), "VALID",
                                     dimension_numbers=("NCHW", "OIHW", "NCHW"),
                                     precision=hi)
    y = jnp.maximum(y + p["conv1_b"][None, :, None, None], 0.0)
    n, c, h, w = y.shape
    y = y.reshape(n, c, h // 2, 2, w // 2, 2).max(axis=(3, 5))
    y = jax.lax.conv_general_dilated(y, p["conv2_w"], (1, 1), "VALID",
                                     dimension_numbers=("NCHW", "OIHW", "NCHW"),
                                     precision=hi)
    y = jnp.maximum(y + p["conv2_b"][None, :, None, None], 0.0)
    n, c, h, w = y.shape
    y = y.reshape(n, c, h // 2, 2, w // 2, 2).max(axis=(3, 5))
    y = y.reshape(n, -1)
    y = jnp.maximum(jnp.dot(y, p["fc1_w"].T, precision=hi) + p["fc1_b"], 0.0)
    y = jnp.maximum(jnp.dot(y, p["fc2_w"].T, precision=hi) + p["fc2_b"], 0.0)
    y = jnp.maximum(jnp.dot(y, p["fc3_w"].T, precision=hi) + p["fc3_b"], 0.0)
    return y


if __name__ == "__main__":
    key = jax.random.PRNGKey(0)
    pkey, xkey = jax.random.split(key)
    params = init_params(pkey)
    pp = prepare_params(params)

    # PyTorch-style NCHW input; 32x32 spatial is required by fc1 (16*5*5).
    x = jax.random.normal(xkey, (2, 3, 32, 32), jnp.float32)

    out = jax.block_until_ready(cnn_forward(x, pp))
    assert out.shape == (2, 10)

    ref = cnn_reference(x, params)
    err = float(jnp.max(jnp.abs(out - ref)))
    assert err < 0.1, f"max abs error vs f32 reference too large: {err}"
    print("KERNEL_OK")
</pallas_src>

<mosaic_0001>
module attributes {stable_mosaic.version = 11 : i64} {
  func.func @_cnn_kernel(%arg0: i32, %arg1: memref<1x800x128xbf16, #tpu.memory_space<vmem>>, %arg2: memref<128x128xbf16, #tpu.memory_space<vmem>>, %arg3: memref<1x128xf32, #tpu.memory_space<vmem>>, %arg4: memref<5x128x128xbf16, #tpu.memory_space<vmem>>, %arg5: memref<1x128xf32, #tpu.memory_space<vmem>>, %arg6: memref<3200x128xbf16, #tpu.memory_space<vmem>>, %arg7: memref<1x128xf32, #tpu.memory_space<vmem>>, %arg8: memref<128x128xbf16, #tpu.memory_space<vmem>>, %arg9: memref<1x128xf32, #tpu.memory_space<vmem>>, %arg10: memref<128x128xbf16, #tpu.memory_space<vmem>>, %arg11: memref<1x128xf32, #tpu.memory_space<vmem>>, %arg12: memref<1x8x128xf32, #tpu.memory_space<vmem>>, %arg13: memref<800x128xf32, #tpu.memory_space<vmem>>, %arg14: memref<200x128xf32, #tpu.memory_space<vmem>>, %arg15: memref<144x128xf32, #tpu.memory_space<vmem>>, %arg16: memref<144x128xf32, #tpu.memory_space<vmem>>, %arg17: memref<8x3200xf32, #tpu.memory_space<vmem>>) attributes {dimension_semantics = [#tpu.dimension_semantics<parallel>], iteration_bounds = array<i64: 2>, scalar_prefetch = 0 : i64, scratch_operands = 5 : i64, tpu.core_type = #tpu.core_type<tc>, window_params = [{transform_indices = @transform_0, window_bounds = array<i64: 1, 800, 128>}, {pipeline_mode = #tpu.pipeline_mode<synchronous>, transform_indices = @transform_1, window_bounds = array<i64: 128, 128>}, {pipeline_mode = #tpu.pipeline_mode<synchronous>, transform_indices = @transform_2, window_bounds = array<i64: 1, 128>}, {pipeline_mode = #tpu.pipeline_mode<synchronous>, transform_indices = @transform_3, window_bounds = array<i64: 5, 128, 128>}, {pipeline_mode = #tpu.pipeline_mode<synchronous>, transform_indices = @transform_4, window_bounds = array<i64: 1, 128>}, {pipeline_mode = #tpu.pipeline_mode<synchronous>, transform_indices = @transform_5, window_bounds = array<i64: 3200, 128>}, {pipeline_mode = #tpu.pipeline_mode<synchronous>, transform_indices = @transform_6, window_bounds = array<i64: 1, 128>}, {pipeline_mode = #tpu.pipeline_mode<synchronous>, transform_indices = @transform_7, window_bounds = array<i64: 128, 128>}, {pipeline_mode = #tpu.pipeline_mode<synchronous>, transform_indices = @transform_8, window_bounds = array<i64: 1, 128>}, {pipeline_mode = #tpu.pipeline_mode<synchronous>, transform_indices = @transform_9, window_bounds = array<i64: 128, 128>}, {pipeline_mode = #tpu.pipeline_mode<synchronous>, transform_indices = @transform_10, window_bounds = array<i64: 1, 128>}, {transform_indices = @transform_11, window_bounds = array<i64: 1, 8, 128>}]} {
    %cst = arith.constant 0.000000e+00 : f32
    %0 = vector.broadcast %cst : f32 to vector<8x3200xf32>
    %c0 = arith.constant 0 : index
    %c0_0 = arith.constant 0 : index
    %1 = vector.load %arg17[%c0, %c0_0] : memref<8x3200xf32, #tpu.memory_space<vmem>>, vector<8x3200xf32>
    tpu.vector_store %arg17[%c0, %c0_0], %0 {strides = array<i32>} : memref<8x3200xf32, #tpu.memory_space<vmem>>, vector<8x3200xf32>,
    %c0_1 = arith.constant 0 : index
    %c0_2 = arith.constant 0 : index
    %2 = vector.load %arg3[%c0_1, %c0_2] : memref<1x128xf32, #tpu.memory_space<vmem>>, vector<1x128xf32>
    %3 = vector.shape_cast %2 : vector<1x128xf32> to vector<1x128xf32>
    %4 = vector.broadcast %3 : vector<1x128xf32> to vector<40x128xf32>
    %c0_3 = arith.constant 0 : index
    %c0_4 = arith.constant 0 : index
    %5 = vector.load %arg5[%c0_3, %c0_4] : memref<1x128xf32, #tpu.memory_space<vmem>>, vector<1x128xf32>
    %6 = vector.shape_cast %5 : vector<1x128xf32> to vector<1x128xf32>
    %7 = vector.broadcast %6 : vector<1x128xf32> to vector<5x128xf32>
    %c0_5 = arith.constant 0 : index
    %c0_6 = arith.constant 0 : index
    %c0_7 = arith.constant 0 : index
    %8 = vector.load %arg1[%c0_5, %c0_6, %c0_7] : memref<1x800x128xbf16, #tpu.memory_space<vmem>>, vector<1x800x128xbf16>
    %9 = vector.shape_cast %8 : vector<1x800x128xbf16> to vector<800x128xbf16>
    %c0_8 = arith.constant 0 : index
    %c0_9 = arith.constant 0 : index
    %10 = vector.load %arg2[%c0_8, %c0_9] : memref<128x128xbf16, #tpu.memory_space<vmem>>, vector<128x128xbf16>
    %cst_10 = arith.constant dense<0.000000e+00> : vector<800x128xf32>
    %11 = tpu.matmul %9, %10, %cst_10 {dimension_numbers = #tpu.dot_dimension_numbers<[1], [0], [0], [1], [0, 0, 1, 1], [], []>} : vector<800x128xbf16>, vector<128x128xbf16>, vector<800x128xf32> -> vector<800x128xf32>
    %c0_11 = arith.constant 0 : index
    %c0_12 = arith.constant 0 : index
    %12 = vector.load %arg13[%c0_11, %c0_12] : memref<800x128xf32, #tpu.memory_space<vmem>>, vector<800x128xf32>
    tpu.vector_store %arg13[%c0_11, %c0_12], %11 {strides = array<i32>} : memref<800x128xf32, #tpu.memory_space<vmem>>, vector<800x128xf32>,
    %c0_13 = arith.constant 0 : index
    %c0_14 = arith.constant 0 : index
    %13 = vector.load %arg13[%c0_13, %c0_14] : memref<800x128xf32, #tpu.memory_space<vmem>>, vector<40x128xf32>
    %c200 = arith.constant 200 : index
    %c0_15 = arith.constant 0 : index
    %14 = vector.load %arg13[%c200, %c0_15] : memref<800x128xf32, #tpu.memory_space<vmem>>, vector<40x128xf32>
    %15 = arith.maximumf %13, %14 : vector<40x128xf32>
    %c400 = arith.constant 400 : index
    %c0_16 = arith.constant 0 : index
    %16 = vector.load %arg13[%c400, %c0_16] : memref<800x128xf32, #tpu.memory_space<vmem>>, vector<40x128xf32>
    %c600 = arith.constant 600 : index
    %c0_17 = arith.constant 0 : index
    %17 = vector.load %arg13[%c600, %c0_17] : memref<800x128xf32, #tpu.memory_space<vmem>>, vector<40x128xf32>
    %18 = arith.maximumf %16, %17 : vector<40x128xf32>
    %19 = arith.maximumf %15, %18 : vector<40x128xf32>
    %20 = arith.addf %19, %4 : vector<40x128xf32>
    %cst_18 = arith.constant 0.000000e+00 : f32
    %21 = vector.broadcast %cst_18 : f32 to vector<40x128xf32>
    %22 = arith.maximumf %20, %21 : vector<40x128xf32>
    %c0_19 = arith.constant 0 : index
    %c0_20 = arith.constant 0 : index
    %23 = vector.load %arg14[%c0_19, %c0_20] : memref<200x128xf32, #tpu.memory_space<vmem>>, vector<40x128xf32>
    tpu.vector_store %arg14[%c0_19, %c0_20], %22 {strides = array<i32>} : memref<200x128xf32, #tpu.memory_space<vmem>>, vector<40x128xf32>,
    %c40 = arith.constant 40 : index
    %c0_21 = arith.constant 0 : index
    %24 = vector.load %arg13[%c40, %c0_21] : memref<800x128xf32, #tpu.memory_space<vmem>>, vector<40x128xf32>
    %c240 = arith.constant 240 : index
    %c0_22 = arith.constant 0 : index
    %25 = vector.load %arg13[%c240, %c0_22] : memref<800x128xf32, #tpu.memory_space<vmem>>, vector<40x128xf32>
    %26 = arith.maximumf %24, %25 : vector<40x128xf32>
    %c440 = arith.constant 440 : index
    %c0_23 = arith.constant 0 : index
    %27 = vector.load %arg13[%c440, %c0_23] : memref<800x128xf32, #tpu.memory_space<vmem>>, vector<40x128xf32>
    %c640 = arith.constant 640 : index
    %c0_24 = arith.constant 0 : index
    %28 = vector.load %arg13[%c640, %c0_24] : memref<800x128xf32, #tpu.memory_space<vmem>>, vector<40x128xf32>
    %29 = arith.maximumf %27, %28 : vector<40x128xf32>
    %30 = arith.maximumf %26, %29 : vector<40x128xf32>
    %31 = arith.addf %30, %4 : vector<40x128xf32>
    %cst_25 = arith.constant 0.000000e+00 : f32
    %32 = vector.broadcast %cst_25 : f32 to vector<40x128xf32>
    %33 = arith.maximumf %31, %32 : vector<40x128xf32>
    %c40_26 = arith.constant 40 : index
    %c0_27 = arith.constant 0 : index
    %34 = vector.load %arg14[%c40_26, %c0_27] : memref<200x128xf32, #tpu.memory_space<vmem>>, vector<40x128xf32>
    tpu.vector_store %arg14[%c40_26, %c0_27], %33 {strides = array<i32>} : memref<200x128xf32, #tpu.memory_space<vmem>>, vector<40x128xf32>,
    %c80 = arith.constant 80 : index
    %c0_28 = arith.constant 0 : index
    %35 = vector.load %arg13[%c80, %c0_28] : memref<800x128xf32, #tpu.memory_space<vmem>>, vector<40x128xf32>
    %c280 = arith.constant 280 : index
    %c0_29 = arith.constant 0 : index
    %36 = vector.load %arg13[%c280, %c0_29] : memref<800x128xf32, #tpu.memory_space<vmem>>, vector<40x128xf32>
    %37 = arith.maximumf %35, %36 : vector<40x128xf32>
    %c480 = arith.constant 480 : index
    %c0_30 = arith.constant 0 : index
    %38 = vector.load %arg13[%c480, %c0_30] : memref<800x128xf32, #tpu.memory_space<vmem>>, vector<40x128xf32>
    %c680 = arith.constant 680 : index
    %c0_31 = arith.constant 0 : index
    %39 = vector.load %arg13[%c680, %c0_31] : memref<800x128xf32, #tpu.memory_space<vmem>>, vector<40x128xf32>
    %40 = arith.maximumf %38, %39 : vector<40x128xf32>
    %41 = arith.maximumf %37, %40 : vector<40x128xf32>
    %42 = arith.addf %41, %4 : vector<40x128xf32>
    %cst_32 = arith.constant 0.000000e+00 : f32
    %43 = vector.broadcast %cst_32 : f32 to vector<40x128xf32>
    %44 = arith.maximumf %42, %43 : vector<40x128xf32>
    %c80_33 = arith.constant 80 : index
    %c0_34 = arith.constant 0 : index
    %45 = vector.load %arg14[%c80_33, %c0_34] : memref<200x128xf32, #tpu.memory_space<vmem>>, vector<40x128xf32>
    tpu.vector_store %arg14[%c80_33, %c0_34], %44 {strides = array<i32>} : memref<200x128xf32, #tpu.memory_space<vmem>>, vector<40x128xf32>,
    %c120 = arith.constant 120 : index
    %c0_35 = arith.constant 0 : index
    %46 = vector.load %arg13[%c120, %c0_35] : memref<800x128xf32, #tpu.memory_space<vmem>>, vector<40x128xf32>
    %c320 = arith.constant 320 : index
    %c0_36 = arith.constant 0 : index
    %47 = vector.load %arg13[%c320, %c0_36] : memref<800x128xf32, #tpu.memory_space<vmem>>, vector<40x128xf32>
    %48 = arith.maximumf %46, %47 : vector<40x128xf32>
    %c520 = arith.constant 520 : index
    %c0_37 = arith.constant 0 : index
    %49 = vector.load %arg13[%c520, %c0_37] : memref<800x128xf32, #tpu.memory_space<vmem>>, vector<40x128xf32>
    %c720 = arith.constant 720 : index
    %c0_38 = arith.constant 0 : index
    %50 = vector.load %arg13[%c720, %c0_38] : memref<800x128xf32, #tpu.memory_space<vmem>>, vector<40x128xf32>
    %51 = arith.maximumf %49, %50 : vector<40x128xf32>
    %52 = arith.maximumf %48, %51 : vector<40x128xf32>
    %53 = arith.addf %52, %4 : vector<40x128xf32>
    %cst_39 = arith.constant 0.000000e+00 : f32
    %54 = vector.broadcast %cst_39 : f32 to vector<40x128xf32>
    %55 = arith.maximumf %53, %54 : vector<40x128xf32>
    %c120_40 = arith.constant 120 : index
    %c0_41 = arith.constant 0 : index
    %56 = vector.load %arg14[%c120_40, %c0_41] : memref<200x128xf32, #tpu.memory_space<vmem>>, vector<40x128xf32>
    tpu.vector_store %arg14[%c120_40, %c0_41], %55 {strides = array<i32>} : memref<200x128xf32, #tpu.memory_space<vmem>>, vector<40x128xf32>,
    %c160 = arith.constant 160 : index
    %c0_42 = arith.constant 0 : index
    %57 = vector.load %arg13[%c160, %c0_42] : memref<800x128xf32, #tpu.memory_space<vmem>>, vector<40x128xf32>
    %c360 = arith.constant 360 : index
    %c0_43 = arith.constant 0 : index
    %58 = vector.load %arg13[%c360, %c0_43] : memref<800x128xf32, #tpu.memory_space<vmem>>, vector<40x128xf32>
    %59 = arith.maximumf %57, %58 : vector<40x128xf32>
    %c560 = arith.constant 560 : index
    %c0_44 = arith.constant 0 : index
    %60 = vector.load %arg13[%c560, %c0_44] : memref<800x128xf32, #tpu.memory_space<vmem>>, vector<40x128xf32>
    %c760 = arith.constant 760 : index
    %c0_45 = arith.constant 0 : index
    %61 = vector.load %arg13[%c760, %c0_45] : memref<800x128xf32, #tpu.memory_space<vmem>>, vector<40x128xf32>
    %62 = arith.maximumf %60, %61 : vector<40x128xf32>
    %63 = arith.maximumf %59, %62 : vector<40x128xf32>
    %64 = arith.addf %63, %4 : vector<40x128xf32>
    %cst_46 = arith.constant 0.000000e+00 : f32
    %65 = vector.broadcast %cst_46 : f32 to vector<40x128xf32>
    %66 = arith.maximumf %64, %65 : vector<40x128xf32>
    %c160_47 = arith.constant 160 : index
    %c0_48 = arith.constant 0 : index
    %67 = vector.load %arg14[%c160_47, %c0_48] : memref<200x128xf32, #tpu.memory_space<vmem>>, vector<40x128xf32>
    tpu.vector_store %arg14[%c160_47, %c0_48], %66 {strides = array<i32>} : memref<200x128xf32, #tpu.memory_space<vmem>>, vector<40x128xf32>,
    %cst_49 = arith.constant 0.000000e+00 : f32
    %68 = vector.broadcast %cst_49 : f32 to vector<144x128xf32>
    %c0_50 = arith.constant 0 : index
    %c0_51 = arith.constant 0 : index
    %69 = vector.load %arg15[%c0_50, %c0_51] : memref<144x128xf32, #tpu.memory_space<vmem>>, vector<144x128xf32>
    tpu.vector_store %arg15[%c0_50, %c0_51], %68 {strides = array<i32>} : memref<144x128xf32, #tpu.memory_space<vmem>>, vector<144x128xf32>,
    %c0_52 = arith.constant 0 : index
    %c0_53 = arith.constant 0 : index
    %70 = vector.load %arg14[%c0_52, %c0_53] : memref<200x128xf32, #tpu.memory_space<vmem>>, vector<144x8xf32>
    %c0_54 = arith.constant 0 : index
    %c0_55 = arith.constant 0 : index
    %71 = vector.load %arg15[%c0_54, %c0_55] : memref<144x128xf32, #tpu.memory_space<vmem>>, vector<144x8xf32>
    tpu.vector_store %arg15[%c0_54, %c0_55], %70 {strides = array<i32>} : memref<144x128xf32, #tpu.memory_space<vmem>>, vector<144x8xf32>,
    %c14 = arith.constant 14 : index
    %c0_56 = arith.constant 0 : index
    %72 = vector.load %arg14[%c14, %c0_56] : memref<200x128xf32, #tpu.memory_space<vmem>>, vector<144x8xf32>
    %c0_57 = arith.constant 0 : index
    %c8 = arith.constant 8 : index
    %73 = vector.load %arg15[%c0_57, %c8] : memref<144x128xf32, #tpu.memory_space<vmem>>, vector<144x8xf32>
    tpu.vector_store %arg15[%c0_57, %c8], %72 {strides = array<i32>} : memref<144x128xf32, #tpu.memory_space<vmem>>, vector<144x8xf32>,
    %c28 = arith.constant 28 : index
    %c0_58 = arith.constant 0 : index
    %74 = vector.load %arg14[%c28, %c0_58] : memref<200x128xf32, #tpu.memory_space<vmem>>, vector<144x8xf32>
    %c0_59 = arith.constant 0 : index
    %c16 = arith.constant 16 : index
    %75 = vector.load %arg15[%c0_59, %c16] : memref<144x128xf32, #tpu.memory_space<vmem>>, vector<144x8xf32>
    tpu.vector_store %arg15[%c0_59, %c16], %74 {strides = array<i32>} : memref<144x128xf32, #tpu.memory_space<vmem>>, vector<144x8xf32>,
    %c42 = arith.constant 42 : index
    %c0_60 = arith.constant 0 : index
    %76 = vector.load %arg14[%c42, %c0_60] : memref<200x128xf32, #tpu.memory_space<vmem>>, vector<144x8xf32>
    %c0_61 = arith.constant 0 : index
    %c24 = arith.constant 24 : index
    %77 = vector.load %arg15[%c0_61, %c24] : memref<144x128xf32, #tpu.memory_space<vmem>>, vector<144x8xf32>
    tpu.vector_store %arg15[%c0_61, %c24], %76 {strides = array<i32>} : memref<144x128xf32, #tpu.memory_space<vmem>>, vector<144x8xf32>,
    %c56 = arith.constant 56 : index
    %c0_62 = arith.constant 0 : index
    %78 = vector.load %arg14[%c56, %c0_62] : memref<200x128xf32, #tpu.memory_space<vmem>>, vector<144x8xf32>
    %c0_63 = arith.constant 0 : index
    %c32 = arith.constant 32 : index
    %79 = vector.load %arg15[%c0_63, %c32] : memref<144x128xf32, #tpu.memory_space<vmem>>, vector<144x8xf32>
    tpu.vector_store %arg15[%c0_63, %c32], %78 {strides = array<i32>} : memref<144x128xf32, #tpu.memory_space<vmem>>, vector<144x8xf32>,
    %c0_64 = arith.constant 0 : index
    %c0_65 = arith.constant 0 : index
    %80 = vector.load %arg15[%c0_64, %c0_65] : memref<144x128xf32, #tpu.memory_space<vmem>>, vector<140x128xf32>
    %81 = arith.truncf %80 : vector<140x128xf32> to vector<140x128xbf16>
    %c0_66 = arith.constant 0 : index
    %c0_67 = arith.constant 0 : index
    %c0_68 = arith.constant 0 : index
    %82 = vector.load %arg4[%c0_66, %c0_67, %c0_68] : memref<5x128x128xbf16, #tpu.memory_space<vmem>>, vector<1x128x128xbf16>
    %83 = vector.shape_cast %82 : vector<1x128x128xbf16> to vector<128x128xbf16>
    %cst_69 = arith.constant dense<0.000000e+00> : vector<140x128xf32>
    %84 = tpu.matmul %81, %83, %cst_69 {dimension_numbers = #tpu.dot_dimension_numbers<[1], [0], [0], [1], [0, 0, 1, 1], [], []>} : vector<140x128xbf16>, vector<128x128xbf16>, vector<140x128xf32> -> vector<140x128xf32>
    %c1 = arith.constant 1 : index
    %c0_70 = arith.constant 0 : index
    %85 = vector.load %arg15[%c1, %c0_70] : memref<144x128xf32, #tpu.memory_space<vmem>>, vector<140x128xf32>
    %86 = arith.truncf %85 : vector<140x128xf32> to vector<140x128xbf16>
    %c1_71 = arith.constant 1 : index
    %c0_72 = arith.constant 0 : index
    %c0_73 = arith.constant 0 : index
    %87 = vector.load %arg4[%c1_71, %c0_72, %c0_73] : memref<5x128x128xbf16, #tpu.memory_space<vmem>>, vector<1x128x128xbf16>
    %88 = vector.shape_cast %87 : vector<1x128x128xbf16> to vector<128x128xbf16>
    %cst_74 = arith.constant dense<0.000000e+00> : vector<140x128xf32>
    %89 = tpu.matmul %86, %88, %cst_74 {dimension_numbers = #tpu.dot_dimension_numbers<[1], [0], [0], [1], [0, 0, 1, 1], [], []>} : vector<140x128xbf16>, vector<128x128xbf16>, vector<140x128xf32> -> vector<140x128xf32>
    %90 = arith.addf %84, %89 : vector<140x128xf32>
    %c2 = arith.constant 2 : index
    %c0_75 = arith.constant 0 : index
    %91 = vector.load %arg15[%c2, %c0_75] : memref<144x128xf32, #tpu.memory_space<vmem>>, vector<140x128xf32>
    %92 = arith.truncf %91 : vector<140x128xf32> to vector<140x128xbf16>
    %c2_76 = arith.constant 2 : index
    %c0_77 = arith.constant 0 : index
    %c0_78 = arith.constant 0 : index
    %93 = vector.load %arg4[%c2_76, %c0_77, %c0_78] : memref<5x128x128xbf16, #tpu.memory_space<vmem>>, vector<1x128x128xbf16>
    %94 = vector.shape_cast %93 : vector<1x128x128xbf16> to vector<128x128xbf16>
    %cst_79 = arith.constant dense<0.000000e+00> : vector<140x128xf32>
    %95 = tpu.matmul %92, %94, %cst_79 {dimension_numbers = #tpu.dot_dimension_numbers<[1], [0], [0], [1], [0, 0, 1, 1], [], []>} : vector<140x128xbf16>, vector<128x128xbf16>, vector<140x128xf32> -> vector<140x128xf32>
    %96 = arith.addf %90, %95 : vector<140x128xf32>
    %c3 = arith.constant 3 : index
    %c0_80 = arith.constant 0 : index
    %97 = vector.load %arg15[%c3, %c0_80] : memref<144x128xf32, #tpu.memory_space<vmem>>, vector<140x128xf32>
    %98 = arith.truncf %97 : vector<140x128xf32> to vector<140x128xbf16>
    %c3_81 = arith.constant 3 : index
    %c0_82 = arith.constant 0 : index
    %c0_83 = arith.constant 0 : index
    %99 = vector.load %arg4[%c3_81, %c0_82, %c0_83] : memref<5x128x128xbf16, #tpu.memory_space<vmem>>, vector<1x128x128xbf16>
    %100 = vector.shape_cast %99 : vector<1x128x128xbf16> to vector<128x128xbf16>
    %cst_84 = arith.constant dense<0.000000e+00> : vector<140x128xf32>
    %101 = tpu.matmul %98, %100, %cst_84 {dimension_numbers = #tpu.dot_dimension_numbers<[1], [0], [0], [1], [0, 0, 1, 1], [], []>} : vector<140x128xbf16>, vector<128x128xbf16>, vector<140x128xf32> -> vector<140x128xf32>
    %102 = arith.addf %96, %101 : vector<140x128xf32>
    %c4 = arith.constant 4 : index
    %c0_85 = arith.constant 0 : index
    %103 = vector.load %arg15[%c4, %c0_85] : memref<144x128xf32, #tpu.memory_space<vmem>>, vector<140x128xf32>
    %104 = arith.truncf %103 : vector<140x128xf32> to vector<140x128xbf16>
    %c4_86 = arith.constant 4 : index
    %c0_87 = arith.constant 0 : index
    %c0_88 = arith.constant 0 : index
    %105 = vector.load %arg4[%c4_86, %c0_87, %c0_88] : memref<5x128x128xbf16, #tpu.memory_space<vmem>>, vector<1x128x128xbf16>
    %106 = vector.shape_cast %105 : vector<1x128x128xbf16> to vector<128x128xbf16>
    %cst_89 = arith.constant dense<0.000000e+00> : vector<140x128xf32>
    %107 = tpu.matmul %104, %106, %cst_89 {dimension_numbers = #tpu.dot_dimension_numbers<[1], [0], [0], [1], [0, 0, 1, 1], [], []>} : vector<140x128xbf16>, vector<128x128xbf16>, vector<140x128xf32> -> vector<140x128xf32>
    %108 = arith.addf %102, %107 : vector<140x128xf32>
    %c0_90 = arith.constant 0 : index
    %c0_91 = arith.constant 0 : index
    %109 = vector.load %arg16[%c0_90, %c0_91] : memref<144x128xf32, #tpu.memory_space<vmem>>, vector<140x128xf32>
    tpu.vector_store %arg16[%c0_90, %c0_91], %108 {strides = array<i32>} : memref<144x128xf32, #tpu.memory_space<vmem>>, vector<140x128xf32>,
    %c0_92 = arith.constant 0 : index
    %c0_93 = arith.constant 0 : index
    %110 = tpu.strided_load %arg16[%c0_92, %c0_93] {strides = array<i32: 2, 1>} : memref<144x128xf32, #tpu.memory_space<vmem>>, vector<5x128xf32>
    %c1_94 = arith.constant 1 : index
    %c0_95 = arith.constant 0 : index
    %111 = tpu.strided_load %arg16[%c1_94, %c0_95] {strides = array<i32: 2, 1>} : memref<144x128xf32, #tpu.memory_space<vmem>>, vector<5x128xf32>
    %112 = arith.maximumf %110, %111 : vector<5x128xf32>
    %c14_96 = arith.constant 14 : index
    %c0_97 = arith.constant 0 : index
    %113 = tpu.strided_load %arg16[%c14_96, %c0_97] {strides = array<i32: 2, 1>} : memref<144x128xf32, #tpu.memory_space<vmem>>, vector<5x128xf32>
    %c15 = arith.constant 15 : index
    %c0_98 = arith.constant 0 : index
    %114 = tpu.strided_load %arg16[%c15, %c0_98] {strides = array<i32: 2, 1>} : memref<144x128xf32, #tpu.memory_space<vmem>>, vector<5x128xf32>
    %115 = arith.maximumf %113, %114 : vector<5x128xf32>
    %116 = arith.maximumf %112, %115 : vector<5x128xf32>
    %117 = arith.addf %116, %7 : vector<5x128xf32>
    %cst_99 = arith.constant 0.000000e+00 : f32
    %118 = vector.broadcast %cst_99 : f32 to vector<5x128xf32>
    %119 = arith.maximumf %117, %118 : vector<5x128xf32>
    %120 = vector.extract_strided_slice %119 {offsets = [0, 0], sizes = [1, 128], strides = [1, 1]} : vector<5x128xf32> to vector<1x128xf32>
    %c0_100 = arith.constant 0 : index
    %c0_101 = arith.constant 0 : index
    %121 = vector.load %arg17[%c0_100, %c0_101] : memref<8x3200xf32, #tpu.memory_space<vmem>>, vector<1x128xf32>
    tpu.vector_store %arg17[%c0_100, %c0_101], %120 {strides = array<i32>} : memref<8x3200xf32, #tpu.memory_space<vmem>>, vector<1x128xf32>,
    %122 = vector.extract_strided_slice %119 {offsets = [1, 0], sizes = [1, 128], strides = [1, 1]} : vector<5x128xf32> to vector<1x128xf32>
    %c0_102 = arith.constant 0 : index
    %c128 = arith.constant 128 : index
    %123 = vector.load %arg17[%c0_102, %c128] : memref<8x3200xf32, #tpu.memory_space<vmem>>, vector<1x128xf32>
    tpu.vector_store %arg17[%c0_102, %c128], %122 {strides = array<i32>} : memref<8x3200xf32, #tpu.memory_space<vmem>>, vector<1x128xf32>,
    %124 = vector.extract_strided_slice %119 {offsets = [2, 0], sizes = [1, 128], strides = [1, 1]} : vector<5x128xf32> to vector<1x128xf32>
    %c0_103 = arith.constant 0 : index
    %c256 = arith.constant 256 : index
    %125 = vector.load %arg17[%c0_103, %c256] : memref<8x3200xf32, #tpu.memory_space<vmem>>, vector<1x128xf32>
    tpu.vector_store %arg17[%c0_103, %c256], %124 {strides = array<i32>} : memref<8x3200xf32, #tpu.memory_space<vmem>>, vector<1x128xf32>,
    %126 = vector.extract_strided_slice %119 {offsets = [3, 0], sizes = [1, 128], strides = [1, 1]} : vector<5x128xf32> to vector<1x128xf32>
    %c0_104 = arith.constant 0 : index
    %c384 = arith.constant 384 : index
    %127 = vector.load %arg17[%c0_104, %c384] : memref<8x3200xf32, #tpu.memory_space<vmem>>, vector<1x128xf32>
    tpu.vector_store %arg17[%c0_104, %c384], %126 {strides = array<i32>} : memref<8x3200xf32, #tpu.memory_space<vmem>>, vector<1x128xf32>,
    %128 = vector.extract_strided_slice %119 {offsets = [4, 0], sizes = [1, 128], strides = [1, 1]} : vector<5x128xf32> to vector<1x128xf32>
    %c0_105 = arith.constant 0 : index
    %c512 = arith.constant 512 : index
    %129 = vector.load %arg17[%c0_105, %c512] : memref<8x3200xf32, #tpu.memory_space<vmem>>, vector<1x128xf32>
    tpu.vector_store %arg17[%c0_105, %c512], %128 {strides = array<i32>} : memref<8x3200xf32, #tpu.memory_space<vmem>>, vector<1x128xf32>,
    %c28_106 = arith.constant 28 : index
    %c0_107 = arith.constant 0 : index
    %130 = tpu.strided_load %arg16[%c28_106, %c0_107] {strides = array<i32: 2, 1>} : memref<144x128xf32, #tpu.memory_space<vmem>>, vector<5x128xf32>
    %c29 = arith.constant 29 : index
    %c0_108 = arith.constant 0 : index
    %131 = tpu.strided_load %arg16[%c29, %c0_108] {strides = array<i32: 2, 1>} : memref<144x128xf32, #tpu.memory_space<vmem>>, vector<5x128xf32>
    %132 = arith.maximumf %130, %131 : vector<5x128xf32>
    %c42_109 = arith.constant 42 : index
    %c0_110 = arith.constant 0 : index
    %133 = tpu.strided_load %arg16[%c42_109, %c0_110] {strides = array<i32: 2, 1>} : memref<144x128xf32, #tpu.memory_space<vmem>>, vector<5x128xf32>
    %c43 = arith.constant 43 : index
    %c0_111 = arith.constant 0 : index
    %134 = tpu.strided_load %arg16[%c43, %c0_111] {strides = array<i32: 2, 1>} : memref<144x128xf32, #tpu.memory_space<vmem>>, vector<5x128xf32>
    %135 = arith.maximumf %133, %134 : vector<5x128xf32>
    %136 = arith.maximumf %132, %135 : vector<5x128xf32>
    %137 = arith.addf %136, %7 : vector<5x128xf32>
    %cst_112 = arith.constant 0.000000e+00 : f32
    %138 = vector.broadcast %cst_112 : f32 to vector<5x128xf32>
    %139 = arith.maximumf %137, %138 : vector<5x128xf32>
    %140 = vector.extract_strided_slice %139 {offsets = [0, 0], sizes = [1, 128], strides = [1, 1]} : vector<5x128xf32> to vector<1x128xf32>
    %c0_113 = arith.constant 0 : index
    %c640_114 = arith.constant 640 : index
    %141 = vector.load %arg17[%c0_113, %c640_114] : memref<8x3200xf32, #tpu.memory_space<vmem>>, vector<1x128xf32>
    tpu.vector_store %arg17[%c0_113, %c640_114], %140 {strides = array<i32>} : memref<8x3200xf32, #tpu.memory_space<vmem>>, vector<1x128xf32>,
    %142 = vector.extract_strided_slice %139 {offsets = [1, 0], sizes = [1, 128], strides = [1, 1]} : vector<5x128xf32> to vector<1x128xf32>
    %c0_115 = arith.constant 0 : index
    %c768 = arith.constant 768 : index
    %143 = vector.load %arg17[%c0_115, %c768] : memref<8x3200xf32, #tpu.memory_space<vmem>>, vector<1x128xf32>
    tpu.vector_store %arg17[%c0_115, %c768], %142 {strides = array<i32>} : memref<8x3200xf32, #tpu.memory_space<vmem>>, vector<1x128xf32>,
    %144 = vector.extract_strided_slice %139 {offsets = [2, 0], sizes = [1, 128], strides = [1, 1]} : vector<5x128xf32> to vector<1x128xf32>
    %c0_116 = arith.constant 0 : index
    %c896 = arith.constant 896 : index
    %145 = vector.load %arg17[%c0_116, %c896] : memref<8x3200xf32, #tpu.memory_space<vmem>>, vector<1x128xf32>
    tpu.vector_store %arg17[%c0_116, %c896], %144 {strides = array<i32>} : memref<8x3200xf32, #tpu.memory_space<vmem>>, vector<1x128xf32>,
    %146 = vector.extract_strided_slice %139 {offsets = [3, 0], sizes = [1, 128], strides = [1, 1]} : vector<5x128xf32> to vector<1x128xf32>
    %c0_117 = arith.constant 0 : index
    %c1024 = arith.constant 1024 : index
    %147 = vector.load %arg17[%c0_117, %c1024] : memref<8x3200xf32, #tpu.memory_space<vmem>>, vector<1x128xf32>
    tpu.vector_store %arg17[%c0_117, %c1024], %146 {strides = array<i32>} : memref<8x3200xf32, #tpu.memory_space<vmem>>, vector<1x128xf32>,
    %148 = vector.extract_strided_slice %139 {offsets = [4, 0], sizes = [1, 128], strides = [1, 1]} : vector<5x128xf32> to vector<1x128xf32>
    %c0_118 = arith.constant 0 : index
    %c1152 = arith.constant 1152 : index
    %149 = vector.load %arg17[%c0_118, %c1152] : memref<8x3200xf32, #tpu.memory_space<vmem>>, vector<1x128xf32>
    tpu.vector_store %arg17[%c0_118, %c1152], %148 {strides = array<i32>} : memref<8x3200xf32, #tpu.memory_space<vmem>>, vector<1x128xf32>,
    %c56_119 = arith.constant 56 : index
    %c0_120 = arith.constant 0 : index
    %150 = tpu.strided_load %arg16[%c56_119, %c0_120] {strides = array<i32: 2, 1>} : memref<144x128xf32, #tpu.memory_space<vmem>>, vector<5x128xf32>
    %c57 = arith.constant 57 : index
    %c0_121 = arith.constant 0 : index
    %151 = tpu.strided_load %arg16[%c57, %c0_121] {strides = array<i32: 2, 1>} : memref<144x128xf32, #tpu.memory_space<vmem>>, vector<5x128xf32>
    %152 = arith.maximumf %150, %151 : vector<5x128xf32>
    %c70 = arith.constant 70 : index
    %c0_122 = arith.constant 0 : index
    %153 = tpu.strided_load %arg16[%c70, %c0_122] {strides = array<i32: 2, 1>} : memref<144x128xf32, #tpu.memory_space<vmem>>, vector<5x128xf32>
    %c71 = arith.constant 71 : index
    %c0_123 = arith.constant 0 : index
    %154 = tpu.strided_load %arg16[%c71, %c0_123] {strides = array<i32: 2, 1>} : memref<144x128xf32, #tpu.memory_space<vmem>>, vector<5x128xf32>
    %155 = arith.maximumf %153, %154 : vector<5x128xf32>
    %156 = arith.maximumf %152, %155 : vector<5x128xf32>
    %157 = arith.addf %156, %7 : vector<5x128xf32>
    %cst_124 = arith.constant 0.000000e+00 : f32
    %158 = vector.broadcast %cst_124 : f32 to vector<5x128xf32>
    %159 = arith.maximumf %157, %158 : vector<5x128xf32>
    %160 = vector.extract_strided_slice %159 {offsets = [0, 0], sizes = [1, 128], strides = [1, 1]} : vector<5x128xf32> to vector<1x128xf32>
    %c0_125 = arith.constant 0 : index
    %c1280 = arith.constant 1280 : index
    %161 = vector.load %arg17[%c0_125, %c1280] : memref<8x3200xf32, #tpu.memory_space<vmem>>, vector<1x128xf32>
    tpu.vector_store %arg17[%c0_125, %c1280], %160 {strides = array<i32>} : memref<8x3200xf32, #tpu.memory_space<vmem>>, vector<1x128xf32>,
    %162 = vector.extract_strided_slice %159 {offsets = [1, 0], sizes = [1, 128], strides = [1, 1]} : vector<5x128xf32> to vector<1x128xf32>
    %c0_126 = arith.constant 0 : index
    %c1408 = arith.constant 1408 : index
    %163 = vector.load %arg17[%c0_126, %c1408] : memref<8x3200xf32, #tpu.memory_space<vmem>>, vector<1x128xf32>
    tpu.vector_store %arg17[%c0_126, %c1408], %162 {strides = array<i32>} : memref<8x3200xf32, #tpu.memory_space<vmem>>, vector<1x128xf32>,
    %164 = vector.extract_strided_slice %159 {offsets = [2, 0], sizes = [1, 128], strides = [1, 1]} : vector<5x128xf32> to vector<1x128xf32>
    %c0_127 = arith.constant 0 : index
    %c1536 = arith.constant 1536 : index
    %165 = vector.load %arg17[%c0_127, %c1536] : memref<8x3200xf32, #tpu.memory_space<vmem>>, vector<1x128xf32>
    tpu.vector_store %arg17[%c0_127, %c1536], %164 {strides = array<i32>} : memref<8x3200xf32, #tpu.memory_space<vmem>>, vector<1x128xf32>,
    %166 = vector.extract_strided_slice %159 {offsets = [3, 0], sizes = [1, 128], strides = [1, 1]} : vector<5x128xf32> to vector<1x128xf32>
    %c0_128 = arith.constant 0 : index
    %c1664 = arith.constant 1664 : index
    %167 = vector.load %arg17[%c0_128, %c1664] : memref<8x3200xf32, #tpu.memory_space<vmem>>, vector<1x128xf32>
    tpu.vector_store %arg17[%c0_128, %c1664], %166 {strides = array<i32>} : memref<8x3200xf32, #tpu.memory_space<vmem>>, vector<1x128xf32>,
    %168 = vector.extract_strided_slice %159 {offsets = [4, 0], sizes = [1, 128], strides = [1, 1]} : vector<5x128xf32> to vector<1x128xf32>
    %c0_129 = arith.constant 0 : index
    %c1792 = arith.constant 1792 : index
    %169 = vector.load %arg17[%c0_129, %c1792] : memref<8x3200xf32, #tpu.memory_space<vmem>>, vector<1x128xf32>
    tpu.vector_store %arg17[%c0_129, %c1792], %168 {strides = array<i32>} : memref<8x3200xf32, #tpu.memory_space<vmem>>, vector<1x128xf32>,
    %c84 = arith.constant 84 : index
    %c0_130 = arith.constant 0 : index
    %170 = tpu.strided_load %arg16[%c84, %c0_130] {strides = array<i32: 2, 1>} : memref<144x128xf32, #tpu.memory_space<vmem>>, vector<5x128xf32>
    %c85 = arith.constant 85 : index
    %c0_131 = arith.constant 0 : index
    %171 = tpu.strided_load %arg16[%c85, %c0_131] {strides = array<i32: 2, 1>} : memref<144x128xf32, #tpu.memory_space<vmem>>, vector<5x128xf32>
    %172 = arith.maximumf %170, %171 : vector<5x128xf32>
    %c98 = arith.constant 98 : index
    %c0_132 = arith.constant 0 : index
    %173 = tpu.strided_load %arg16[%c98, %c0_132] {strides = array<i32: 2, 1>} : memref<144x128xf32, #tpu.memory_space<vmem>>, vector<5x128xf32>
    %c99 = arith.constant 99 : index
    %c0_133 = arith.constant 0 : index
    %174 = tpu.strided_load %arg16[%c99, %c0_133] {strides = array<i32: 2, 1>} : memref<144x128xf32, #tpu.memory_space<vmem>>, vector<5x128xf32>
    %175 = arith.maximumf %173, %174 : vector<5x128xf32>
    %176 = arith.maximumf %172, %175 : vector<5x128xf32>
    %177 = arith.addf %176, %7 : vector<5x128xf32>
    %cst_134 = arith.constant 0.000000e+00 : f32
    %178 = vector.broadcast %cst_134 : f32 to vector<5x128xf32>
    %179 = arith.maximumf %177, %178 : vector<5x128xf32>
    %180 = vector.extract_strided_slice %179 {offsets = [0, 0], sizes = [1, 128], strides = [1, 1]} : vector<5x128xf32> to vector<1x128xf32>
    %c0_135 = arith.constant 0 : index
    %c1920 = arith.constant 1920 : index
    %181 = vector.load %arg17[%c0_135, %c1920] : memref<8x3200xf32, #tpu.memory_space<vmem>>, vector<1x128xf32>
    tpu.vector_store %arg17[%c0_135, %c1920], %180 {strides = array<i32>} : memref<8x3200xf32, #tpu.memory_space<vmem>>, vector<1x128xf32>,
    %182 = vector.extract_strided_slice %179 {offsets = [1, 0], sizes = [1, 128], strides = [1, 1]} : vector<5x128xf32> to vector<1x128xf32>
    %c0_136 = arith.constant 0 : index
    %c2048 = arith.constant 2048 : index
    %183 = vector.load %arg17[%c0_136, %c2048] : memref<8x3200xf32, #tpu.memory_space<vmem>>, vector<1x128xf32>
    tpu.vector_store %arg17[%c0_136, %c2048], %182 {strides = array<i32>} : memref<8x3200xf32, #tpu.memory_space<vmem>>, vector<1x128xf32>,
    %184 = vector.extract_strided_slice %179 {offsets = [2, 0], sizes = [1, 128], strides = [1, 1]} : vector<5x128xf32> to vector<1x128xf32>
    %c0_137 = arith.constant 0 : index
    %c2176 = arith.constant 2176 : index
    %185 = vector.load %arg17[%c0_137, %c2176] : memref<8x3200xf32, #tpu.memory_space<vmem>>, vector<1x128xf32>
    tpu.vector_store %arg17[%c0_137, %c2176], %184 {strides = array<i32>} : memref<8x3200xf32, #tpu.memory_space<vmem>>, vector<1x128xf32>,
    %186 = vector.extract_strided_slice %179 {offsets = [3, 0], sizes = [1, 128], strides = [1, 1]} : vector<5x128xf32> to vector<1x128xf32>
    %c0_138 = arith.constant 0 : index
    %c2304 = arith.constant 2304 : index
    %187 = vector.load %arg17[%c0_138, %c2304] : memref<8x3200xf32, #tpu.memory_space<vmem>>, vector<1x128xf32>
    tpu.vector_store %arg17[%c0_138, %c2304], %186 {strides = array<i32>} : memref<8x3200xf32, #tpu.memory_space<vmem>>, vector<1x128xf32>,
    %188 = vector.extract_strided_slice %179 {offsets = [4, 0], sizes = [1, 128], strides = [1, 1]} : vector<5x128xf32> to vector<1x128xf32>
    %c0_139 = arith.constant 0 : index
    %c2432 = arith.constant 2432 : index
    %189 = vector.load %arg17[%c0_139, %c2432] : memref<8x3200xf32, #tpu.memory_space<vmem>>, vector<1x128xf32>
    tpu.vector_store %arg17[%c0_139, %c2432], %188 {strides = array<i32>} : memref<8x3200xf32, #tpu.memory_space<vmem>>, vector<1x128xf32>,
    %c112 = arith.constant 112 : index
    %c0_140 = arith.constant 0 : index
    %190 = tpu.strided_load %arg16[%c112, %c0_140] {strides = array<i32: 2, 1>} : memref<144x128xf32, #tpu.memory_space<vmem>>, vector<5x128xf32>
    %c113 = arith.constant 113 : index
    %c0_141 = arith.constant 0 : index
    %191 = tpu.strided_load %arg16[%c113, %c0_141] {strides = array<i32: 2, 1>} : memref<144x128xf32, #tpu.memory_space<vmem>>, vector<5x128xf32>
    %192 = arith.maximumf %190, %191 : vector<5x128xf32>
    %c126 = arith.constant 126 : index
    %c0_142 = arith.constant 0 : index
    %193 = tpu.strided_load %arg16[%c126, %c0_142] {strides = array<i32: 2, 1>} : memref<144x128xf32, #tpu.memory_space<vmem>>, vector<5x128xf32>
    %c127 = arith.constant 127 : index
    %c0_143 = arith.constant 0 : index
    %194 = tpu.strided_load %arg16[%c127, %c0_143] {strides = array<i32: 2, 1>} : memref<144x128xf32, #tpu.memory_space<vmem>>, vector<5x128xf32>
    %195 = arith.maximumf %193, %194 : vector<5x128xf32>
    %196 = arith.maximumf %192, %195 : vector<5x128xf32>
    %197 = arith.addf %196, %7 : vector<5x128xf32>
    %cst_144 = arith.constant 0.000000e+00 : f32
    %198 = vector.broadcast %cst_144 : f32 to vector<5x128xf32>
    %199 = arith.maximumf %197, %198 : vector<5x128xf32>
    %200 = vector.extract_strided_slice %199 {offsets = [0, 0], sizes = [1, 128], strides = [1, 1]} : vector<5x128xf32> to vector<1x128xf32>
    %c0_145 = arith.constant 0 : index
    %c2560 = arith.constant 2560 : index
    %201 = vector.load %arg17[%c0_145, %c2560] : memref<8x3200xf32, #tpu.memory_space<vmem>>, vector<1x128xf32>
    tpu.vector_store %arg17[%c0_145, %c2560], %200 {strides = array<i32>} : memref<8x3200xf32, #tpu.memory_space<vmem>>, vector<1x128xf32>,
    %202 = vector.extract_strided_slice %199 {offsets = [1, 0], sizes = [1, 128], strides = [1, 1]} : vector<5x128xf32> to vector<1x128xf32>
    %c0_146 = arith.constant 0 : index
    %c2688 = arith.constant 2688 : index
    %203 = vector.load %arg17[%c0_146, %c2688] : memref<8x3200xf32, #tpu.memory_space<vmem>>, vector<1x128xf32>
    tpu.vector_store %arg17[%c0_146, %c2688], %202 {strides = array<i32>} : memref<8x3200xf32, #tpu.memory_space<vmem>>, vector<1x128xf32>,
    %204 = vector.extract_strided_slice %199 {offsets = [2, 0], sizes = [1, 128], strides = [1, 1]} : vector<5x128xf32> to vector<1x128xf32>
    %c0_147 = arith.constant 0 : index
    %c2816 = arith.constant 2816 : index
    %205 = vector.load %arg17[%c0_147, %c2816] : memref<8x3200xf32, #tpu.memory_space<vmem>>, vector<1x128xf32>
    tpu.vector_store %arg17[%c0_147, %c2816], %204 {strides = array<i32>} : memref<8x3200xf32, #tpu.memory_space<vmem>>, vector<1x128xf32>,
    %206 = vector.extract_strided_slice %199 {offsets = [3, 0], sizes = [1, 128], strides = [1, 1]} : vector<5x128xf32> to vector<1x128xf32>
    %c0_148 = arith.constant 0 : index
    %c2944 = arith.constant 2944 : index
    %207 = vector.load %arg17[%c0_148, %c2944] : memref<8x3200xf32, #tpu.memory_space<vmem>>, vector<1x128xf32>
    tpu.vector_store %arg17[%c0_148, %c2944], %206 {strides = array<i32>} : memref<8x3200xf32, #tpu.memory_space<vmem>>, vector<1x128xf32>,
    %208 = vector.extract_strided_slice %199 {offsets = [4, 0], sizes = [1, 128], strides = [1, 1]} : vector<5x128xf32> to vector<1x128xf32>
    %c0_149 = arith.constant 0 : index
    %c3072 = arith.constant 3072 : index
    %209 = vector.load %arg17[%c0_149, %c3072] : memref<8x3200xf32, #tpu.memory_space<vmem>>, vector<1x128xf32>
    tpu.vector_store %arg17[%c0_149, %c3072], %208 {strides = array<i32>} : memref<8x3200xf32, #tpu.memory_space<vmem>>, vector<1x128xf32>,
    %c0_150 = arith.constant 0 : index
    %c0_151 = arith.constant 0 : index
    %210 = vector.load %arg17[%c0_150, %c0_151] : memref<8x3200xf32, #tpu.memory_space<vmem>>, vector<8x3200xf32>
    %211 = arith.truncf %210 : vector<8x3200xf32> to vector<8x3200xbf16>
    %c0_152 = arith.constant 0 : index
    %c0_153 = arith.constant 0 : index
    %212 = vector.load %arg6[%c0_152, %c0_153] : memref<3200x128xbf16, #tpu.memory_space<vmem>>, vector<3200x128xbf16>
    %cst_154 = arith.constant dense<0.000000e+00> : vector<8x128xf32>
    %213 = tpu.matmul %211, %212, %cst_154 {dimension_numbers = #tpu.dot_dimension_numbers<[1], [0], [0], [1], [0, 0, 1, 1], [], []>} : vector<8x3200xbf16>, vector<3200x128xbf16>, vector<8x128xf32> -> vector<8x128xf32>
    %c0_155 = arith.constant 0 : index
    %c0_156 = arith.constant 0 : index
    %214 = vector.load %arg7[%c0_155, %c0_156] : memref<1x128xf32, #tpu.memory_space<vmem>>, vector<1x128xf32>
    %215 = vector.broadcast %214 : vector<1x128xf32> to vector<8x128xf32>
    %216 = arith.addf %213, %215 : vector<8x128xf32>
    %cst_157 = arith.constant 0.000000e+00 : f32
    %217 = vector.broadcast %cst_157 : f32 to vector<8x128xf32>
    %218 = arith.maximumf %216, %217 : vector<8x128xf32>
    %219 = arith.truncf %218 : vector<8x128xf32> to vector<8x128xbf16>
    %c0_158 = arith.constant 0 : index
    %c0_159 = arith.constant 0 : index
    %220 = vector.load %arg8[%c0_158, %c0_159] : memref<128x128xbf16, #tpu.memory_space<vmem>>, vector<128x128xbf16>
    %cst_160 = arith.constant dense<0.000000e+00> : vector<8x128xf32>
    %221 = tpu.matmul %219, %220, %cst_160 {dimension_numbers = #tpu.dot_dimension_numbers<[1], [0], [0], [1], [0, 0, 1, 1], [], []>} : vector<8x128xbf16>, vector<128x128xbf16>, vector<8x128xf32> -> vector<8x128xf32>
    %c0_161 = arith.constant 0 : index
    %c0_162 = arith.constant 0 : index
    %222 = vector.load %arg9[%c0_161, %c0_162] : memref<1x128xf32, #tpu.memory_space<vmem>>, vector<1x128xf32>
    %223 = vector.broadcast %222 : vector<1x128xf32> to vector<8x128xf32>
    %224 = arith.addf %221, %223 : vector<8x128xf32>
    %cst_163 = arith.constant 0.000000e+00 : f32
    %225 = vector.broadcast %cst_163 : f32 to vector<8x128xf32>
    %226 = arith.maximumf %224, %225 : vector<8x128xf32>
    %227 = arith.truncf %226 : vector<8x128xf32> to vector<8x128xbf16>
    %c0_164 = arith.constant 0 : index
    %c0_165 = arith.constant 0 : index
    %228 = vector.load %arg10[%c0_164, %c0_165] : memref<128x128xbf16, #tpu.memory_space<vmem>>, vector<128x128xbf16>
    %cst_166 = arith.constant dense<0.000000e+00> : vector<8x128xf32>
    %229 = tpu.matmul %227, %228, %cst_166 {dimension_numbers = #tpu.dot_dimension_numbers<[1], [0], [0], [1], [0, 0, 1, 1], [], []>} : vector<8x128xbf16>, vector<128x128xbf16>, vector<8x128xf32> -> vector<8x128xf32>
    %c0_167 = arith.constant 0 : index
    %c0_168 = arith.constant 0 : index
    %230 = vector.load %arg11[%c0_167, %c0_168] : memref<1x128xf32, #tpu.memory_space<vmem>>, vector<1x128xf32>
    %231 = vector.broadcast %230 : vector<1x128xf32> to vector<8x128xf32>
    %232 = arith.addf %229, %231 : vector<8x128xf32>
    %cst_169 = arith.constant 0.000000e+00 : f32
    %233 = vector.broadcast %cst_169 : f32 to vector<8x128xf32>
    %234 = arith.maximumf %232, %233 : vector<8x128xf32>
    %c0_170 = arith.constant 0 : index
    %c0_171 = arith.constant 0 : index
    %c0_172 = arith.constant 0 : index
    %235 = vector.load %arg12[%c0_170, %c0_171, %c0_172] : memref<1x8x128xf32, #tpu.memory_space<vmem>>, vector<1x8x128xf32>
    %236 = vector.shape_cast %235 : vector<1x8x128xf32> to vector<8x128xf32>
    %237 = vector.shape_cast %234 : vector<8x128xf32> to vector<1x8x128xf32>
    tpu.vector_store %arg12[%c0_170, %c0_171, %c0_172], %237 {strides = array<i32>} : memref<1x8x128xf32, #tpu.memory_space<vmem>>, vector<1x8x128xf32>,
    return
  }
  func.func @transform_0(%arg0: i32) -> (i32, i32, i32) {
    %c0_i32 = arith.constant 0 : i32
    %c0_i32_0 = arith.constant 0 : i32
    %c0_i32_1 = arith.constant 0 : i32
    return %arg0, %c0_i32, %c0_i32_0 : i32, i32, i32
  }
  func.func @transform_1(%arg0: i32) -> (i32, i32) {
    %c0_i32 = arith.constant 0 : i32
    %c0_i32_0 = arith.constant 0 : i32
    %c0_i32_1 = arith.constant 0 : i32
    return %c0_i32, %c0_i32_0 : i32, i32
  }
  func.func @transform_2(%arg0: i32) -> (i32, i32) {
    %c0_i32 = arith.constant 0 : i32
    %c0_i32_0 = arith.constant 0 : i32
    %c0_i32_1 = arith.constant 0 : i32
    return %c0_i32, %c0_i32_0 : i32, i32
  }
  func.func @transform_3(%arg0: i32) -> (i32, i32, i32) {
    %c0_i32 = arith.constant 0 : i32
    %c0_i32_0 = arith.constant 0 : i32
    %c0_i32_1 = arith.constant 0 : i32
    %c0_i32_2 = arith.constant 0 : i32
    return %c0_i32, %c0_i32_0, %c0_i32_1 : i32, i32, i32
  }
  func.func @transform_4(%arg0: i32) -> (i32, i32) {
    %c0_i32 = arith.constant 0 : i32
    %c0_i32_0 = arith.constant 0 : i32
    %c0_i32_1 = arith.constant 0 : i32
    return %c0_i32, %c0_i32_0 : i32, i32
  }
  func.func @transform_5(%arg0: i32) -> (i32, i32) {
    %c0_i32 = arith.constant 0 : i32
    %c0_i32_0 = arith.constant 0 : i32
    %c0_i32_1 = arith.constant 0 : i32
    return %c0_i32, %c0_i32_0 : i32, i32
  }
  func.func @transform_6(%arg0: i32) -> (i32, i32) {
    %c0_i32 = arith.constant 0 : i32
    %c0_i32_0 = arith.constant 0 : i32
    %c0_i32_1 = arith.constant 0 : i32
    return %c0_i32, %c0_i32_0 : i32, i32
  }
  func.func @transform_7(%arg0: i32) -> (i32, i32) {
    %c0_i32 = arith.constant 0 : i32
    %c0_i32_0 = arith.constant 0 : i32
    %c0_i32_1 = arith.constant 0 : i32
    return %c0_i32, %c0_i32_0 : i32, i32
  }
  func.func @transform_8(%arg0: i32) -> (i32, i32) {
    %c0_i32 = arith.constant 0 : i32
    %c0_i32_0 = arith.constant 0 : i32
    %c0_i32_1 = arith.constant 0 : i32
    return %c0_i32, %c0_i32_0 : i32, i32
  }
  func.func @transform_9(%arg0: i32) -> (i32, i32) {
    %c0_i32 = arith.constant 0 : i32
    %c0_i32_0 = arith.constant 0 : i32
    %c0_i32_1 = arith.constant 0 : i32
    return %c0_i32, %c0_i32_0 : i32, i32
  }
  func.func @transform_10(%arg0: i32) -> (i32, i32) {
    %c0_i32 = arith.constant 0 : i32
    %c0_i32_0 = arith.constant 0 : i32
    %c0_i32_1 = arith.constant 0 : i32
    return %c0_i32, %c0_i32_0 : i32, i32
  }
  func.func @transform_11(%arg0: i32) -> (i32, i32, i32) {
    %c0_i32 = arith.constant 0 : i32
    %c0_i32_0 = arith.constant 0 : i32
    %c0_i32_1 = arith.constant 0 : i32
    return %arg0, %c0_i32, %c0_i32_0 : i32, i32, i32
  }
}

</mosaic_0001>

<bundles_post_ra>
// kernel: cnn_forward.1
= control target key start
LH: loop header
LB: loop body
LE: loop exit
PB: predicated region body
PF: predicated region fallthrough
CT: control target
= control target key end

     0   :  { %s7621_s17 = smov 0   ;;  %s9293_s0 = inlined_call_operand.vmem [shape: bf16[2,800,128], index: 0, kind: input, shape index: {}]   ;;  %s9294_s1 = inlined_call_operand.vmem [shape: bf16[128,128], index: 1, kind: input, shape index: {}]   ;;  %s9295_s2 = inlined_call_operand.vmem [shape: f32[1,128], index: 2, kind: input, shape index: {}]   ;;  %s9296_s3 = inlined_call_operand.vmem [shape: bf16[5,128,128], index: 3, kind: input, shape index: {}]   ;;  %s9297_s4 = inlined_call_operand.vmem [shape: f32[1,128], index: 4, kind: input, shape index: {}]   ;;  %s9298_s5 = inlined_call_operand.vmem [shape: bf16[3200,128], index: 5, kind: input, shape index: {}]   ;;  %s9299_s6 = inlined_call_operand.vmem [shape: f32[1,128], index: 6, kind: input, shape index: {}]   ;;  %s9300_s7 = inlined_call_operand.vmem [shape: bf16[128,128], index: 7, kind: input, shape index: {}]   ;;  %s9301_s8 = inlined_call_operand.vmem [shape: f32[1,128], index: 8, kind: input, shape index: {}]   ;;  %s9302_s9 = inlined_call_operand.vmem [shape: bf16[128,128], index: 9, kind: input, shape index: {}]   ;;  %s9303_s10 = inlined_call_operand.vmem [shape: f32[1,128], index: 10, kind: input, shape index: {}]   ;;  %s9304_s11 = inlined_call_operand.vmem [shape: f32[2,8,128], index: 11, kind: output, shape index: {}]  }
   0x1 LB: > { %s5811_s18 = sadd.s32 4294967295, %s7553_s17   ;;  %p5815_p0 = scmp.ge.s32.totalorder %s7553_s17, 1  ;;  %s7553_s17 = sphi %s7621_s17, %s21_s17  }
   0x2   : > { %p337_p1 = scmp.lt.s32.totalorder %s7553_s17, 3 }
   0x4   : > { %p338_p2 = pnand %p5815_p0, %p337_p1 }
   0x6   : > { %341 = sbr.rel (%p338_p2) target bundleno = 2083 (0x823), region = 64 }
   0xd   : > { %v7232_v0 = vld [vmem:[%s9294_s1] sm:$0xff]   ;;  %p376_p3 = scmp.lt.s32.totalorder %s5811_s18, 1  ;;  %v7233_v1 = vld [vmem:[%s9294_s1 + $0x8] sm:$0xff]   ;;  %v7234_v2 = vld [vmem:[%s9294_s1 + $0x10] sm:$0xff]   ;;  %vm1708_vm0 = vcmask 64512   ;;  %s7556_s24 = smov 8  }
   0xe   : > { %6637 = vmatprep.subr.bf16.mxu0 %v7232_v0  ;;  %v7235_v3 = vld [vmem:[%s9294_s1 + $0x18] sm:$0xff]   ;;  %v7236_v5 = vld [vmem:[%s9294_s1 + $0x20] sm:$0xff]   ;;  %v7237_v6 = vld [vmem:[%s9294_s1 + $0x28] sm:$0xff]   ;;  %s7557_s27 = smov 16   ;;  %s7558_s30 = smov 32   ;;  %vm7560_vm1 = vmmov 0  }
   0xf   : > { %s9401_s18 = smov (!%p376_p3, %s5811_s18), 1  ;;  %6638 = vmatpush3.bf16.msra.mxu0 %v7232_v0  ;;  %v7238_v7 = vld [vmem:[%s9294_s1 + $0x30] sm:$0xff]   ;;  %v7239_v8 = vld [vmem:[%s9294_s1 + $0x38] sm:$0xff]   ;;  %s7559_s16 = smov 24   ;;  %vm1817_vm2 = vcmask 130112   ;;  %vm1926_vm3 = vcmask 195712  }
  0x10   : > { %6639 = vmatprep.subr.bf16.mxu0 %v7233_v1  ;;  %s7217_s25 = smul.u32 400, %s9401_s18  ;;  %vm2035_vm4 = vcmask 261312   ;;  %vm2144_vm5 = vcmask 326912   ;;  %s5817_s21 = sshll.u32 %s9401_s18, 3 }
  0x12   : > { %s7644_s28 = scalar_lea.vmem %s9293_s0, %s7217_s25  ;;  %s384_s25 = scalar_lea.vmem %s9304_s11, %s5817_s21 }
  0x13   : > { %6640 = vmatpush3.bf16.msra.mxu0 %v7233_v1  ;;  %v7240_v4 = vld [vmem:[%s7644_s28] sm:$0xff]   ;;  %v7241_v9 = vld [vmem:[%s7644_s28 + $0x8] sm:$0xff]   ;;  %v7242_v10 = vld [vmem:[%s7644_s28 + $0x10] sm:$0xff]  }
  0x14   : > { %6641 = vmatprep.subr.bf16.mxu0 %v7234_v2  ;;  %6653 = vmatprep.mubr.bf16.mxu0 %v7240_v4  ;;  %v7243_v11 = vld [vmem:[%s7644_s28 + $0x18] sm:$0xff]   ;;  %v7244_v12 = vld [vmem:[%s7644_s28 + $0x20] sm:$0xff]   ;;  %v7245_v13 = vld [vmem:[%s7644_s28 + $0x28] sm:$0xff]  }
  0x15   : > { %v7246_v14 = vld [vmem:[%s7644_s28 + $0x30] sm:$0xff]   ;;  %v7247_v15 = vld [vmem:[%s7644_s28 + $0x38] sm:$0xff]   ;;  %v7248_v16 = vld [vmem:[%s7644_s28 + $0x40] sm:$0xff]  }
  0x16   : > { %v7249_v17 = vld [vmem:[%s7644_s28 + $0x48] sm:$0xff]   ;;  %v7250_v18 = vld [vmem:[%s7644_s28 + $0x50] sm:$0xff]   ;;  %v7251_v19 = vld [vmem:[%s7644_s28 + $0x58] sm:$0xff]  }
  0x17   : > { %6642 = vmatpush3.bf16.msra.mxu0 %v7234_v2  ;;  %v7252_v20 = vld [vmem:[%s7644_s28 + $0x60] sm:$0xff]   ;;  %v7253_v21 = vld [vmem:[%s7644_s28 + $0x68] sm:$0xff]   ;;  %v7254_v22 = vld [vmem:[%s7644_s28 + $0x70] sm:$0xff]  }
  0x18   : > { %6643 = vmatprep.subr.bf16.mxu0 %v7235_v3  ;;  %v7255_v23 = vld [vmem:[%s7644_s28 + $0x78] sm:$0xff]   ;;  %v7256_v24 = vld [vmem:[%s7644_s28 + $0x80] sm:$0xff]   ;;  %v7257_v25 = vld [vmem:[%s7644_s28 + $0x88] sm:$0xff]  }
  0x19   : > { %v7258_v26 = vld [vmem:[%s7644_s28 + $0x90] sm:$0xff]   ;;  %v7259_v27 = vld [vmem:[%s7644_s28 + $0x98] sm:$0xff]   ;;  %v7260_v28 = vld [vmem:[%s7644_s28 + $0xa0] sm:$0xff]  }
  0x1a   : > { %v7261_v29 = vld [vmem:[%s7644_s28 + $0xa8] sm:$0xff]   ;;  %v7262_v30 = vld [vmem:[%s7644_s28 + $0xb0] sm:$0xff]   ;;  %v7263_v31 = vld [vmem:[%s7644_s28 + $0xb8] sm:$0xff]  }
  0x1b   : > { %6644 = vmatpush3.bf16.msra.mxu0 %v7235_v3  ;;  %v7264_v32 = vld [vmem:[%s7644_s28 + $0xc0] sm:$0xff]   ;;  %v7265_v33 = vld [vmem:[%s7644_s28 + $0xc8] sm:$0xff]   ;;  %v7266_v34 = vld [vmem:[%s7644_s28 + $0xd0] sm:$0xff]  }
  0x1c   : > { %6645 = vmatprep.subr.bf16.mxu0 %v7236_v5  ;;  %v7267_v35 = vld [vmem:[%s7644_s28 + $0xd8] sm:$0xff]   ;;  %v7268_v36 = vld [vmem:[%s7644_s28 + $0xe0] sm:$0xff]   ;;  %v7269_v37 = vld [vmem:[%s7644_s28 + $0xe8] sm:$0xff]  }
  0x1d   : > { %v7270_v38 = vld [vmem:[%s7644_s28 + $0xf0] sm:$0xff]   ;;  %v7271_v39 = vld [vmem:[%s7644_s28 + $0xf8] sm:$0xff]   ;;  %v7272_v40 = vld [vmem:[%s7644_s28 + $0x100] sm:$0xff]  }
  0x1e   : > { %v7273_v41 = vld [vmem:[%s7644_s28 + $0x108] sm:$0xff]   ;;  %v7274_v42 = vld [vmem:[%s7644_s28 + $0x110] sm:$0xff]   ;;  %v7275_v43 = vld [vmem:[%s7644_s28 + $0x118] sm:$0xff]  }
  0x1f   : > { %6646 = vmatpush3.bf16.msra.mxu0 %v7236_v5  ;;  %v7276_v44 = vld [vmem:[%s7644_s28 + $0x120] sm:$0xff]   ;;  %v7277_v45 = vld [vmem:[%s7644_s28 + $0x128] sm:$0xff]   ;;  %v7278_v46 = vld [vmem:[%s7644_s28 + $0x130] sm:$0xff]  }
  0x20   : > { %6647 = vmatprep.subr.bf16.mxu0 %v7237_v6  ;;  %v7279_v47 = vld [vmem:[%s7644_s28 + $0x138] sm:$0xff]   ;;  %v7280_v48 = vld [vmem:[%s7644_s28 + $0x140] sm:$0xff]   ;;  %v7281_v49 = vld [vmem:[%s7644_s28 + $0x148] sm:$0xff]  }
  0x21   : > { %v7282_v50 = vld [vmem:[%s7644_s28 + $0x150] sm:$0xff]   ;;  %v7283_v51 = vld [vmem:[%s7644_s28 + $0x158] sm:$0xff]   ;;  %v7284_v52 = vld [vmem:[%s7644_s28 + $0x160] sm:$0xff]  }
  0x22   : > { %v7285_v53 = vld [vmem:[%s7644_s28 + $0x168] sm:$0xff]   ;;  %v7286_v54 = vld [vmem:[%s7644_s28 + $0x170] sm:$0xff]   ;;  %v7287_v55 = vld [vmem:[%s7644_s28 + $0x178] sm:$0xff]  }
  0x23   : > { %6648 = vmatpush3.bf16.msra.mxu0 %v7237_v6  ;;  %v7288_v56 = vld [vmem:[%s7644_s28 + $0x180] sm:$0xff]   ;;  %v7289_v57 = vld [vmem:[%s7644_s28 + $0x188] sm:$0xff]  }
  0x24   : > { %6649 = vmatprep.subr.bf16.mxu0 %v7238_v7 }
  0x27   : > { %6650 = vmatpush3.bf16.msra.mxu0 %v7238_v7 }
  0x28   : > { %6651 = vmatprep.subr.bf16.mxu0 %v7239_v8 }
  0x2b   : > { %6652 = vmatpush3.bf16.msra.mxu0 %v7239_v8 }
  0x2e   : > { %6654 = vmatmul.mubr.bf16.vlgmr.msra.gmra.mrb[0].mxu0 %v7241_v9 }
  0x2f   : > { %6657 = vmatprep.mubr.bf16.mxu0 %v7242_v10  ;;  %v9305_v10 = vmov 0.0  }
  0x30   : > { %1674 = vst [vmem:[#allocation4 + $0x10] sm:$0xff] %v9305_v10  ;;  %386 = vst [vmem:[#allocation6] sm:$0xff] %v9305_v10  ;;  %6753 = vmatprep.subr.bf16.mxu1 %v9305_v10 }
  0x31   : > { %387 = vst [vmem:[#allocation6 + $0x8] sm:$0xff] %v9305_v10  ;;  %388 = vst [vmem:[#allocation6 + $0x10] sm:$0xff] %v9305_v10 }
  0x32   : > { %389 = vst [vmem:[#allocation6 + $0x18] sm:$0xff] %v9305_v10  ;;  %390 = vst [vmem:[#allocation6 + $0x20] sm:$0xff] %v9305_v10 }
  0x33   : > { %391 = vst [vmem:[#allocation6 + $0x28] sm:$0xff] %v9305_v10  ;;  %392 = vst [vmem:[#allocation6 + $0x30] sm:$0xff] %v9305_v10 }
  0x34   : > { %393 = vst [vmem:[#allocation6 + $0x38] sm:$0xff] %v9305_v10  ;;  %394 = vst [vmem:[#allocation6 + $0x40] sm:$0xff] %v9305_v10 }
  0x35   : > { %395 = vst [vmem:[#allocation6 + $0x48] sm:$0xff] %v9305_v10  ;;  %396 = vst [vmem:[#allocation6 + $0x50] sm:$0xff] %v9305_v10 }
  0x36   : > { %6658 = vmatmul.mubr.bf16.gmra.mrb[4].mxu0 %v7243_v11  ;;  %397 = vst [vmem:[#allocation6 + $0x58] sm:$0xff] %v9305_v10  ;;  %398 = vst [vmem:[#allocation6 + $0x60] sm:$0xff] %v9305_v10 }
  0x37   : > { %6661 = vmatprep.mubr.bf16.mxu0 %v7244_v12  ;;  %399 = vst [vmem:[#allocation6 + $0x68] sm:$0xff] %v9305_v10  ;;  %400 = vst [vmem:[#allocation6 + $0x70] sm:$0xff] %v9305_v10 }
  0x38   : > { %401 = vst [vmem:[#allocation6 + $0x78] sm:$0xff] %v9305_v10  ;;  %402 = vst [vmem:[#allocation6 + $0x80] sm:$0xff] %v9305_v10 }
  0x39   : > { %403 = vst [vmem:[#allocation6 + $0x88] sm:$0xff] %v9305_v10  ;;  %404 = vst [vmem:[#allocation6 + $0x90] sm:$0xff] %v9305_v10 }
  0x3a   : > { %405 = vst [vmem:[#allocation6 + $0x98] sm:$0xff] %v9305_v10  ;;  %406 = vst [vmem:[#allocation6 + $0xa0] sm:$0xff] %v9305_v10 }
  0x3b   : > { %407 = vst [vmem:[#allocation6 + $0xa8] sm:$0xff] %v9305_v10  ;;  %408 = vst [vmem:[#allocation6 + $0xb0] sm:$0xff] %v9305_v10 }
  0x3c   : > { %409 = vst [vmem:[#allocation6 + $0xb8] sm:$0xff] %v9305_v10  ;;  %410 = vst [vmem:[#allocation6 + $0xc0] sm:$0xff] %v9305_v10 }
  0x3d   : > { %1672 = vst [vmem:[#allocation4] sm:$0xff] %v9305_v10  ;;  %1673 = vst [vmem:[#allocation4 + $0x8] sm:$0xff] %v9305_v10 }
  0x3e   : > { %6662 = vmatmul.mubr.bf16.gmra.mrb[8].mxu0 %v7245_v13  ;;  %1675 = vst [vmem:[#allocation4 + $0x18] sm:$0xff] %v9305_v10  ;;  %1676 = vst [vmem:[#allocation4 + $0x20] sm:$0xff] %v9305_v10 }
  0x3f   : > { %6665 = vmatprep.mubr.bf16.mxu0 %v7246_v14  ;;  %1677 = vst [vmem:[#allocation4 + $0x28] sm:$0xff] %v9305_v10  ;;  %1678 = vst [vmem:[#allocation4 + $0x30] sm:$0xff] %v9305_v10 }
  0x40   : > { %1679 = vst [vmem:[#allocation4 + $0x38] sm:$0xff] %v9305_v10  ;;  %1680 = vst [vmem:[#allocation4 + $0x40] sm:$0xff] %v9305_v10 }
  0x41   : > { %1681 = vst [vmem:[#allocation4 + $0x48] sm:$0xff] %v9305_v10  ;;  %1682 = vst [vmem:[#allocation4 + $0x50] sm:$0xff] %v9305_v10 }
  0x42   : > { %1683 = vst [vmem:[#allocation4 + $0x58] sm:$0xff] %v9305_v10  ;;  %1684 = vst [vmem:[#allocation4 + $0x60] sm:$0xff] %v9305_v10 }
  0x43   : > { %1685 = vst [vmem:[#allocation4 + $0x68] sm:$0xff] %v9305_v10  ;;  %1686 = vst [vmem:[#allocation4 + $0x70] sm:$0xff] %v9305_v10 }
  0x44   : > { %1687 = vst [vmem:[#allocation4 + $0x78] sm:$0xff] %v9305_v10  ;;  %1688 = vst [vmem:[#allocation4 + $0x80] sm:$0xff] %v9305_v10 }
  0x45   : > { %1689 = vst [vmem:[#allocation4 + $0x88] sm:$0xff] %v9305_v10 }
  0x46   : > { %6666 = vmatmul.mubr.bf16.gmra.mrb[12].mxu0 %v7247_v15 }
  0x47   : > { %6669 = vmatprep.mubr.bf16.mxu0 %v7248_v16 }
  0x4e   : > { %6670 = vmatmul.mubr.bf16.gmra.mrb[16].mxu0 %v7249_v17 }
  0x4f   : > { %6673 = vmatprep.mubr.bf16.mxu0 %v7250_v18 }
  0x56   : > { %6674 = vmatmul.mubr.bf16.gmra.mrb[20].mxu0 %v7251_v19 }
  0x57   : > { %6677 = vmatprep.mubr.bf16.mxu0 %v7252_v20 }
  0x5e   : > { %6678 = vmatmul.mubr.bf16.gmra.mrb[24].mxu0 %v7253_v21 }
  0x5f   : > { %6681 = vmatprep.mubr.bf16.mxu0 %v7254_v22 }
  0x66   : > { %6682 = vmatmul.mubr.bf16.gmra.mrb[28].mxu0 %v7255_v23 }
  0x67   : > { %6685 = vmatprep.mubr.bf16.mxu0 %v7256_v24 }
  0x6e   : > { %6686 = vmatmul.mubr.bf16.gmra.mrb[32].mxu0 %v7257_v25 }
  0x6f   : > { %6689 = vmatprep.mubr.bf16.mxu0 %v7258_v26 }
  0x76   : > { %6690 = vmatmul.mubr.bf16.gmra.mrb[36].mxu0 %v7259_v27 }
  0x77   : > { %6693 = vmatprep.mubr.bf16.mxu0 %v7260_v28 }
  0x7e   : > { %6694 = vmatmul.mubr.bf16.gmra.mrb[40].mxu0 %v7261_v29 }
  0x7f   : > { %6697 = vmatprep.mubr.bf16.mxu0 %v7262_v30 }
  0x86   : > { %6698 = vmatmul.mubr.bf16.gmra.mrb[44].mxu0 %v7263_v31 }
  0x87   : > { %6701 = vmatprep.mubr.bf16.mxu0 %v7264_v32 }
  0x8e   : > { %6702 = vmatmul.mubr.bf16.gmra.mrb[48].mxu0 %v7265_v33 }
  0x8f   : > { %6705 = vmatprep.mubr.bf16.mxu0 %v7266_v34 }
  0x96   : > { %6706 = vmatmul.mubr.bf16.gmra.mrb[52].mxu0 %v7267_v35 }
  0x97   : > { %6709 = vmatprep.mubr.bf16.mxu0 %v7268_v36 }
  0x9e   : > { %6710 = vmatmul.mubr.bf16.gmra.mrb[56].mxu0 %v7269_v37 }
  0x9f   : > { %6713 = vmatprep.mubr.bf16.mxu0 %v7270_v38 }
  0xa6   : > { %6714 = vmatmul.mubr.bf16.gmra.mrb[60].mxu0 %v7271_v39 }
  0xa7   : > { %6717 = vmatprep.mubr.bf16.mxu0 %v7272_v40 }
  0xae   : > { %6718 = vmatmul.mubr.bf16.gmra.mrb[64].mxu0 %v7273_v41 }
  0xaf   : > { %6721 = vmatprep.mubr.bf16.mxu0 %v7274_v42 }
  0xb6   : > { %6722 = vmatmul.mubr.bf16.gmra.mrb[68].mxu0 %v7275_v43 }
  0xb7   : > { %6725 = vmatprep.mubr.bf16.mxu0 %v7276_v44 }
  0xbe   : > { %6726 = vmatmul.mubr.bf16.gmra.mrb[72].mxu0 %v7277_v45 }
  0xbf   : > { %6729 = vmatprep.mubr.bf16.mxu0 %v7278_v46 }
  0xc6   : > { %6730 = vmatmul.mubr.bf16.gmra.mrb[76].mxu0 %v7279_v47 }
  0xc7   : > { %6733 = vmatprep.mubr.bf16.mxu0 %v7280_v48 }
  0xce   : > { %6734 = vmatmul.mubr.bf16.gmra.mrb[80].mxu0 %v7281_v49 }
  0xcf   : > { %6737 = vmatprep.mubr.bf16.mxu0 %v7282_v50 }
  0xd6   : > { %6738 = vmatmul.mubr.bf16.gmra.mrb[84].mxu0 %v7283_v51 }
  0xd7   : > { %6741 = vmatprep.mubr.bf16.mxu0 %v7284_v52 }
  0xde   : > { %6742 = vmatmul.mubr.bf16.gmra.mrb[88].mxu0 %v7285_v53 }
  0xdf   : > { %6745 = vmatprep.mubr.bf16.mxu0 %v7286_v54 }
  0xe6   : > { %6746 = vmatmul.mubr.bf16.gmra.mrb[92].mxu0 %v7287_v55 }
  0xe7   : > { %6749 = vmatprep.mubr.bf16.mxu0 %v7288_v56 }
  0xee   : > { %6750 = vmatmul.mubr.bf16.gmra.mrb[96].mxu0 %v7289_v57 }
 0x101   : > { %v7711_v58 = vpop.f32.mrb[0].mxu0 }
 0x102   : > { %v7713_v59 = vpop.f32.mrb[1].mxu0 }
 0x103   : > { %v7715_v60 = vpop.f32.mrb[2].mxu0 }
 0x104   : > { %v7717_v61 = vpop.f32.mrb[3].mxu0 }
 0x109   : > { %v7719_v62 = vpop.f32.mrb[4].mxu0 }
 0x10a   : > { %v7721_v63 = vpop.f32.mrb[5].mxu0 }
 0x10b   : > { %v7723_v0 = vpop.f32.mrb[6].mxu0 }
 0x10c   : > { %v7725_v1 = vpop.f32.mrb[7].mxu0 }
 0x111   : > { %v7727_v2 = vpop.f32.mrb[8].mxu0 }
 0x112   : > { %v7729_v3 = vpop.f32.mrb[9].mxu0 }
 0x113   : > { %v7731_v4 = vpop.f32.mrb[10].mxu0 }
 0x114   : > { %v7733_v5 = vpop.f32.mrb[11].mxu0 }
 0x119   : > { %v7735_v6 = vpop.f32.mrb[12].mxu0 }
 0x11a   : > { %v7737_v7 = vpop.f32.mrb[13].mxu0 }
 0x11b   : > { %v7739_v8 = vpop.f32.mrb[14].mxu0 }
 0x11c   : > { %v7741_v9 = vpop.f32.mrb[15].mxu0 }
 0x121   : > { %v7787_v11 = vpop.f32.mrb[16].mxu0 }
 0x122   : > { %9324 = vst [vmem:[#allocation7_spill] sm:$0xff] %v7787_v11  ;;  %v7789_v12 = vpop.f32.mrb[17].mxu0 }
 0x123   : > { %v7791_v13 = vpop.f32.mrb[18].mxu0 }
 0x124   : > { %9325 = vst [vmem:[#allocation8_spill] sm:$0xff] %v7791_v13  ;;  %v7793_v14 = vpop.f32.mrb[19].mxu0 }
 0x125   : > { %9326 = vst [vmem:[#allocation9_spill] sm:$0xff] %v7793_v14  ;;  %v7946_v14 = vld [vmem:[%s9295_s2] ss:$0 sm:$0xff] }
 0x129   : > { %v7795_v15 = vpop.f32.mrb[20].mxu0 }
 0x12a   : > { %9327 = vst [vmem:[#allocation10_spill] sm:$0xff] %v7795_v15  ;;  %v7797_v16 = vpop.f32.mrb[21].mxu0 }
 0x12b   : > { %9328 = vst [vmem:[#allocation11_spill] sm:$0xff] %v7797_v16  ;;  %v7799_v17 = vpop.f32.mrb[22].mxu0 }
 0x12c   : > { %9329 = vst [vmem:[#allocation12_spill] sm:$0xff] %v7799_v17  ;;  %v7801_v18 = vpop.f32.mrb[23].mxu0 }
 0x12d   : > { %9330 = vst [vmem:[#allocation13_spill] sm:$0xff] %v7801_v18 }
 0x131   : > { %v7803_v19 = vpop.f32.mrb[24].mxu0 }
 0x132   : > { %v7807_v21 = vpop.f32.mrb[25].mxu0 }
 0x133   : > { %9331 = vst [vmem:[#allocation14_spill] sm:$0xff] %v7807_v21  ;;  %v7809_v22 = vpop.f32.mrb[26].mxu0 }
 0x134   : > { %v7813_v24 = vpop.f32.mrb[27].mxu0 }
 0x139   : > { %v7817_v26 = vpop.f32.mrb[28].mxu0 }
 0x13a   : > { %v7821_v28 = vpop.f32.mrb[29].mxu0 }
 0x13b   : > { %v7825_v30 = vpop.f32.mrb[30].mxu0 }
 0x13c   : > { %v7829_v32 = vpop.f32.mrb[31].mxu0 }
 0x141   : > { %v7833_v34 = vpop.f32.mrb[32].mxu0 }
 0x142   : > { %v7837_v36 = vpop.f32.mrb[33].mxu0 }
 0x143   : > { %v7841_v38 = vpop.f32.mrb[34].mxu0 }
 0x144   : > { %v7845_v40 = vpop.f32.mrb[35].mxu0 }
 0x149   : > { %v7849_v42 = vpop.f32.mrb[36].mxu0 }
 0x14a   : > { %v7853_v44 = vpop.f32.mrb[37].mxu0 }
 0x14b   : > { %v7857_v46 = vpop.f32.mrb[38].mxu0 }
 0x14c   : > { %9332 = vst [vmem:[#allocation15_spill] sm:$0xff] %v7857_v46  ;;  %v7861_v48 = vpop.f32.mrb[39].mxu0 }
 0x151   : > { %v7865_v50 = vpop.f32.mrb[40].mxu0 }
 0x152   : > { %9333 = vst [vmem:[#allocation16_spill] sm:$0xff] %v7865_v50  ;;  %v7869_v52 = vpop.f32.mrb[41].mxu0 }
 0x153   : > { %v7873_v54 = vpop.f32.mrb[42].mxu0 }
 0x154   : > { %9334 = vst [vmem:[#allocation17_spill] sm:$0xff] %v7873_v54  ;;  %v7877_v56 = vpop.f32.mrb[43].mxu0 }
 0x159   : > { %v7881_v47 = vpop.f32.mrb[44].mxu0 }
 0x15a   : > { %9335 = vst [vmem:[#allocation18_spill] sm:$0xff] %v7881_v47  ;;  %v7885_v43 = vpop.f32.mrb[45].mxu0 }
 0x15b   : > { %9336 = vst [vmem:[#allocation19_spill] sm:$0xff] %v7885_v43  ;;  %v7889_v10 = vpop.f32.mrb[46].mxu0 }
 0x15c   : > { %9337 = vst [vmem:[#allocation20_spill] sm:$0xff] %v7889_v10  ;;  %v7893_v39 = vpop.f32.mrb[47].mxu0 }
 0x15d   : > { %9338 = vst [vmem:[#allocation21_spill] sm:$0xff] %v7893_v39 }
 0x161   : > { %v6703_v49 = vpop.f32.mrb[48].mxu0 }
 0x162   : > { %v7897_v35 = vpop.f32.mrb[49].mxu0 }
 0x163   : > { %9339 = vst [vmem:[#allocation22_spill] sm:$0xff] %v7897_v35  ;;  %v6704_v45 = vpop.f32.mrb[50].mxu0 }
 0x164   : > { %v7901_v31 = vpop.f32.mrb[51].mxu0 }
 0x165   : > { %9340 = vst [vmem:[#allocation23_spill] sm:$0xff] %v7901_v31 }
 0x169   : > { %v6707_v41 = vpop.f32.mrb[52].mxu0 }
 0x16a   : > { %v1131_v27 = vpop.f32.mrb[53].mxu0 }
 0x16b   : > { %v7905_v55 = vpop.f32.mrb[54].mxu0 }
 0x16c   : > { %v1134_v37 = vpop.f32.mrb[55].mxu0 }
 0x171   : > { %v7907_v23 = vpop.f32.mrb[56].mxu0 }
 0x172   : > { %v7909_v57 = vpop.f32.mrb[57].mxu0 }
 0x173   : > { %v7911_v33 = vpop.f32.mrb[58].mxu0 }
 0x174   : > { %v1150_v20 = vpop.f32.mrb[59].mxu0 }
 0x179   : > { %v7913_v29 = vpop.f32.mrb[60].mxu0 }
 0x17a   : > { %v7915_v51 = vpop.f32.mrb[61].mxu0 }
 0x17b   : > { %v7917_v25 = vpop.f32.mrb[62].mxu0 }
 0x17c   : > { %v7919_v10 = vpop.f32.mrb[63].mxu0 }
 0x181   : > { %v7921_v53 = vpop.f32.mrb[64].mxu0 }
 0x182   : > { %v7923_v15 = vpop.f32.mrb[65].mxu0 }
 0x183   : > { %v7925_v31 = vpop.f32.mrb[66].mxu0 }
 0x184   : > { %9341 = vst [vmem:[#allocation24_spill] sm:$0xff] %v7925_v31  ;;  %v7927_v21 = vpop.f32.mrb[67].mxu0 }
 0x189   : > { %v7929_v47 = vpop.f32.mrb[68].mxu0 }
 0x18a   : > { %9342 = vst [vmem:[#allocation25_spill] sm:$0xff] %v7929_v47  ;;  %v7931_v18 = vpop.f32.mrb[69].mxu0 }
 0x18b   : > { %9343 = vst [vmem:[#allocation26_spill] sm:$0xff] %v7931_v18  ;;  %v7933_v35 = vpop.f32.mrb[70].mxu0  ;;  %v9349_v18 = vmax.f32 %v7713_v59, %v7813_v24  ;;  %v9351_v59 = vmax.f32 %v7717_v61, %v7803_v19 }
 0x18c   : > { %9344 = vst [vmem:[#allocation27_spill] sm:$0xff] %v7933_v35  ;;  %v7935_v17 = vpop.f32.mrb[71].mxu0 }
 0x18d   : > { %9345 = vst [vmem:[#allocation28_spill] sm:$0xff] %v7935_v17 }
 0x191   : > { %v7937_v54 = vpop.f32.mrb[72].mxu0 }
 0x192   : > { %9346 = vst [vmem:[#allocation29_spill] sm:$0xff] %v7937_v54  ;;  %v7939_v11 = vpop.f32.mrb[73].mxu0 }
 0x193   : > { %9347 = vst [vmem:[#allocation30_spill] sm:$0xff] %v7939_v11  ;;  %v6728_v39 = vpop.f32.mrb[74].mxu0 }
 0x194   : > { %v1447_v16 = vmax.f32 %v6703_v49, %v6728_v39  ;;  %v7941_v50 = vpop.f32.mrb[75].mxu0  ;;  %v9350_v49 = vmax.f32 %v7715_v60, %v7821_v28  ;;  %v9353_v60 = vmax.f32 %v7711_v58, %v7809_v22  ;;  %v9354_v58 = vmax.f32 %v7723_v0, %v7837_v36 }
 0x195   : > { %9348 = vst [vmem:[#allocation31_spill] sm:$0xff] %v7941_v50  ;;  %v9356_v0 = vmax.f32 %v7729_v3, %v7845_v40 }
 0x196   : > { %v1452_v47 = vmax.f32 %v9349_v18, %v1447_v16 }
 0x198   : > { %v1457_v35 = vadd.f32 %v7946_v14, %v1452_v47 }
 0x199   : > { %v6731_v43 = vpop.f32.mrb[76].mxu0 }
 0x19a   : > { %v1462_v54 = vmax.f32 %v1457_v35, 0.0  ;;  %v1450_v13 = vmax.f32 %v1134_v37, %v6731_v43  ;;  %v1227_v11 = vpop.f32.mrb[77].mxu0  ;;  %v9352_v35 = vmax.f32 %v7721_v63, %v7829_v32 }
 0x19b   : > { %v1448_v31 = vmax.f32 %v6704_v45, %v1227_v11  ;;  %v6732_v39 = vpop.f32.mrb[78].mxu0 }
 0x19c   : > { %v1455_v50 = vmax.f32 %v9350_v49, %v1450_v13  ;;  %v1451_v17 = vmax.f32 %v6707_v41, %v6732_v39  ;;  %v1230_v46 = vpop.f32.mrb[79].mxu0  ;;  %1709 = vst.msk [vmem:[#allocation4] sm:$0xff] %vm1708_vm0, %v1462_v54  ;;  %v9357_v39 = vmax.f32 %v7719_v62, %v7825_v30 }
 0x19d   : > { %v1453_v16 = vmax.f32 %v9351_v59, %v1448_v31  ;;  %v1449_v18 = vmax.f32 %v1131_v27, %v1230_v46 }
 0x19e   : > { %v1460_v24 = vadd.f32 %v7946_v14, %v1455_v50  ;;  %v1456_v11 = vmax.f32 %v9352_v35, %v1451_v17 }
 0x19f   : > { %v1458_v37 = vadd.f32 %v7946_v14, %v1453_v16  ;;  %v1454_v13 = vmax.f32 %v9353_v60, %v1449_v18 }
 0x1a0   : > { %v1465_v28 = vmax.f32 %v1460_v24, 0.0  ;;  %v1461_v41 = vadd.f32 %v7946_v14, %v1456_v11  ;;  %v9358_v11 = vmax.f32 %v7731_v4, %v7853_v44  ;;  %v7290_v4 = vld [vmem:[%s9296_s3 + $0x40] sm:$0xff]   ;;  %v9360_v44 = vmax.f32 %v7737_v7, %v7861_v48 }
 0x1a1   : > { %v1463_v43 = vmax.f32 %v1458_v37, 0.0  ;;  %v1459_v61 = vadd.f32 %v7946_v14, %v1454_v13  ;;  %v6735_v19 = vpop.f32.mrb[80].mxu0  ;;  %6754 = vmatpush3.bf16.msra.mxu1 %v7290_v4 }
 0x1a2   : > { %1470 = vst [vmem:[#allocation3 + $0x18] sm:$0xff] %v1465_v28  ;;  %v1466_v27 = vmax.f32 %v1461_v41, 0.0  ;;  %v1499_v31 = vmax.f32 %v1150_v20, %v6735_v19  ;;  %v1243_v45 = vpop.f32.mrb[81].mxu0  ;;  %1712 = vst.msk [vmem:[#allocation4 + $0x18] sm:$0xff] %vm1708_vm0, %v1465_v28  ;;  %v9355_v20 = vmax.f32 %v7725_v1, %v7817_v26 }
 0x1a3   : > { %1468 = vst [vmem:[#allocation3 + $0x8] sm:$0xff] %v1463_v43  ;;  %v1464_v63 = vmax.f32 %v1459_v61, 0.0  ;;  %v1497_v17 = vmax.f32 %v7905_v55, %v1243_v45  ;;  %v6736_v32 = vpop.f32.mrb[82].mxu0  ;;  %1710 = vst.msk [vmem:[#allocation4 + $0x8] sm:$0xff] %vm1708_vm0, %v1463_v43  ;;  %v9362_v45 = vmov 0.0  }
 0x1a4   : > { %1471 = vst [vmem:[#allocation3 + $0x20] sm:$0xff] %v1466_v27  ;;  %v1504_v22 = vmax.f32 %v9354_v58, %v1499_v31  ;;  %v1500_v46 = vmax.f32 %v7907_v23, %v6736_v32  ;;  %v1246_v47 = vpop.f32.mrb[83].mxu0  ;;  %1713 = vst.msk [vmem:[#allocation4 + $0x20] sm:$0xff] %vm1708_vm0, %v1466_v27  ;;  %6755 = vmatprep.subr.bf16.mxu1 %v9362_v45  ;;  %6769 = vmatprep.mubr.msk.bf16.mxu1 %vm7560_vm1, %v9362_v45 }
 0x1a5   : > { %1469 = vst [vmem:[#allocation3 + $0x10] sm:$0xff] %v1464_v63  ;;  %v1502_v50 = vmax.f32 %v9355_v20, %v1497_v17  ;;  %v1498_v54 = vmax.f32 %v7909_v57, %v1246_v47  ;;  %1711 = vst.msk [vmem:[#allocation4 + $0x10] sm:$0xff] %vm1708_vm0, %v1464_v63 }
 0x1a6   : > { %v1509_v55 = vadd.f32 %v7946_v14, %v1504_v22  ;;  %v1505_v36 = vmax.f32 %v9356_v0, %v1500_v46 }
 0x1a7   : > { %v1507_v23 = vadd.f32 %v7946_v14, %v1502_v50  ;;  %v1503_v49 = vmax.f32 %v9357_v39, %v1498_v54 }
 0x1a8   : > { %v1514_v59 = vmax.f32 %v1509_v55, 0.0  ;;  %v1510_v1 = vadd.f32 %v7946_v14, %v1505_v36  ;;  %v7292_v36 = vld [vmem:[%s9296_s3 + $0x50] sm:$0xff]  }
 0x1a9   : > { %v1512_v26 = vmax.f32 %v1507_v23, 0.0  ;;  %v1508_v57 = vadd.f32 %v7946_v14, %v1503_v49  ;;  %v6739_v16 = vpop.f32.mrb[84].mxu0 }
 0x1aa   : > { %1519 = vst [vmem:[#allocation3 + $0x38] sm:$0xff] %v1514_v59  ;;  %v7992_v18 = vmax.f32 %v1510_v1, 0.0  ;;  %v1548_v24 = vmax.f32 %v7919_v10, %v6739_v16  ;;  %v1259_v3 = vpop.f32.mrb[85].mxu0  ;;  %1716 = vst.msk [vmem:[#allocation4 + $0x38] sm:$0xff] %vm1708_vm0, %v1514_v59  ;;  %v9368_v16 = vld [vmem:[#allocation28_spill] sm:$0xff] }
 0x1ab   : > { %1517 = vst [vmem:[#allocation3 + $0x28] sm:$0xff] %v1512_v26  ;;  %v1513_v40 = vmax.f32 %v1508_v57, 0.0  ;;  %v1501_v62 = vmax.f32 %v7911_v33, %v1259_v3  ;;  %v6740_v30 = vpop.f32.mrb[86].mxu0  ;;  %v1729_v35 = vld [vmem:[#allocation3 + $0x1e] sm:$0xff]  ;;  %1714 = vst.msk [vmem:[#allocation4 + $0x28] sm:$0xff] %vm1708_vm0, %v1512_v26  ;;  %v9359_v33 = vmax.f32 %v7733_v5, %v7833_v34  ;;  %v9361_v5 = vmax.f32 %v7727_v2, %v7841_v38  ;;  %v7291_v38 = vld [vmem:[%s9296_s3 + $0x48] sm:$0xff]  }
 0x1ac   : > { %1520 = vst [vmem:[#allocation3 + $0x40] sm:$0xff] %v7992_v18  ;;  %v1553_v37 = vmax.f32 %v9358_v11, %v1548_v24  ;;  %v1549_v60 = vmax.f32 %v7913_v29, %v6740_v30  ;;  %1767 = vrot.lane.b32.xlu1 %v1729_v35, %s7556_s24  ;;  %v1262_v10 = vpop.f32.mrb[87].mxu0  ;;  %v1727_v13 = vld [vmem:[#allocation3 + $0xe] sm:$0xff]  ;;  %1717 = vst.msk [vmem:[#allocation4 + $0x40] sm:$0xff] %vm1708_vm0, %v7992_v18  ;;  %v1728_v31 = vld [vmem:[#allocation3 + $0x16] sm:$0xff]  ;;  %6756 = vmatpush3.bf16.msra.mxu1 %v7291_v38 }
 0x1ad   : > { %1518 = vst [vmem:[#allocation3 + $0x30] sm:$0xff] %v1513_v40  ;;  %v1506_v28 = vmax.f32 %v9359_v33, %v1501_v62  ;;  %v1547_v41 = vmax.f32 %v7915_v51, %v1262_v10  ;;  %1763 = vrot.lane.b32.xlu0 %v1727_v13, %s7556_s24  ;;  %1715 = vst.msk [vmem:[#allocation4 + $0x30] sm:$0xff] %vm1708_vm0, %v1513_v40  ;;  %v1836_v51 = vld [vmem:[#allocation3 + $0x1c] sm:$0xff]  ;;  %6757 = vmatprep.subr.bf16.mxu1 %v9362_v45 }
 0x1ae   : > { %v1558_v29 = vadd.f32 %v7946_v14, %v1553_v37  ;;  %v1554_v43 = vmax.f32 %v9360_v44, %v1549_v60  ;;  %v9369_v62 = vld [vmem:[#allocation24_spill] sm:$0xff]  ;;  %v9371_v60 = vld [vmem:[#allocation19_spill] sm:$0xff]  ;;  %v9373_v33 = vld [vmem:[#allocation25_spill] sm:$0xff] }
 0x1af   : > { %v1511_v61 = vadd.f32 %v7946_v14, %v1506_v28  ;;  %v1552_v34 = vmax.f32 %v9361_v5, %v1547_v41  ;;  %v9370_v37 = vld [vmem:[#allocation8_spill] sm:$0xff]  ;;  %v9377_v5 = vld [vmem:[#allocation26_spill] sm:$0xff]  ;;  %v7294_v38 = vld [vmem:[%s9296_s3 + $0x60] sm:$0xff]  }
 0x1b0   : > { %v8023_v19 = vmax.f32 %v1558_v29, 0.0  ;;  %v1559_v27 = vadd.f32 %v7946_v14, %v1554_v43  ;;  %1872 = vrot.lane.b32.xlu1 %v1836_v51, %s7557_s27  ;;  %6758 = vmatpush3.bf16.msra.mxu1 %v7292_v36  ;;  %v9372_v10 = vmax.f32 %v9370_v37, %v9371_v60  ;;  %v9374_v29 = vld [vmem:[#allocation9_spill] sm:$0xff]  ;;  %v9375_v44 = vld [vmem:[#allocation16_spill] sm:$0xff] }
 0x1b1   : > { %v8028_v7 = vmax.f32 %v1511_v61, 0.0  ;;  %v1557_v48 = vadd.f32 %v7946_v14, %v1552_v34  ;;  %1765 = vrot.lane.b32.xlu0 %v1728_v31, %s7556_s24  ;;  %v6743_v2 = vpop.f32.mrb[88].mxu0  ;;  %6759 = vmatprep.subr.bf16.mxu1 %v9362_v45  ;;  %v9376_v43 = vmax.f32 %v9374_v29, %v9375_v44  ;;  %v9379_v31 = vld [vmem:[#allocation21_spill] sm:$0xff]  ;;  %v9397_v29 = vld [vmem:[#allocation10_spill] sm:$0xff]  ;;  %v9398_v44 = vld [vmem:[#allocation20_spill] sm:$0xff] }
 0x1b2   : > { %1568 = vst [vmem:[#allocation3 + $0x58] sm:$0xff] %v8023_v19  ;;  %v8036_v63 = vmax.f32 %v1559_v27, 0.0  ;;  %v1597_v17 = vmax.f32 %v7927_v21, %v6743_v2  ;;  %v1275_v32 = vpop.f32.mrb[89].mxu0  ;;  %1720 = vst.msk [vmem:[#allocation4 + $0x58] sm:$0xff] %vm1708_vm0, %v8023_v19  ;;  %v9363_v21 = vmax.f32 %v7739_v8, %v7869_v52  ;;  %v1837_v54 = vld [vmem:[#allocation3 + $0x24] sm:$0xff]  ;;  %v9378_v27 = vld [vmem:[#allocation11_spill] sm:$0xff] }
 0x1b3   : > { %1521 = vst [vmem:[#allocation3 + $0x48] sm:$0xff] %v8028_v7  ;;  %v8042_v58 = vmax.f32 %v1557_v48, 0.0  ;;  %v1550_v22 = vmax.f32 %v7917_v25, %v1275_v32  ;;  %v6744_v46 = vpop.f32.mrb[90].mxu0  ;;  %1718 = vst.msk [vmem:[#allocation4 + $0x48] sm:$0xff] %vm1708_vm0, %v8028_v7  ;;  %v9364_v25 = vmax.f32 %v7741_v9, %v7849_v42  ;;  %v9366_v42 = vld [vmem:[#allocation15_spill] sm:$0xff]  ;;  %v1840_v39 = vld [vmem:[#allocation3 + $0x3c] sm:$0xff]  ;;  %v9380_v48 = vmax.f32 %v9378_v27, %v9379_v31 }
 0x1b4   : > { %1569 = vst [vmem:[#allocation3 + $0x60] sm:$0xff] %v8036_v63  ;;  %v1602_v47 = vmax.f32 %v9363_v21, %v1597_v17  ;;  %v1598_v20 = vmax.f32 %v7921_v53, %v6744_v46  ;;  %2090 = vrot.lane.b32.xlu1 %v1514_v59, %s7558_s30  ;;  %v1278_v50 = vpop.f32.mrb[91].mxu0  ;;  %1721 = vst.msk [vmem:[#allocation4 + $0x60] sm:$0xff] %vm1708_vm0, %v8036_v63  ;;  %v9365_v53 = vmax.f32 %v7789_v12, %v7877_v56  ;;  %v1730_v1 = vld [vmem:[#allocation3 + $0x26] sm:$0xff]  ;;  %v1733_v11 = vld [vmem:[#allocation3 + $0x3e] sm:$0xff] }
 0x1b5   : > { %1567 = vst [vmem:[#allocation3 + $0x50] sm:$0xff] %v8042_v58  ;;  %v1555_v55 = vmax.f32 %v9364_v25, %v1550_v22  ;;  %v1551_v8 = vmax.f32 %v7923_v15, %v1278_v50  ;;  %1874 = vrot.lane.b32.xlu0 %v1837_v54, %s7557_s27  ;;  %1719 = vst.msk [vmem:[#allocation4 + $0x50] sm:$0xff] %vm1708_vm0, %v8042_v58  ;;  %v9367_v15 = vmax.f32 %v7735_v6, %v9366_v42  ;;  %v7293_v6 = vld [vmem:[%s9296_s3 + $0x58] sm:$0xff]   ;;  %v9381_v32 = vld [vmem:[#allocation7_spill] sm:$0xff] }
 0x1b6   : > { %v1607_v52 = vadd.f32 %v7946_v14, %v1602_v47  ;;  %v1603_v0 = vmax.f32 %v9365_v53, %v1598_v20  ;;  %v1947_v4 = vld [vmem:[#allocation3 + $0x3a] sm:$0xff]  ;;  %6760 = vmatpush3.bf16.msra.mxu1 %v7293_v6  ;;  %v1838_v47 = vld [vmem:[#allocation3 + $0x2c] sm:$0xff] }
 0x1b7   : > { %v1560_v9 = vadd.f32 %v7946_v14, %v1555_v55  ;;  %v1556_v23 = vmax.f32 %v9367_v15, %v1551_v8  ;;  %6761 = vmatprep.subr.bf16.mxu1 %v9362_v45  ;;  %v9382_v22 = vld [vmem:[#allocation17_spill] sm:$0xff]  ;;  %v7295_v54 = vld [vmem:[%s9296_s3 + $0x68] sm:$0xff]   ;;  %v9384_v53 = vld [vmem:[#allocation31_spill] sm:$0xff] }
 0x1b8   : > { %v8075_v49 = vmax.f32 %v1607_v52, 0.0  ;;  %v1608_v59 = vadd.f32 %v7946_v14, %v1603_v0  ;;  %1880 = vrot.lane.b32.xlu1 %v1840_v39, %s7557_s27  ;;  %v9383_v46 = vmax.f32 %v9381_v32, %v9382_v22  ;;  %v9385_v42 = vld [vmem:[#allocation27_spill] sm:$0xff] }
 0x1b9   : > { %v8079_v12 = vmax.f32 %v1560_v9, 0.0  ;;  %v1561_v56 = vadd.f32 %v7946_v14, %v1556_v23  ;;  %1769 = vrot.lane.b32.xlu0 %v1730_v1, %s7556_s24  ;;  %v6747_v26 = vpop.f32.mrb[92].mxu0  ;;  %v1946_v39 = vld [vmem:[#allocation3 + $0x32] sm:$0xff] }
 0x1ba   : > { %1617 = vst [vmem:[#allocation3 + $0x78] sm:$0xff] %v8075_v49  ;;  %v8088_v57 = vmax.f32 %v1608_v59, 0.0  ;;  %v1601_v24 = vmax.f32 %v9368_v16, %v6747_v26  ;;  %v1291_v3 = vpop.f32.mrb[93].mxu0  ;;  %1724 = vst.msk [vmem:[#allocation4 + $0x78] sm:$0xff] %vm1708_vm0, %v8075_v49  ;;  %6762 = vmatpush3.bf16.msra.mxu1 %v7294_v38  ;;  %v9387_v59 = vld [vmem:[#allocation22_spill] sm:$0xff]  ;;  %v9389_v26 = vld [vmem:[#allocation29_spill] sm:$0xff] }
 0x1bb   : > { %1570 = vst [vmem:[#allocation3 + $0x68] sm:$0xff] %v8079_v12  ;;  %v8094_v40 = vmax.f32 %v1561_v56, 0.0  ;;  %v1599_v30 = vmax.f32 %v9369_v62, %v1291_v3  ;;  %v6748_v35 = vpop.f32.mrb[94].mxu0  ;;  %1722 = vst.msk [vmem:[#allocation4 + $0x68] sm:$0xff] %vm1708_vm0, %v8079_v12  ;;  %6763 = vmatprep.subr.bf16.mxu1 %v9362_v45  ;;  %v9390_v3 = vld [vmem:[#allocation13_spill] sm:$0xff]  ;;  %v9391_v62 = vld [vmem:[#allocation18_spill] sm:$0xff] }
 0x1bc   : > { %1618 = vst [vmem:[#allocation3 + $0x80] sm:$0xff] %v8088_v57  ;;  %v1606_v13 = vmax.f32 %v9372_v10, %v1601_v24  ;;  %v1647_v28 = vmax.f32 %v9373_v33, %v6748_v35  ;;  %1775 = vrot.lane.b32.xlu1 %v1733_v11, %s7556_s24  ;;  %v1294_v41 = vpop.f32.mrb[95].mxu0  ;;  %1725 = vst.msk [vmem:[#allocation4 + $0x80] sm:$0xff] %vm1708_vm0, %v8088_v57  ;;  %v1945_v24 = vld [vmem:[#allocation3 + $0x2a] sm:$0xff]  ;;  %v1839_v31 = vld [vmem:[#allocation3 + $0x34] sm:$0xff] }
 0x1bd   : > { %1571 = vst [vmem:[#allocation3 + $0x70] sm:$0xff] %v8094_v40  ;;  %v1604_v61 = vmax.f32 %v9376_v43, %v1599_v30  ;;  %v1600_v34 = vmax.f32 %v9377_v5, %v1294_v41  ;;  %1985 = vrot.lane.b32.xlu0 %v1947_v4, %s7559_s16  ;;  %1723 = vst.msk [vmem:[#allocation4 + $0x70] sm:$0xff] %vm1708_vm0, %v8094_v40  ;;  %v9392_v30 = vmax.f32 %v9390_v3, %v9391_v62  ;;  %v9393_v11 = vld [vmem:[#allocation30_spill] sm:$0xff]  ;;  %v7296_v41 = vld [vmem:[%s9296_s3 + $0x70] sm:$0xff]  }
 0x1be   : > { %v8117_v51 = vadd.f32 %v7946_v14, %v1606_v13  ;;  %v1652_v2 = vmax.f32 %v9380_v48, %v1647_v28  ;;  %6764 = vmatpush3.bf16.msra.mxu1 %v7295_v54  ;;  %v9394_v10 = vld [vmem:[#allocation14_spill] sm:$0xff]  ;;  %v9395_v13 = vld [vmem:[#allocation23_spill] sm:$0xff]  ;;  %v9399_v43 = vmax.f32 %v9397_v29, %v9398_v44  ;;  %v7297_v48 = vld [vmem:[%s9296_s3 + $0x78] sm:$0xff]  }
 0x1bf   : > { %v1609_v17 = vadd.f32 %v7946_v14, %v1604_v61  ;;  %v1605_v21 = vmax.f32 %v9383_v46, %v1600_v34  ;;  %6765 = vmatprep.subr.bf16.mxu1 %v9362_v45  ;;  %v9396_v33 = vmax.f32 %v9394_v10, %v9395_v13  ;;  %v1731_v5 = vld [vmem:[#allocation3 + $0x2e] sm:$0xff]  ;;  %v1732_v22 = vld [vmem:[#allocation3 + $0x36] sm:$0xff]  ;;  %v1841_v46 = vld [vmem:[#allocation3 + $0x44] sm:$0xff] }
 0x1c0   : > { %v1616_v20 = vmax.f32 %v8117_v51, 0.0  ;;  %v8131_v50 = vadd.f32 %v7946_v14, %v1652_v2  ;;  %1876 = vrot.lane.b32.xlu1 %v1838_v47, %s7557_s27  ;;  %v1734_v47 = vld [vmem:[#allocation3 + $0x46] sm:$0xff]  ;;  %v1737_v54 = vld [vmem:[#allocation3 + $0x5e] sm:$0xff] }
 0x1c1   : > { %v8137_v25 = vmax.f32 %v1609_v17, 0.0  ;;  %v8140_v55 = vadd.f32 %v7946_v14, %v1605_v21  ;;  %2092 = vrot.lane.b32.xlu0 %v7992_v18, %s7558_s30  ;;  %v6751_v8 = vpop.f32.mrb[96].mxu0  ;;  %v9386_v18 = vld [vmem:[#allocation12_spill] sm:$0xff] }
 0x1c2   : > { %1621 = vst [vmem:[#allocation3 + $0x98] sm:$0xff] %v1616_v20  ;;  %v1662_v52 = vmax.f32 %v8131_v50, 0.0  ;;  %v1650_v0 = vmax.f32 %v9384_v53, %v6751_v8  ;;  %v1307_v36 = vpop.f32.mrb[97].mxu0  ;;  %v9388_v1 = vmax.f32 %v9386_v18, %v9387_v59  ;;  %6766 = vmatpush3.bf16.msra.mxu1 %v7296_v41  ;;  %v1844_v21 = vld [vmem:[#allocation3 + $0x5c] sm:$0xff]  ;;  %v1842_v8 = vld [vmem:[#allocation3 + $0x4c] sm:$0xff] }
 0x1c3   : > { %1619 = vst [vmem:[#allocation3 + $0x88] sm:$0xff] %v8137_v25  ;;  %v1615_v9 = vmax.f32 %v8140_v55, 0.0  ;;  %v1648_v15 = vmax.f32 %v9385_v42, %v1307_v36  ;;  %v6752_v23 = vpop.f32.mrb[98].mxu0  ;;  %1726 = vst.msk [vmem:[#allocation4 + $0x88] sm:$0xff] %vm1708_vm0, %v8137_v25  ;;  %6767 = vmatprep.subr.bf16.mxu1 %v9362_v45  ;;  %v1950_v53 = vld [vmem:[#allocation3 + $0x52] sm:$0xff]  ;;  %v1955_v42 = vld [vmem:[#allocation3 + $0x7a] sm:$0xff] }
 0x1c4   : > { %1667 = vst [vmem:[#allocation3 + $0xa0] sm:$0xff] %v1662_v52  ;;  %v1655_v56 = vmax.f32 %v9388_v1, %v1650_v0  ;;  %v1651_v6 = vmax.f32 %v9389_v26, %v6752_v23  ;;  %1983 = vrot.lane.b32.xlu1 %v1946_v39, %s7559_s16  ;;  %v1310_v16 = vpop.f32.mrb[99].mxu0  ;;  %v1735_v0 = vld [vmem:[#allocation3 + $0x4e] sm:$0xff]  ;;  %v1848_v23 = vld [vmem:[#allocation3 + $0x7c] sm:$0xff]  ;;  %v1738_v39 = vld [vmem:[#allocation3 + $0x66] sm:$0xff] }
 0x1c5   : > { %1620 = vst [vmem:[#allocation3 + $0x90] sm:$0xff] %v1615_v9  ;;  %v1653_v35 = vmax.f32 %v9392_v30, %v1648_v15  ;;  %v1649_v37 = vmax.f32 %v9393_v11, %v1310_v16  ;;  %1981 = vrot.lane.b32.xlu0 %v1945_v24, %s7559_s16  ;;  %v1843_v36 = vld [vmem:[#allocation3 + $0x54] sm:$0xff]  ;;  %v1845_v15 = vld [vmem:[#allocation3 + $0x64] sm:$0xff]  ;;  %v1846_v18 = vld [vmem:[#allocation3 + $0x6c] sm:$0xff] }
 0x1c6   : > { %v8170_v60 = vadd.f32 %v7946_v14, %v1655_v56  ;;  %v1656_v28 = vmax.f32 %v9396_v33, %v1651_v6  ;;  %6768 = vmatpush3.bf16.msra.mxu1 %v7297_v48  ;;  %v1954_v59 = vld [vmem:[#allocation3 + $0x72] sm:$0xff] }
 0x1c7   : > { %v8179_v4 = vadd.f32 %v7946_v14, %v1653_v35  ;;  %v1654_v61 = vmax.f32 %v9399_v43, %v1649_v37  ;;  %6805 = vmatprep.subr.bf16.mxu1 %v9362_v45  ;;  %v1739_v1 = vld [vmem:[#allocation3 + $0x6e] sm:$0xff] }
 0x1c8   : > { %v1665_v34 = vmax.f32 %v8170_v60, 0.0  ;;  %v8186_v27 = vadd.f32 %v7946_v14, %v1656_v28  ;;  %1771 = vrot.lane.b32.xlu1 %v1731_v5, %s7556_s24  ;;  %v1847_v56 = vld [vmem:[#allocation3 + $0x74] sm:$0xff] }
 0x1c9   : > { %v1663_v2 = vmax.f32 %v8179_v4, 0.0  ;;  %v8194_v38 = vadd.f32 %v7946_v14, %v1654_v61  ;;  %1878 = vrot.lane.b32.xlu0 %v1839_v31, %s7557_s27  ;;  %v1948_v14 = vld [vmem:[#allocation3 + $0x42] sm:$0xff] }
 0x1ca   : > { %1670 = vst [vmem:[#allocation3 + $0xb8] sm:$0xff] %v1665_v34  ;;  %v1666_v17 = vmax.f32 %v8186_v27, 0.0  ;;  %v1849_v6 = vld [vmem:[#allocation3 + $0x84] sm:$0xff] }
 0x1cb   : > { %1668 = vst [vmem:[#allocation3 + $0xa8] sm:$0xff] %v1663_v2  ;;  %v1664_v32 = vmax.f32 %v8194_v38, 0.0  ;;  %v1959_v26 = vld [vmem:[#allocation3 + $0x9a] sm:$0xff]  ;;  %v1742_v51 = vld [vmem:[#allocation3 + $0x86] sm:$0xff] }
 0x1cc   : > { %2098 = vrot.lane.b32.xlu1 %v8023_v19, %s7558_s30  ;;  %v1951_v19 = vld [vmem:[#allocation3 + $0x5a] sm:$0xff]  ;;  %v1850_v3 = vld [vmem:[#allocation3 + $0x8c] sm:$0xff] }
 0x1cd   : > { %1669 = vst [vmem:[#allocation3 + $0xb0] sm:$0xff] %v1664_v32  ;;  %1773 = vrot.lane.b32.xlu0 %v1732_v22, %s7556_s24  ;;  %v1852_v16 = vld [vmem:[#allocation3 + $0x9c] sm:$0xff]  ;;  %v1743_v50 = vld [vmem:[#allocation3 + $0x8e] sm:$0xff] }
 0x1ce   : > { %v1851_v55 = vld [vmem:[#allocation3 + $0x94] sm:$0xff] }
 0x1cf   : > { %v1744_v44 = vld [vmem:[#allocation3 + $0x96] sm:$0xff] }
 0x1d0   : > { %2094 = vrot.lane.b32.xlu1 %v8028_v7, %s7558_s30  ;;  %v1949_v7 = vld [vmem:[#allocation3 + $0x4a] sm:$0xff] }
 0x1d1   : > { %1987 = vrot.lane.b32.xlu0 %v1948_v14, %s7559_s16 }
 0x1d2   : > { %v1960_v13 = vld [vmem:[#allocation3 + $0xa2] sm:$0xff] }
 0x1d3   : > { %v1853_v29 = vld [vmem:[#allocation3 + $0xa4] sm:$0xff] }
 0x1d4   : > { %1993 = vrot.lane.b32.xlu1 %v1951_v19, %s7559_s16  ;;  %v1961_v10 = vld [vmem:[#allocation3 + $0xaa] sm:$0xff]  ;;  %v1962_v61 = vld [vmem:[#allocation3 + $0xb2] sm:$0xff]  ;;  %v7298_v19 = vld [vmem:[%s9296_s3] sm:$0xff]  }
 0x1d5   : > { %1882 = vrot.lane.b32.xlu0 %v1841_v46, %s7557_s27 }
 0x1d8   : > { %1888 = vrot.lane.b32.xlu1 %v1844_v21, %s7557_s27 }
 0x1d9   : > { %1777 = vrot.lane.b32.xlu0 %v1734_v47, %s7556_s24 }
 0x1dc   : > { %1783 = vrot.lane.b32.xlu1 %v1737_v54, %s7556_s24  ;;  %v7299_v54 = vld [vmem:[%s9296_s3 + $0x8] sm:$0xff]  }
 0x1dd   : > { %2100 = vrot.lane.b32.xlu0 %v8036_v63, %s7558_s30  ;;  %v1736_v63 = vld [vmem:[#allocation3 + $0x56] sm:$0xff] }
 0x1e0   : > { %1989 = vrot.lane.b32.xlu1 %v1949_v7, %s7559_s16 }
 0x1e1   : > { %2096 = vrot.lane.b32.xlu0 %v8042_v58, %s7558_s30  ;;  %v1952_v58 = vld [vmem:[#allocation3 + $0x62] sm:$0xff] }
 0x1e4   : > { %1884 = vrot.lane.b32.xlu1 %v1842_v8, %s7557_s27  ;;  %v8318_v8 = vld [vmem:[#allocation6] sm:$0xff] }
 0x1e5   : > { %1991 = vrot.lane.b32.xlu0 %v1950_v53, %s7559_s16 }
 0x1e8   : > { %1779 = vrot.lane.b32.xlu1 %v1735_v0, %s7556_s24  ;;  %v7300_v0 = vld [vmem:[%s9296_s3 + $0x10] sm:$0xff]  }
 0x1e9   : > { %1886 = vrot.lane.b32.xlu0 %v1843_v36, %s7557_s27 }
 0x1ec   : > { %2106 = vrot.lane.b32.xlu1 %v8075_v49, %s7558_s30  ;;  %v1741_v49 = vld [vmem:[#allocation3 + $0x7e] sm:$0xff] }
 0x1ed   : > { %1781 = vrot.lane.b32.xlu0 %v1736_v63, %s7556_s24  ;;  %v7301_v63 = vld [vmem:[%s9296_s3 + $0x18] sm:$0xff]  }
 0x1f0   : > { %2102 = vrot.lane.b32.xlu1 %v8079_v12, %s7558_s30  ;;  %v1953_v12 = vld [vmem:[#allocation3 + $0x6a] sm:$0xff] }
 0x1f1   : > { %1995 = vrot.lane.b32.xlu0 %v1952_v58, %s7559_s16 }
 0x1f4   : > { %2001 = vrot.lane.b32.xlu1 %v1955_v42, %s7559_s16 }
 0x1f5   : > { %1890 = vrot.lane.b32.xlu0 %v1845_v15, %s7557_s27 }
 0x1f8   : > { %1896 = vrot.lane.b32.xlu1 %v1848_v23, %s7557_s27 }
 0x1f9   : > { %1785 = vrot.lane.b32.xlu0 %v1738_v39, %s7556_s24 }
 0x1fc   : > { %1791 = vrot.lane.b32.xlu1 %v1741_v49, %s7556_s24  ;;  %v7302_v49 = vld [vmem:[%s9296_s3 + $0x20] sm:$0xff]  }
 0x1fd   : > { %2108 = vrot.lane.b32.xlu0 %v8088_v57, %s7558_s30  ;;  %v1740_v57 = vld [vmem:[#allocation3 + $0x76] sm:$0xff] }
 0x200   : > { %1997 = vrot.lane.b32.xlu1 %v1953_v12, %s7559_s16 }
 0x201   : > { %2104 = vrot.lane.b32.xlu0 %v8094_v40, %s7558_s30  ;;  %v1956_v40 = vld [vmem:[#allocation3 + $0x82] sm:$0xff] }
 0x204   : > { %1892 = vrot.lane.b32.xlu1 %v1846_v18, %s7557_s27 }
 0x205   : > { %1999 = vrot.lane.b32.xlu0 %v1954_v59, %s7559_s16 }
 0x208   : > { %1787 = vrot.lane.b32.xlu1 %v1739_v1, %s7556_s24  ;;  %v7303_v1 = vld [vmem:[%s9296_s3 + $0x28] sm:$0xff]  }
 0x209   : > { %1894 = vrot.lane.b32.xlu0 %v1847_v56, %s7557_s27 }
 0x20c   : > { %2114 = vrot.lane.b32.xlu1 %v1616_v20, %s7558_s30  ;;  %v1957_v20 = vld [vmem:[#allocation3 + $0x8a] sm:$0xff] }
 0x20d   : > { %1789 = vrot.lane.b32.xlu0 %v1740_v57, %s7556_s24 }
 0x210   : > { %2110 = vrot.lane.b32.xlu1 %v8137_v25, %s7558_s30 }
 0x211   : > { %2003 = vrot.lane.b32.xlu0 %v1956_v40, %s7559_s16  ;;  %v7304_v40 = vld [vmem:[%s9296_s3 + $0x30] sm:$0xff]  }
 0x214   : > { %2009 = vrot.lane.b32.xlu1 %v1959_v26, %s7559_s16 }
 0x215   : > { %1898 = vrot.lane.b32.xlu0 %v1849_v6, %s7557_s27 }
 0x218   : > { %1904 = vrot.lane.b32.xlu1 %v1852_v16, %s7557_s27  ;;  %v7305_v16 = vld [vmem:[%s9296_s3 + $0x38] sm:$0xff]  }
 0x219   : > { %1793 = vrot.lane.b32.xlu0 %v1742_v51, %s7556_s24 }
 0x21c   : > { %2005 = vrot.lane.b32.xlu1 %v1957_v20, %s7559_s16 }
 0x21d   : > { %2116 = vrot.lane.b32.xlu0 %v1662_v52, %s7558_s30  ;;  %v1958_v52 = vld [vmem:[#allocation3 + $0x92] sm:$0xff] }
 0x21e   : > { %v1768_v25 = vpop.permute.xlu1 %1767 }
 0x21f   : > { %1820 = vst.msk [vmem:[#allocation4 + $0x10] sm:$0xff] %vm1817_vm2, %v1768_v25  ;;  %v1764_v24 = vpop.permute.xlu0 %1763 }
 0x220   : > { %1818 = vst.msk [vmem:[#allocation4] sm:$0xff] %vm1817_vm2, %v1764_v24  ;;  %1900 = vrot.lane.b32.xlu1 %v1850_v3, %s7557_s27 }
 0x221   : > { %2112 = vrot.lane.b32.xlu0 %v1615_v9, %s7558_s30 }
 0x222   : > { %v1873_v62 = vpop.permute.xlu1 %1872 }
 0x223   : > { %1927 = vst.msk [vmem:[#allocation4] sm:$0xff] %vm1926_vm3, %v1873_v62  ;;  %v1766_v30 = vpop.permute.xlu0 %1765 }
 0x224   : > { %1819 = vst.msk [vmem:[#allocation4 + $0x8] sm:$0xff] %vm1817_vm2, %v1766_v30  ;;  %1795 = vrot.lane.b32.xlu1 %v1743_v50, %s7556_s24 }
 0x225   : > { %2007 = vrot.lane.b32.xlu0 %v1958_v52, %s7559_s16 }
 0x226   : > { %v2091_v35 = vpop.permute.xlu1 %2090 }
 0x227   : > { %v1875_v11 = vpop.permute.xlu0 %1874 }
 0x228   : > { %1928 = vst.msk [vmem:[#allocation4 + $0x8] sm:$0xff] %vm1926_vm3, %v1875_v11  ;;  %2118 = vrot.lane.b32.xlu1 %v1663_v2, %s7558_s30 }
 0x229   : > { %1902 = vrot.lane.b32.xlu0 %v1851_v55, %s7557_s27 }
 0x22a   : > { %v1881_v9 = vpop.permute.xlu1 %1880 }
 0x22b   : > { %v1770_v37 = vpop.permute.xlu0 %1769 }
 0x22c   : > { %1821 = vst.msk [vmem:[#allocation4 + $0x18] sm:$0xff] %vm1817_vm2, %v1770_v37  ;;  %2013 = vrot.lane.b32.xlu1 %v1961_v10, %s7559_s16 }
 0x22d   : > { %2011 = vrot.lane.b32.xlu0 %v1960_v13, %s7559_s16 }
 0x22e   : > { %v1776_v33 = vpop.permute.xlu1 %1775 }
 0x22f   : > { %1824 = vst.msk [vmem:[#allocation4 + $0x30] sm:$0xff] %vm1817_vm2, %v1776_v33  ;;  %v1986_v28 = vpop.permute.xlu0 %1985 }
 0x230   : > { %2122 = vrot.lane.b32.xlu1 %v1665_v34, %s7558_s30 }
 0x231   : > { %2120 = vrot.lane.b32.xlu0 %v1664_v32, %s7558_s30 }
 0x232   : > { %v1877_v41 = vpop.permute.xlu1 %1876 }
 0x233   : > { %1929 = vst.msk [vmem:[#allocation4 + $0x10] sm:$0xff] %vm1926_vm3, %v1877_v41  ;;  %v2093_v4 = vpop.permute.xlu0 %2092 }
 0x234   : > { %1906 = vrot.lane.b32.xlu1 %v1853_v29, %s7557_s27  ;;  %2038 = vst.msk [vmem:[#allocation4 + $0x10] sm:$0xff] %vm2035_vm4, %v1986_v28 }
 0x235   : > { %1797 = vrot.lane.b32.xlu0 %v1744_v44, %s7556_s24 }
 0x236   : > { %v1984_v60 = vpop.permute.xlu1 %1983 }
 0x237   : > { %2037 = vst.msk [vmem:[#allocation4 + $0x8] sm:$0xff] %vm2035_vm4, %v1984_v60  ;;  %v1982_v43 = vpop.permute.xlu0 %1981 }
 0x238   : > { %2146 = vst.msk [vmem:[#allocation4 + $0x8] sm:$0xff] %vm2144_vm5, %v2093_v4  ;;  %2124 = vrot.lane.b32.xlu1 %v1666_v17, %s7558_s30 }
 0x239   : > { %2036 = vst.msk [vmem:[#allocation4] sm:$0xff] %vm2035_vm4, %v1982_v43  ;;  %2015 = vrot.lane.b32.xlu0 %v1962_v61, %s7559_s16 }
 0x23a   : > { %2145 = vst.msk [vmem:[#allocation4] sm:$0xff] %vm2144_vm5, %v2091_v35  ;;  %v1772_v5 = vpop.permute.xlu1 %1771 }
 0x23b   : > { %1822 = vst.msk [vmem:[#allocation4 + $0x20] sm:$0xff] %vm1817_vm2, %v1772_v5  ;;  %v1879_v34 = vpop.permute.xlu0 %1878 }
 0x23c   : > { %1931 = vst.msk [vmem:[#allocation4 + $0x20] sm:$0xff] %vm1926_vm3, %v1881_v9  ;;  %1930 = vst.msk [vmem:[#allocation4 + $0x18] sm:$0xff] %vm1926_vm3, %v1879_v34 }
 0x23e   : > { %v2099_v31 = vpop.permute.xlu1 %2098 }
 0x23f   : > { %v1774_v48 = vpop.permute.xlu0 %1773 }
 0x240   : > { %1823 = vst.msk [vmem:[#allocation4 + $0x28] sm:$0xff] %vm1817_vm2, %v1774_v48 }
 0x241   : > { %v2206_v22 = vld [vmem:[#allocation4 + $0x1] sm:$0xff] }
 0x242   : > { %v2095_v2 = vpop.permute.xlu1 %2094 }
 0x243   : > { %2147 = vst.msk [vmem:[#allocation4 + $0x10] sm:$0xff] %vm2144_vm5, %v2095_v2  ;;  %v1988_v27 = vpop.permute.xlu0 %1987 }
 0x244   : > { %2039 = vst.msk [vmem:[#allocation4 + $0x18] sm:$0xff] %vm2035_vm4, %v1988_v27 }
 0x246   : > { %v1994_v38 = vpop.permute.xlu1 %1993 }
 0x247   : > { %v1883_v17 = vpop.permute.xlu0 %1882 }
 0x248   : > { %1932 = vst.msk [vmem:[#allocation4 + $0x28] sm:$0xff] %vm1926_vm3, %v1883_v17 }
 0x24a   : > { %v1889_v32 = vpop.permute.xlu1 %1888  ;;  %v2207_v14 = vld [vmem:[#allocation4 + $0x9] sm:$0xff] }
 0x24b   : > { %v1778_v46 = vpop.permute.xlu0 %1777  ;;  %v2224_v21 = vpack.c.bf16 %v2207_v14, %v2206_v22 }
 0x24c   : > { %1825 = vst.msk [vmem:[#allocation4 + $0x38] sm:$0xff] %vm1817_vm2, %v1778_v46 }
 0x24d   : > { %6770 = vmatmul.mubr.bf16.vlgmr.msra.gmra.mrb[0].mxu1 %v2224_v21 }
 0x24e   : > { %v1784_v47 = vpop.permute.xlu1 %1783  ;;  %6773 = vmatprep.mubr.msk.bf16.mxu1 %vm7560_vm1, %v9362_v45  ;;  %6806 = vmatpush3.bf16.msra.mxu1 %v7298_v19 }
 0x24f   : > { %1828 = vst.msk [vmem:[#allocation4 + $0x50] sm:$0xff] %vm1817_vm2, %v1784_v47  ;;  %v2101_v7 = vpop.permute.xlu0 %2100  ;;  %6807 = vmatprep.subr.bf16.mxu1 %v8318_v8 }
 0x252   : > { %v1990_v53 = vpop.permute.xlu1 %1989  ;;  %6808 = vmatpush3.bf16.msra.mxu1 %v7299_v54 }
 0x253   : > { %2040 = vst.msk [vmem:[#allocation4 + $0x20] sm:$0xff] %vm2035_vm4, %v1990_v53  ;;  %v2097_v45 = vpop.permute.xlu0 %2096  ;;  %6809 = vmatprep.subr.bf16.mxu1 %v8318_v8 }
 0x254   : > { %2149 = vst.msk [vmem:[#allocation4 + $0x20] sm:$0xff] %vm2144_vm5, %v2099_v31  ;;  %2148 = vst.msk [vmem:[#allocation4 + $0x18] sm:$0xff] %vm2144_vm5, %v2097_v45 }
 0x256   : > { %v1885_v36 = vpop.permute.xlu1 %1884  ;;  %6810 = vmatpush3.bf16.msra.mxu1 %v7300_v0 }
 0x257   : > { %1933 = vst.msk [vmem:[#allocation4 + $0x30] sm:$0xff] %vm1926_vm3, %v1885_v36  ;;  %v1992_v58 = vpop.permute.xlu0 %1991  ;;  %6811 = vmatprep.subr.bf16.mxu1 %v8318_v8 }
 0x258   : > { %2042 = vst.msk [vmem:[#allocation4 + $0x30] sm:$0xff] %vm2035_vm4, %v1994_v38  ;;  %2041 = vst.msk [vmem:[#allocation4 + $0x28] sm:$0xff] %vm2035_vm4, %v1992_v58 }
 0x259   : > { %2150 = vst.msk [vmem:[#allocation4 + $0x28] sm:$0xff] %vm2144_vm5, %v2101_v7 }
 0x25a   : > { %v1780_v42 = vpop.permute.xlu1 %1779  ;;  %6812 = vmatpush3.bf16.msra.mxu1 %v7301_v63 }
 0x25b   : > { %1826 = vst.msk [vmem:[#allocation4 + $0x40] sm:$0xff] %vm1817_vm2, %v1780_v42  ;;  %v1887_v15 = vpop.permute.xlu0 %1886  ;;  %v2208_v23 = vld [vmem:[#allocation4 + $0x11] sm:$0xff]  ;;  %v2209_v39 = vld [vmem:[#allocation4 + $0x19] sm:$0xff]  ;;  %6813 = vmatprep.subr.bf16.mxu1 %v8318_v8 }
 0x25c   : > { %1935 = vst.msk [vmem:[#allocation4 + $0x40] sm:$0xff] %vm1926_vm3, %v1889_v32  ;;  %1934 = vst.msk [vmem:[#allocation4 + $0x38] sm:$0xff] %vm1926_vm3, %v1887_v15  ;;  %v2225_v12 = vpack.c.bf16 %v2209_v39, %v2208_v23 }
 0x25e   : > { %6774 = vmatmul.mubr.bf16.gmra.mrb[4].mxu1 %v2225_v12  ;;  %v2107_v18 = vpop.permute.xlu1 %2106 }
 0x25f   : > { %v1782_v59 = vpop.permute.xlu0 %1781  ;;  %6777 = vmatprep.mubr.msk.bf16.mxu1 %vm7560_vm1, %v8318_v8  ;;  %6814 = vmatpush3.bf16.msra.mxu1 %v7302_v49 }
 0x260   : > { %1827 = vst.msk [vmem:[#allocation4 + $0x48] sm:$0xff] %vm1817_vm2, %v1782_v59  ;;  %6815 = vmatprep.subr.bf16.mxu1 %v8318_v8  ;;  %v2210_v20 = vld [vmem:[#allocation4 + $0x21] sm:$0xff] }
 0x261   : > { %v2163_v59 = vld [vmem:[#allocation4] sm:$0xff] }
 0x262   : > { %v2103_v56 = vpop.permute.xlu1 %2102 }
 0x263   : > { %2151 = vst.msk [vmem:[#allocation4 + $0x30] sm:$0xff] %vm2144_vm5, %v2103_v56  ;;  %v1996_v57 = vpop.permute.xlu0 %1995  ;;  %6816 = vmatpush3.bf16.msra.mxu1 %v7303_v1  ;;  %v2164_v1 = vld [vmem:[#allocation4 + $0x8] sm:$0xff]  ;;  %v7306_v56 = vld [vmem:[%s9296_s3 + $0x80] sm:$0xff]  }
 0x264   : > { %2043 = vst.msk [vmem:[#allocation4 + $0x38] sm:$0xff] %vm2035_vm4, %v1996_v57  ;;  %6817 = vmatprep.subr.bf16.mxu1 %v8318_v8  ;;  %v2181_v57 = vpack.c.bf16 %v2164_v1, %v2163_v59 }
 0x266   : > { %v2002_v26 = vpop.permute.xlu1 %2001 }
 0x267   : > { %v1891_v6 = vpop.permute.xlu0 %1890  ;;  %6818 = vmatpush3.bf16.msra.mxu1 %v7304_v40  ;;  %v7307_v40 = vld [vmem:[%s9296_s3 + $0x88] sm:$0xff]  }
 0x268   : > { %1936 = vst.msk [vmem:[#allocation4 + $0x48] sm:$0xff] %vm1926_vm3, %v1891_v6  ;;  %6819 = vmatprep.subr.bf16.mxu1 %v8318_v8  ;;  %v2165_v6 = vld [vmem:[#allocation4 + $0x10] sm:$0xff] }
 0x26a   : > { %v1897_v51 = vpop.permute.xlu1 %1896  ;;  %v2211_v25 = vld [vmem:[#allocation4 + $0x29] sm:$0xff] }
 0x26b   : > { %v1786_v24 = vpop.permute.xlu0 %1785  ;;  %v2226_v3 = vpack.c.bf16 %v2211_v25, %v2210_v20  ;;  %6820 = vmatpush3.bf16.msra.mxu1 %v7305_v16  ;;  %v7308_v16 = vld [vmem:[%s9296_s3 + $0x90] sm:$0xff]   ;;  %v7309_v20 = vld [vmem:[%s9296_s3 + $0x98] sm:$0xff]  }
 0x26c   : > { %1829 = vst.msk [vmem:[#allocation4 + $0x58] sm:$0xff] %vm1817_vm2, %v1786_v24  ;;  %6857 = vmatprep.subr.bf16.mxu1 %v8318_v8  ;;  %v2168_v25 = vld [vmem:[#allocation4 + $0x28] sm:$0xff]  ;;  %v2167_v24 = vld [vmem:[#allocation4 + $0x20] sm:$0xff] }
 0x26d   : > { %6778 = vmatmul.mubr.bf16.gmra.mrb[8].mxu1 %v2226_v3  ;;  %v7310_v3 = vld [vmem:[%s9296_s3 + $0xa0] sm:$0xff]  }
 0x26e   : > { %v1792_v62 = vpop.permute.xlu1 %1791  ;;  %6781 = vmatprep.mubr.msk.bf16.mxu1 %vm7560_vm1, %v8318_v8 }
 0x26f   : > { %1832 = vst.msk [vmem:[#allocation4 + $0x70] sm:$0xff] %vm1817_vm2, %v1792_v62  ;;  %v2109_v30 = vpop.permute.xlu0 %2108  ;;  %v2183_v62 = vpack.c.bf16 %v2168_v25, %v2167_v24  ;;  %v2771_v25 = vld [vmem:[#allocation4 + $0x3] sm:$0xff]  ;;  %v7322_v24 = vld [vmem:[%s9296_s3 + $0x100] sm:$0xff]  }
 0x272   : > { %v1998_v50 = vpop.permute.xlu1 %1997 }
 0x273   : > { %2044 = vst.msk [vmem:[#allocation4 + $0x40] sm:$0xff] %vm2035_vm4, %v1998_v50  ;;  %v2105_v52 = vpop.permute.xlu0 %2104 }
 0x274   : > { %2153 = vst.msk [vmem:[#allocation4 + $0x40] sm:$0xff] %vm2144_vm5, %v2107_v18  ;;  %2152 = vst.msk [vmem:[#allocation4 + $0x38] sm:$0xff] %vm2144_vm5, %v2105_v52  ;;  %v2169_v52 = vld [vmem:[#allocation4 + $0x30] sm:$0xff] }
 0x276   : > { %v1893_v35 = vpop.permute.xlu1 %1892 }
 0x277   : > { %1937 = vst.msk [vmem:[#allocation4 + $0x50] sm:$0xff] %vm1926_vm3, %v1893_v35  ;;  %v2000_v11 = vpop.permute.xlu0 %1999  ;;  %v7312_v35 = vld [vmem:[%s9296_s3 + $0xb0] sm:$0xff]  }
 0x278   : > { %2046 = vst.msk [vmem:[#allocation4 + $0x50] sm:$0xff] %vm2035_vm4, %v2002_v26  ;;  %2045 = vst.msk [vmem:[#allocation4 + $0x48] sm:$0xff] %vm2035_vm4, %v2000_v11  ;;  %v2166_v26 = vld [vmem:[#allocation4 + $0x18] sm:$0xff] }
 0x279   : > { %2154 = vst.msk [vmem:[#allocation4 + $0x48] sm:$0xff] %vm2144_vm5, %v2109_v30  ;;  %v7311_v30 = vld [vmem:[%s9296_s3 + $0xa8] sm:$0xff]  }
 0x27a   : > { %v1788_v55 = vpop.permute.xlu1 %1787 }
 0x27b   : > { %1830 = vst.msk [vmem:[#allocation4 + $0x60] sm:$0xff] %vm1817_vm2, %v1788_v55  ;;  %v1895_v9 = vpop.permute.xlu0 %1894  ;;  %v2212_v37 = vld [vmem:[#allocation4 + $0x31] sm:$0xff]  ;;  %v2213_v10 = vld [vmem:[#allocation4 + $0x39] sm:$0xff] }
 0x27c   : > { %1939 = vst.msk [vmem:[#allocation4 + $0x60] sm:$0xff] %vm1926_vm3, %v1897_v51  ;;  %1938 = vst.msk [vmem:[#allocation4 + $0x58] sm:$0xff] %vm1926_vm3, %v1895_v9  ;;  %v2227_v13 = vpack.c.bf16 %v2213_v10, %v2212_v37  ;;  %v2182_v51 = vpack.c.bf16 %v2166_v26, %v2165_v6  ;;  %v2170_v50 = vld [vmem:[#allocation4 + $0x38] sm:$0xff]  ;;  %v7313_v55 = vld [vmem:[%s9296_s3 + $0xb8] sm:$0xff]  }
 0x27d   : > { %v2184_v11 = vpack.c.bf16 %v2170_v50, %v2169_v52  ;;  %v2171_v37 = vld [vmem:[#allocation4 + $0x40] sm:$0xff]  ;;  %v7324_v52 = vld [vmem:[%s9296_s3 + $0x110] sm:$0xff]  }
 0x27e   : > { %6782 = vmatmul.mubr.bf16.gmra.mrb[12].mxu1 %v2227_v13  ;;  %v2115_v33 = vpop.permute.xlu1 %2114  ;;  %v2774_v50 = vld [vmem:[#allocation4 + $0x1b] sm:$0xff] }
 0x27f   : > { %v1790_v28 = vpop.permute.xlu0 %1789  ;;  %6785 = vmatprep.mubr.msk.bf16.mxu1 %vm7560_vm1, %v8318_v8 }
 0x280   : > { %1831 = vst.msk [vmem:[#allocation4 + $0x68] sm:$0xff] %vm1817_vm2, %v1790_v28  ;;  %v2214_v43 = vld [vmem:[#allocation4 + $0x41] sm:$0xff] }
 0x281   : > { %v2172_v9 = vld [vmem:[#allocation4 + $0x48] sm:$0xff] }
 0x282   : > { %v2111_v41 = vpop.permute.xlu1 %2110  ;;  %v2185_v10 = vpack.c.bf16 %v2172_v9, %v2171_v37  ;;  %v7334_v9 = vld [vmem:[%s9298_s5 + $0x50] sm:$0xff]   ;;  %v7325_v37 = vld [vmem:[%s9296_s3 + $0x118] sm:$0xff]  }
 0x283   : > { %2155 = vst.msk [vmem:[#allocation4 + $0x50] sm:$0xff] %vm2144_vm5, %v2111_v41  ;;  %v2004_v4 = vpop.permute.xlu0 %2003 }
 0x284   : > { %2047 = vst.msk [vmem:[#allocation4 + $0x58] sm:$0xff] %vm2035_vm4, %v2004_v4 }
 0x286   : > { %v2010_v29 = vpop.permute.xlu1 %2009 }
 0x287   : > { %v1899_v44 = vpop.permute.xlu0 %1898 }
 0x288   : > { %1940 = vst.msk [vmem:[#allocation4 + $0x68] sm:$0xff] %vm1926_vm3, %v1899_v44 }
 0x28a   : > { %v1905_v60 = vpop.permute.xlu1 %1904  ;;  %v2215_v61 = vld [vmem:[#allocation4 + $0x49] sm:$0xff] }
 0x28b   : > { %v1794_v5 = vpop.permute.xlu0 %1793  ;;  %v2228_v34 = vpack.c.bf16 %v2215_v61, %v2214_v43 }
 0x28c   : > { %1833 = vst.msk [vmem:[#allocation4 + $0x78] sm:$0xff] %vm1817_vm2, %v1794_v5 }
 0x28d   : > { %6786 = vmatmul.mubr.bf16.gmra.mrb[16].mxu1 %v2228_v34 }
 0x28e   : > { %v2006_v31 = vpop.permute.xlu1 %2005  ;;  %6789 = vmatprep.mubr.msk.bf16.mxu1 %vm7560_vm1, %v8318_v8 }
 0x28f   : > { %2048 = vst.msk [vmem:[#allocation4 + $0x60] sm:$0xff] %vm2035_vm4, %v2006_v31  ;;  %v2117_v48 = vpop.permute.xlu0 %2116  ;;  %v2557_v31 = vld [vmem:[#allocation4 + $0xa] sm:$0xff] }
 0x290   : > { %2157 = vst.msk [vmem:[#allocation4 + $0x60] sm:$0xff] %vm2144_vm5, %v2115_v33  ;;  %v2173_v33 = vld [vmem:[#allocation4 + $0x50] sm:$0xff] }
 0x292   : > { %v1901_v2 = vpop.permute.xlu1 %1900 }
 0x293   : > { %1941 = vst.msk [vmem:[#allocation4 + $0x70] sm:$0xff] %vm1926_vm3, %v1901_v2  ;;  %v2113_v27 = vpop.permute.xlu0 %2112  ;;  %v7314_v2 = vld [vmem:[%s9296_s3 + $0xc0] sm:$0xff]  }
 0x294   : > { %2050 = vst.msk [vmem:[#allocation4 + $0x70] sm:$0xff] %vm2035_vm4, %v2010_v29 }
 0x295   : > { %2156 = vst.msk [vmem:[#allocation4 + $0x58] sm:$0xff] %vm2144_vm5, %v2113_v27 }
 0x296   : > { %v1796_v38 = vpop.permute.xlu1 %1795 }
 0x297   : > { %1834 = vst.msk [vmem:[#allocation4 + $0x80] sm:$0xff] %vm1817_vm2, %v1796_v38  ;;  %v2008_v17 = vpop.permute.xlu0 %2007  ;;  %v2175_v4 = vld [vmem:[#allocation4 + $0x60] sm:$0xff] }
 0x298   : > { %1943 = vst.msk [vmem:[#allocation4 + $0x80] sm:$0xff] %vm1926_vm3, %v1905_v60  ;;  %v7315_v38 = vld [vmem:[%s9296_s3 + $0xc8] sm:$0xff]  }
 0x299   : > { %2049 = vst.msk [vmem:[#allocation4 + $0x68] sm:$0xff] %vm2035_vm4, %v2008_v17  ;;  %v2558_v17 = vld [vmem:[#allocation4 + $0x12] sm:$0xff] }
 0x29a   : > { %2158 = vst.msk [vmem:[#allocation4 + $0x68] sm:$0xff] %vm2144_vm5, %v2117_v48  ;;  %v2119_v32 = vpop.permute.xlu1 %2118  ;;  %v2556_v48 = vld [vmem:[#allocation4 + $0x2] sm:$0xff] }
 0x29b   : > { %2159 = vst.msk [vmem:[#allocation4 + $0x70] sm:$0xff] %vm2144_vm5, %v2119_v32  ;;  %v1903_v22 = vpop.permute.xlu0 %1902  ;;  %v2574_v27 = vpack.c.bf16 %v2557_v31, %v2556_v48  ;;  %v2559_v32 = vld [vmem:[#allocation4 + $0x1a] sm:$0xff]  ;;  %v7328_v31 = vld [vmem:[%s9296_s3 + $0x130] sm:$0xff]  }
 0x29c   : > { %v2216_v14 = vld [vmem:[#allocation4 + $0x51] sm:$0xff]  ;;  %v2217_v19 = vld [vmem:[#allocation4 + $0x59] sm:$0xff]  ;;  %1942 = vst.msk [vmem:[#allocation4 + $0x78] sm:$0xff] %vm1926_vm3, %v1903_v22  ;;  %v7316_v22 = vld [vmem:[%s9296_s3 + $0xd0] sm:$0xff]  }
 0x29d   : > { %v2229_v46 = vpack.c.bf16 %v2217_v19, %v2216_v14  ;;  %v2174_v13 = vld [vmem:[#allocation4 + $0x58] sm:$0xff]  ;;  %v2575_v14 = vpack.c.bf16 %v2559_v32, %v2558_v17  ;;  %v7317_v19 = vld [vmem:[%s9296_s3 + $0xd8] sm:$0xff]   ;;  %v7343_v32 = vld [vmem:[%s9298_s5 + $0x30] sm:$0xff]  }
 0x29e   : > { %v2014_v21 = vpop.permute.xlu1 %2013  ;;  %v2186_v28 = vpack.c.bf16 %v2174_v13, %v2173_v33  ;;  %v7335_v13 = vld [vmem:[%s9298_s5 + $0x10] sm:$0xff]   ;;  %v7336_v33 = vld [vmem:[%s9298_s5 + $0x58] sm:$0xff]  }
 0x29f   : > { %6790 = vmatmul.mubr.bf16.gmra.mrb[20].mxu1 %v2229_v46  ;;  %2052 = vst.msk [vmem:[#allocation4 + $0x80] sm:$0xff] %vm2035_vm4, %v2014_v21  ;;  %v2012_v47 = vpop.permute.xlu0 %2011  ;;  %v2561_v46 = vld [vmem:[#allocation4 + $0x2a] sm:$0xff]  ;;  %v2560_v21 = vld [vmem:[#allocation4 + $0x22] sm:$0xff] }
 0x2a0   : > { %6793 = vmatprep.mubr.msk.bf16.mxu1 %vm7560_vm1, %v8318_v8  ;;  %2051 = vst.msk [vmem:[#allocation4 + $0x78] sm:$0xff] %vm2035_vm4, %v2012_v47  ;;  %v7318_v47 = vld [vmem:[%s9296_s3 + $0xe0] sm:$0xff]   ;;  %v2780_v17 = vld [vmem:[#allocation4 + $0x4b] sm:$0xff] }
 0x2a1   : > { %v2218_v7 = vld [vmem:[#allocation4 + $0x61] sm:$0xff] }
 0x2a2   : > { %v2123_v54 = vpop.permute.xlu1 %2122  ;;  %v2219_v53 = vld [vmem:[#allocation4 + $0x69] sm:$0xff] }
 0x2a3   : > { %2161 = vst.msk [vmem:[#allocation4 + $0x80] sm:$0xff] %vm2144_vm5, %v2123_v54  ;;  %v2121_v0 = vpop.permute.xlu0 %2120  ;;  %v2230_v45 = vpack.c.bf16 %v2219_v53, %v2218_v7  ;;  %v2176_v41 = vld [vmem:[#allocation4 + $0x68] sm:$0xff]  ;;  %v2177_v60 = vld [vmem:[#allocation4 + $0x70] sm:$0xff]  ;;  %v2576_v54 = vpack.c.bf16 %v2561_v46, %v2560_v21  ;;  %v7319_v7 = vld [vmem:[%s9296_s3 + $0xe8] sm:$0xff]  }
 0x2a4   : > { %2160 = vst.msk [vmem:[#allocation4 + $0x78] sm:$0xff] %vm2144_vm5, %v2121_v0  ;;  %v2187_v29 = vpack.c.bf16 %v2176_v41, %v2175_v4  ;;  %v2562_v53 = vld [vmem:[#allocation4 + $0x32] sm:$0xff]  ;;  %v2563_v0 = vld [vmem:[#allocation4 + $0x3a] sm:$0xff] }
 0x2a5   : > { %v7326_v41 = vld [vmem:[%s9296_s3 + $0x120] sm:$0xff]  }
 0x2a6   : > { %v1907_v36 = vpop.permute.xlu1 %1906  ;;  %v2782_v46 = vld [vmem:[#allocation4 + $0x5b] sm:$0xff] }
 0x2a7   : > { %6794 = vmatmul.mubr.bf16.gmra.mrb[24].mxu1 %v2230_v45  ;;  %v1798_v63 = vpop.permute.xlu0 %1797  ;;  %v7320_v45 = vld [vmem:[%s9296_s3 + $0xf0] sm:$0xff]  }
 0x2a8   : > { %6797 = vmatprep.mubr.msk.bf16.mxu1 %vm7560_vm1, %v8318_v8  ;;  %1835 = vst.msk [vmem:[#allocation4 + $0x88] sm:$0xff] %vm1817_vm2, %v1798_v63  ;;  %v7321_v63 = vld [vmem:[%s9296_s3 + $0xf8] sm:$0xff]  }
 0x2a9   : > { %1944 = vst.msk [vmem:[#allocation4 + $0x88] sm:$0xff] %vm1926_vm3, %v1907_v36  ;;  %v2577_v36 = vpack.c.bf16 %v2563_v0, %v2562_v53 }
 0x2aa   : > { %v2125_v23 = vpop.permute.xlu1 %2124  ;;  %v2179_v5 = vld [vmem:[#allocation4 + $0x80] sm:$0xff] }
 0x2ab   : > { %v2016_v58 = vpop.permute.xlu0 %2015  ;;  %v2220_v42 = vld [vmem:[#allocation4 + $0x71] sm:$0xff]  ;;  %v2221_v15 = vld [vmem:[#allocation4 + $0x79] sm:$0xff] }
 0x2ac   : > { %2053 = vst.msk [vmem:[#allocation4 + $0x88] sm:$0xff] %vm2035_vm4, %v2016_v58  ;;  %v2231_v39 = vpack.c.bf16 %v2221_v15, %v2220_v42  ;;  %v2178_v44 = vld [vmem:[#allocation4 + $0x78] sm:$0xff]  ;;  %v2565_v58 = vld [vmem:[#allocation4 + $0x4a] sm:$0xff]  ;;  %v2564_v42 = vld [vmem:[#allocation4 + $0x42] sm:$0xff] }
 0x2ad   : > { %2162 = vst.msk [vmem:[#allocation4 + $0x88] sm:$0xff] %vm2144_vm5, %v2125_v23  ;;  %v2188_v43 = vpack.c.bf16 %v2178_v44, %v2177_v60  ;;  %v2578_v15 = vpack.c.bf16 %v2565_v58, %v2564_v42  ;;  %v2566_v23 = vld [vmem:[#allocation4 + $0x52] sm:$0xff]  ;;  %v7327_v60 = vld [vmem:[%s9296_s3 + $0x128] sm:$0xff]  }
 0x2ae   : > { %v2570_v1 = vld [vmem:[#allocation4 + $0x72] sm:$0xff]  ;;  %v2786_v0 = vld [vmem:[#allocation4 + $0x7b] sm:$0xff] }
 0x2af   : > { %6798 = vmatmul.mubr.bf16.gmra.mrb[28].mxu1 %v2231_v39  ;;  %v2567_v39 = vld [vmem:[#allocation4 + $0x5a] sm:$0xff]  ;;  %v2987_v42 = vld [vmem:[#allocation4 + $0xc] sm:$0xff] }
 0x2b0   : > { %6801 = vmatprep.mubr.msk.bf16.mxu1 %vm7560_vm1, %v8318_v8  ;;  %v7338_v44 = vld [vmem:[%s9298_s5 + $0x60] sm:$0xff]  }
 0x2b1   : > { %v2785_v53 = vld [vmem:[#allocation4 + $0x73] sm:$0xff] }
 0x2b4   : > { %v2222_v49 = vld [vmem:[#allocation4 + $0x81] sm:$0xff]  ;;  %v2223_v12 = vld [vmem:[#allocation4 + $0x89] sm:$0xf] }
 0x2b5   : > { %v2232_v18 = vpack.c.bf16 %v2223_v12, %v2222_v49  ;;  %v2180_v61 = vld [vmem:[#allocation4 + $0x88] sm:$0xf]  ;;  %v2579_v49 = vpack.c.bf16 %v2567_v39, %v2566_v23  ;;  %v2988_v39 = vld [vmem:[#allocation4 + $0x14] sm:$0xff] }
 0x2b6   : > { %v2189_v34 = vpack.c.bf16 %v2180_v61, %v2179_v5  ;;  %v2569_v12 = vld [vmem:[#allocation4 + $0x6a] sm:$0xff]  ;;  %v2778_v61 = vld [vmem:[#allocation4 + $0x3b] sm:$0xff] }
 0x2b7   : > { %6802 = vmatmul.mubr.bf16.gmra.mrb[32].mxu1 %v2232_v18  ;;  %v2568_v18 = vld [vmem:[#allocation4 + $0x62] sm:$0xff]  ;;  %v2573_v26 = vld [vmem:[#allocation4 + $0x8a] sm:$0xf]  ;;  %v7339_v5 = vld [vmem:[%s9298_s5 + $0x20] sm:$0xff]  }
 0x2b8   : > { %6821 = vmatprep.mubr.msk.bf16.mxu1 %vm7560_vm1, %v8318_v8  ;;  %v2580_v59 = vpack.c.bf16 %v2569_v12, %v2568_v18  ;;  %v2991_v18 = vld [vmem:[#allocation4 + $0x2c] sm:$0xff] }
 0x2bf   : > { %6822 = vmatmul.mubr.bf16.vlgmr.msra.gmra.mrb[0].mxu1 %v2181_v57 }
 0x2c0   : > { %6858 = vmatpush3.bf16.msra.mxu1 %v7306_v56  ;;  %6825 = vmatprep.mubr.msk.bf16.mxu1 %vm7560_vm1, %v8318_v8  ;;  %v2571_v56 = vld [vmem:[#allocation4 + $0x7a] sm:$0xff] }
 0x2c1   : > { %6859 = vmatprep.subr.bf16.mxu1 %v8318_v8  ;;  %v2581_v57 = vpack.c.bf16 %v2571_v56, %v2570_v1  ;;  %v2992_v56 = vld [vmem:[#allocation4 + $0x34] sm:$0xff] }
 0x2c4   : > { %6860 = vmatpush3.bf16.msra.mxu1 %v7307_v40  ;;  %v2572_v40 = vld [vmem:[#allocation4 + $0x82] sm:$0xff] }
 0x2c5   : > { %6861 = vmatprep.subr.bf16.mxu1 %v8318_v8  ;;  %v2582_v6 = vpack.c.bf16 %v2573_v26, %v2572_v40  ;;  %v2995_v26 = vld [vmem:[#allocation4 + $0x4c] sm:$0xff] }
 0x2c7   : > { %6826 = vmatmul.mubr.bf16.gmra.mrb[4].mxu1 %v2182_v51  ;;  %v7331_v51 = vld [vmem:[%s9298_s5] sm:$0xff]  }
 0x2c8   : > { %6829 = vmatprep.mubr.msk.bf16.mxu1 %vm7560_vm1, %v8318_v8  ;;  %6862 = vmatpush3.bf16.msra.mxu1 %v7308_v16  ;;  %v7330_v16 = vld [vmem:[%s9298_s5 + $0x40] sm:$0xff]  }
 0x2c9   : > { %6863 = vmatprep.subr.bf16.mxu1 %v8318_v8  ;;  %6346 = vmatprep.subr.bf16.mxu0 %v7330_v16 }
 0x2ca   : > { %6347 = vmatpush3.bf16.msra.mxu0 %v7331_v51  ;;  %v2996_v51 = vld [vmem:[#allocation4 + $0x54] sm:$0xff] }
 0x2cc   : > { %6864 = vmatpush3.bf16.msra.mxu1 %v7309_v20  ;;  %v2772_v20 = vld [vmem:[#allocation4 + $0xb] sm:$0xff] }
 0x2cd   : > { %6865 = vmatprep.subr.bf16.mxu1 %v8318_v8 }
 0x2cf   : > { %6830 = vmatmul.mubr.bf16.gmra.mrb[8].mxu1 %v2183_v62  ;;  %v7323_v62 = vld [vmem:[%s9296_s3 + $0x108] sm:$0xff]  }
 0x2d0   : > { %6833 = vmatprep.mubr.msk.bf16.mxu1 %vm7560_vm1, %v8318_v8  ;;  %6866 = vmatpush3.bf16.msra.mxu1 %v7310_v3  ;;  %v2789_v3 = vpack.c.bf16 %v2772_v20, %v2771_v25  ;;  %v2997_v20 = vld [vmem:[#allocation4 + $0x5c] sm:$0xff] }
 0x2d1   : > { %6867 = vmatprep.subr.bf16.mxu1 %v8318_v8  ;;  %v3009_v25 = vpack.c.bf16 %v2997_v20, %v2996_v51 }
 0x2d4   : > { %6868 = vmatpush3.bf16.msra.mxu1 %v7311_v30  ;;  %v2773_v30 = vld [vmem:[#allocation4 + $0x13] sm:$0xff] }
 0x2d5   : > { %6869 = vmatprep.subr.bf16.mxu1 %v8318_v8 }
 0x2d7   : > { %6834 = vmatmul.mubr.bf16.gmra.mrb[12].mxu1 %v2184_v11  ;;  %v7332_v11 = vld [vmem:[%s9298_s5 + $0x48] sm:$0xff]  }
 0x2d8   : > { %6837 = vmatprep.mubr.msk.bf16.mxu1 %vm7560_vm1, %v8318_v8  ;;  %6870 = vmatpush3.bf16.msra.mxu1 %v7312_v35  ;;  %v2790_v35 = vpack.c.bf16 %v2774_v50, %v2773_v30  ;;  %v3000_v30 = vld [vmem:[#allocation4 + $0x74] sm:$0xff]  ;;  %v3001_v50 = vld [vmem:[#allocation4 + $0x7c] sm:$0xff] }
 0x2d9   : > { %6871 = vmatprep.subr.bf16.mxu1 %v8318_v8  ;;  %6348 = vmatprep.subr.bf16.mxu0 %v7332_v11  ;;  %v3003_v11 = vld [vmem:[#allocation4 + $0x8c] sm:$0xf] }
 0x2dc   : > { %6872 = vmatpush3.bf16.msra.mxu1 %v7313_v55  ;;  %v7333_v55 = vld [vmem:[%s9298_s5 + $0x8] sm:$0xff]  }
 0x2dd   : > { %6909 = vmatprep.subr.bf16.mxu1 %v8318_v8  ;;  %6349 = vmatpush3.bf16.msra.mxu0 %v7333_v55 }
 0x2de   : > { %6350 = vmatprep.subr.bf16.mxu0 %v7334_v9  ;;  %v7344_v9 = vld [vmem:[%s9298_s5 + $0x78] sm:$0xff]  }
 0x2df   : > { %6838 = vmatmul.mubr.bf16.gmra.mrb[16].mxu1 %v2185_v10  ;;  %v2776_v10 = vld [vmem:[#allocation4 + $0x2b] sm:$0xff] }
 0x2e0   : > { %6841 = vmatprep.mubr.msk.bf16.mxu1 %vm7560_vm1, %v8318_v8 }
 0x2e1   : > { %6351 = vmatpush3.bf16.msra.mxu0 %v7335_v13  ;;  %v7347_v13 = vld [vmem:[%s9298_s5 + $0x300] sm:$0xff]  }
 0x2e2   : > { %6352 = vmatprep.subr.bf16.mxu0 %v7336_v33  ;;  %v7348_v33 = vld [vmem:[%s9298_s5 + $0x348] sm:$0xff]  }
 0x2e7   : > { %6842 = vmatmul.mubr.bf16.gmra.mrb[20].mxu1 %v2186_v28  ;;  %v2775_v28 = vld [vmem:[#allocation4 + $0x23] sm:$0xff] }
 0x2e8   : > { %6845 = vmatprep.mubr.msk.bf16.mxu1 %vm7560_vm1, %v8318_v8  ;;  %v2791_v4 = vpack.c.bf16 %v2776_v10, %v2775_v28  ;;  %v7346_v10 = vld [vmem:[%s9298_s5 + $0x340] sm:$0xff]   ;;  %v7349_v28 = vld [vmem:[%s9298_s5 + $0x308] sm:$0xff]  }
 0x2ef   : > { %6846 = vmatmul.mubr.bf16.gmra.mrb[24].mxu1 %v2187_v29  ;;  %v7337_v29 = vld [vmem:[%s9298_s5 + $0x18] sm:$0xff]  }
 0x2f0   : > { %6849 = vmatprep.mubr.msk.bf16.mxu1 %vm7560_vm1, %v8318_v8  ;;  %6353 = vmatpush3.bf16.msra.mxu0 %v7337_v29  ;;  %v7353_v29 = vld [vmem:[%s9298_s5 + $0x310] sm:$0xff]  }
 0x2f1   : > { %6354 = vmatprep.subr.bf16.mxu0 %v7338_v44  ;;  %v7356_v44 = vld [vmem:[%s9298_s5 + $0x358] sm:$0xff]  }
 0x2f4   : > { %6355 = vmatpush3.bf16.msra.mxu0 %v7339_v5  ;;  %v7364_v5 = vld [vmem:[%s9298_s5 + $0x368] sm:$0xff]  }
 0x2f7   : > { %6850 = vmatmul.mubr.bf16.gmra.mrb[28].mxu1 %v2188_v43  ;;  %v2777_v43 = vld [vmem:[#allocation4 + $0x33] sm:$0xff] }
 0x2f8   : > { %6853 = vmatprep.mubr.msk.bf16.mxu1 %vm7560_vm1, %v8318_v8  ;;  %v2792_v48 = vpack.c.bf16 %v2778_v61, %v2777_v43  ;;  %v7360_v43 = vld [vmem:[%s9298_s5 + $0x360] sm:$0xff]  }
 0x2f9   : > { %v7361_v61 = vld [vmem:[%s9298_s5 + $0x320] sm:$0xff]  }
 0x2ff   : > { %6854 = vmatmul.mubr.bf16.gmra.mrb[32].mxu1 %v2189_v34  ;;  %v7340_v34 = vld [vmem:[%s9298_s5 + $0x68] sm:$0xff]  }
 0x300   : > { %6873 = vmatprep.mubr.msk.bf16.mxu1 %vm7560_vm1, %v8318_v8  ;;  %6356 = vmatprep.subr.bf16.mxu0 %v7340_v34  ;;  %v7365_v34 = vld [vmem:[%s9298_s5 + $0x328] sm:$0xff]  }
 0x307   : > { %6874 = vmatmul.mubr.bf16.vlgmr.msra.gmra.mrb[0].mxu1 %v2574_v27  ;;  %v7342_v27 = vld [vmem:[%s9298_s5 + $0x70] sm:$0xff]  }
 0x308   : > { %6910 = vmatpush3.bf16.msra.mxu1 %v7314_v2  ;;  %6877 = vmatprep.mubr.msk.bf16.mxu1 %vm7560_vm1, %v8318_v8  ;;  %v7341_v2 = vld [vmem:[%s9298_s5 + $0x28] sm:$0xff]  }
 0x309   : > { %6911 = vmatprep.subr.bf16.mxu1 %v8318_v8  ;;  %6357 = vmatpush3.bf16.msra.mxu0 %v7341_v2  ;;  %v7372_v2 = vld [vmem:[%s9298_s5 + $0x378] sm:$0xff]  }
 0x30a   : > { %6358 = vmatprep.subr.bf16.mxu0 %v7342_v27  ;;  %v7373_v27 = vld [vmem:[%s9298_s5 + $0x338] sm:$0xff]  }
 0x30c   : > { %6912 = vmatpush3.bf16.msra.mxu1 %v7315_v38  ;;  %v7329_v38 = vld [vmem:[%s9296_s3 + $0x138] sm:$0xff]  }
 0x30d   : > { %6913 = vmatprep.subr.bf16.mxu1 %v8318_v8  ;;  %6359 = vmatpush3.bf16.msra.mxu0 %v7343_v32 }
 0x30e   : > { %6360 = vmatprep.subr.bf16.mxu0 %v7344_v9 }
 0x30f   : > { %6878 = vmatmul.mubr.bf16.gmra.mrb[4].mxu1 %v2575_v14 }
 0x310   : > { %6881 = vmatprep.mubr.msk.bf16.mxu1 %vm7560_vm1, %v8318_v8  ;;  %6914 = vmatpush3.bf16.msra.mxu1 %v7316_v22  ;;  %v2779_v22 = vld [vmem:[#allocation4 + $0x43] sm:$0xff] }
 0x311   : > { %6915 = vmatprep.subr.bf16.mxu1 %v8318_v8  ;;  %v2793_v14 = vpack.c.bf16 %v2780_v17, %v2779_v22 }
 0x314   : > { %6916 = vmatpush3.bf16.msra.mxu1 %v7317_v19  ;;  %v2781_v19 = vld [vmem:[#allocation4 + $0x53] sm:$0xff] }
 0x315   : > { %6917 = vmatprep.subr.bf16.mxu1 %v8318_v8  ;;  %v2794_v21 = vpack.c.bf16 %v2782_v46, %v2781_v19 }
 0x317   : > { %6882 = vmatmul.mubr.bf16.gmra.mrb[8].mxu1 %v2576_v54  ;;  %v2783_v54 = vld [vmem:[#allocation4 + $0x63] sm:$0xff] }
 0x318   : > { %6885 = vmatprep.mubr.msk.bf16.mxu1 %vm7560_vm1, %v8318_v8  ;;  %6918 = vmatpush3.bf16.msra.mxu1 %v7318_v47  ;;  %v2784_v47 = vld [vmem:[#allocation4 + $0x6b] sm:$0xff] }
 0x319   : > { %6919 = vmatprep.subr.bf16.mxu1 %v8318_v8 }
 0x31c   : > { %6920 = vmatpush3.bf16.msra.mxu1 %v7319_v7  ;;  %v2795_v7 = vpack.c.bf16 %v2784_v47, %v2783_v54 }
 0x31d   : > { %6921 = vmatprep.subr.bf16.mxu1 %v8318_v8 }
 0x31f   : > { %6886 = vmatmul.mubr.bf16.gmra.mrb[12].mxu1 %v2577_v36  ;;  %v2787_v36 = vld [vmem:[#allocation4 + $0x83] sm:$0xff] }
 0x320   : > { %6889 = vmatprep.mubr.msk.bf16.mxu1 %vm7560_vm1, %v8318_v8  ;;  %6922 = vmatpush3.bf16.msra.mxu1 %v7320_v45  ;;  %v2796_v45 = vpack.c.bf16 %v2786_v0, %v2785_v53 }
 0x321   : > { %6923 = vmatprep.subr.bf16.mxu1 %v8318_v8 }
 0x324   : > { %6924 = vmatpush3.bf16.msra.mxu1 %v7321_v63  ;;  %v2788_v63 = vld [vmem:[#allocation4 + $0x8b] sm:$0xf] }
 0x325   : > { %6961 = vmatprep.subr.bf16.mxu1 %v8318_v8  ;;  %v2797_v58 = vpack.c.bf16 %v2788_v63, %v2787_v36 }
 0x327   : > { %6890 = vmatmul.mubr.bf16.gmra.mrb[16].mxu1 %v2578_v15  ;;  %v2986_v15 = vld [vmem:[#allocation4 + $0x4] sm:$0xff] }
 0x328   : > { %6893 = vmatprep.mubr.msk.bf16.mxu1 %vm7560_vm1, %v8318_v8  ;;  %v3004_v23 = vpack.c.bf16 %v2987_v42, %v2986_v15 }
 0x32f   : > { %6894 = vmatmul.mubr.bf16.gmra.mrb[20].mxu1 %v2579_v49  ;;  %v2989_v49 = vld [vmem:[#allocation4 + $0x1c] sm:$0xff] }
 0x330   : > { %6897 = vmatprep.mubr.msk.bf16.mxu1 %vm7560_vm1, %v8318_v8  ;;  %v3005_v12 = vpack.c.bf16 %v2989_v49, %v2988_v39 }
 0x337   : > { %6898 = vmatmul.mubr.bf16.gmra.mrb[24].mxu1 %v2580_v59  ;;  %v2990_v59 = vld [vmem:[#allocation4 + $0x24] sm:$0xff] }
 0x338   : > { %6901 = vmatprep.mubr.msk.bf16.mxu1 %vm7560_vm1, %v8318_v8  ;;  %v3006_v1 = vpack.c.bf16 %v2991_v18, %v2990_v59 }
 0x33f   : > { %6902 = vmatmul.mubr.bf16.gmra.mrb[28].mxu1 %v2581_v57  ;;  %v2993_v57 = vld [vmem:[#allocation4 + $0x3c] sm:$0xff] }
 0x340   : > { %6905 = vmatprep.mubr.msk.bf16.mxu1 %vm7560_vm1, %v8318_v8  ;;  %v3007_v40 = vpack.c.bf16 %v2993_v57, %v2992_v56 }
 0x347   : > { %6906 = vmatmul.mubr.bf16.gmra.mrb[32].mxu1 %v2582_v6  ;;  %v2994_v6 = vld [vmem:[#allocation4 + $0x44] sm:$0xff] }
 0x348   : > { %6925 = vmatprep.mubr.msk.bf16.mxu1 %vm7560_vm1, %v8318_v8  ;;  %v3008_v16 = vpack.c.bf16 %v2995_v26, %v2994_v6 }
 0x34f   : > { %6926 = vmatmul.mubr.bf16.vlgmr.msra.gmra.mrb[0].mxu1 %v2789_v3  ;;  %v2998_v3 = vld [vmem:[#allocation4 + $0x64] sm:$0xff] }
 0x350   : > { %6962 = vmatpush3.bf16.msra.mxu1 %v7322_v24  ;;  %6929 = vmatprep.mubr.msk.bf16.mxu1 %vm7560_vm1, %v8318_v8  ;;  %v2999_v24 = vld [vmem:[#allocation4 + $0x6c] sm:$0xff] }
 0x351   : > { %6963 = vmatprep.subr.bf16.mxu1 %v8318_v8 }
 0x354   : > { %6964 = vmatpush3.bf16.msra.mxu1 %v7323_v62  ;;  %v3010_v62 = vpack.c.bf16 %v2999_v24, %v2998_v3 }
 0x355   : > { %6965 = vmatprep.subr.bf16.mxu1 %v8318_v8 }
 0x357   : > { %6930 = vmatmul.mubr.bf16.gmra.mrb[4].mxu1 %v2790_v35  ;;  %v3002_v35 = vld [vmem:[#allocation4 + $0x84] sm:$0xff] }
 0x358   : > { %6933 = vmatprep.mubr.msk.bf16.mxu1 %vm7560_vm1, %v8318_v8  ;;  %6966 = vmatpush3.bf16.msra.mxu1 %v7324_v52  ;;  %v3011_v52 = vpack.c.bf16 %v3001_v50, %v3000_v30  ;;  %v3012_v55 = vpack.c.bf16 %v3003_v11, %v3002_v35 }
 0x359   : > { %6967 = vmatprep.subr.bf16.mxu1 %v8318_v8 }
 0x35c   : > { %6968 = vmatpush3.bf16.msra.mxu1 %v7325_v37  ;;  %v7345_v37 = vld [vmem:[%s9298_s5 + $0x38] sm:$0xff]  }
 0x35d   : > { %6969 = vmatprep.subr.bf16.mxu1 %v8318_v8  ;;  %6361 = vmatpush3.bf16.msra.mxu0 %v7345_v37 }
 0x35f   : > { %6934 = vmatmul.mubr.bf16.gmra.mrb[8].mxu1 %v2791_v4  ;;  %v7352_v4 = vld [vmem:[%s9298_s5 + $0x350] sm:$0xff]  }
 0x360   : > { %6937 = vmatprep.mubr.msk.bf16.mxu1 %vm7560_vm1, %v8318_v8  ;;  %6970 = vmatpush3.bf16.msra.mxu1 %v7326_v41  ;;  %v7350_v41 = vld [vmem:[%s9298_s5 + $0xc0] sm:$0xff]  }
 0x361   : > { %6971 = vmatprep.subr.bf16.mxu1 %v8318_v8  ;;  %6368 = vmatprep.subr.bf16.mxu0 %v7350_v41 }
 0x364   : > { %6972 = vmatpush3.bf16.msra.mxu1 %v7327_v60  ;;  %v7357_v60 = vld [vmem:[%s9298_s5 + $0x318] sm:$0xff]  }
 0x365   : > { %6973 = vmatprep.subr.bf16.mxu1 %v8318_v8 }
 0x367   : > { %6938 = vmatmul.mubr.bf16.gmra.mrb[12].mxu1 %v2792_v48  ;;  %v7369_v48 = vld [vmem:[%s9298_s5 + $0x330] sm:$0xff]  }
 0x368   : > { %6941 = vmatprep.mubr.msk.bf16.mxu1 %vm7560_vm1, %v8318_v8  ;;  %6974 = vmatpush3.bf16.msra.mxu1 %v7328_v31  ;;  %v7368_v31 = vld [vmem:[%s9298_s5 + $0x370] sm:$0xff]  }
 0x369   : > { %6975 = vmatprep.subr.bf16.mxu1 %v8318_v8 }
 0x36c   : > { %6976 = vmatpush3.bf16.msra.mxu1 %v7329_v38  ;;  %v7376_v38 = vld [vmem:[%s9298_s5 + $0x440] sm:$0xff]  }
 0x36d   : > { %6478 = vmatprep.subr.bf16.mxu1 %v7346_v10  ;;  %v7351_v10 = vld [vmem:[%s9298_s5 + $0x80] sm:$0xff]  }
 0x36f   : > { %6942 = vmatmul.mubr.bf16.gmra.mrb[16].mxu1 %v2793_v14 }
 0x370   : > { %6945 = vmatprep.mubr.msk.bf16.mxu1 %vm7560_vm1, %v8318_v8 }
 0x377   : > { %6946 = vmatmul.mubr.bf16.gmra.mrb[20].mxu1 %v2794_v21 }
 0x378   : > { %6949 = vmatprep.mubr.msk.bf16.mxu1 %vm7560_vm1, %v8318_v8 }
 0x37f   : > { %6950 = vmatmul.mubr.bf16.gmra.mrb[24].mxu1 %v2795_v7 }
 0x380   : > { %6953 = vmatprep.mubr.msk.bf16.mxu1 %vm7560_vm1, %v8318_v8 }
 0x387   : > { %6954 = vmatmul.mubr.bf16.gmra.mrb[28].mxu1 %v2796_v45 }
 0x388   : > { %6957 = vmatprep.mubr.msk.bf16.mxu1 %vm7560_vm1, %v8318_v8 }
 0x38f   : > { %6958 = vmatmul.mubr.bf16.gmra.mrb[32].mxu1 %v2797_v58  ;;  %v8682_v58 = vld [vmem:[%s9297_s4] ss:$0 sm:$0xff] }
 0x390   : > { %6977 = vmatprep.mubr.msk.bf16.mxu1 %vm7560_vm1, %v8318_v8 }
 0x397   : > { %6978 = vmatmul.mubr.bf16.vlgmr.msra.gmra.mrb[0].mxu1 %v3004_v23 }
 0x398   : > { %6981 = vmatprep.mubr.msk.bf16.mxu1 %vm7560_vm1, %v8318_v8  ;;  %6479 = vmatpush3.bf16.msra.mxu1 %v7347_v13 }
 0x399   : > { %6480 = vmatprep.subr.bf16.mxu1 %v7348_v33 }
 0x39c   : > { %6481 = vmatpush3.bf16.msra.mxu1 %v7349_v28  ;;  %v7354_v28 = vld [vmem:[%s9298_s5 + $0xc8] sm:$0xff]  }
 0x39d   : > { %6482 = vmatprep.subr.bf16.mxu1 %v7352_v4 }
 0x39f   : > { %6982 = vmatmul.mubr.bf16.gmra.mrb[4].mxu1 %v3005_v12 }
 0x3a0   : > { %6985 = vmatprep.mubr.msk.bf16.mxu1 %vm7560_vm1, %v8318_v8  ;;  %6483 = vmatpush3.bf16.msra.mxu1 %v7353_v29 }
 0x3a1   : > { %6484 = vmatprep.subr.bf16.mxu1 %v7356_v44  ;;  %v7355_v44 = vld [vmem:[%s9298_s5 + $0x88] sm:$0xff]  }
 0x3a4   : > { %6485 = vmatpush3.bf16.msra.mxu1 %v7357_v60  ;;  %v7358_v60 = vld [vmem:[%s9298_s5 + $0xd0] sm:$0xff]  }
 0x3a5   : > { %6486 = vmatprep.subr.bf16.mxu1 %v7360_v43 }
 0x3a7   : > { %6986 = vmatmul.mubr.bf16.gmra.mrb[8].mxu1 %v3006_v1 }
 0x3a8   : > { %6989 = vmatprep.mubr.msk.bf16.mxu1 %vm7560_vm1, %v8318_v8  ;;  %6487 = vmatpush3.bf16.msra.mxu1 %v7361_v61 }
 0x3a9   : > { %6488 = vmatprep.subr.bf16.mxu1 %v7364_v5 }
 0x3ac   : > { %6489 = vmatpush3.bf16.msra.mxu1 %v7365_v34 }
 0x3ad   : > { %6490 = vmatprep.subr.bf16.mxu1 %v7368_v31 }
 0x3af   : > { %6990 = vmatmul.mubr.bf16.gmra.mrb[12].mxu1 %v3007_v40 }
 0x3b0   : > { %6993 = vmatprep.mubr.msk.bf16.mxu1 %vm7560_vm1, %v8318_v8  ;;  %6491 = vmatpush3.bf16.msra.mxu1 %v7369_v48 }
 0x3b1   : > { %6492 = vmatprep.subr.bf16.mxu1 %v7372_v2 }
 0x3b4   : > { %6493 = vmatpush3.bf16.msra.mxu1 %v7373_v27 }
 0x3b5   : > { %6522 = vmatprep.subr.bf16.mxu1 %v7376_v38 }
 0x3b7   : > { %6994 = vmatmul.mubr.bf16.gmra.mrb[16].mxu1 %v3008_v16 }
 0x3b8   : > { %6997 = vmatprep.mubr.msk.bf16.mxu1 %vm7560_vm1, %v8318_v8 }
 0x3bf   : > { %6998 = vmatmul.mubr.bf16.gmra.mrb[20].mxu1 %v3009_v25 }
 0x3c0   : > { %7001 = vmatprep.mubr.msk.bf16.mxu1 %vm7560_vm1, %v8318_v8 }
 0x3c7   : > { %7002 = vmatmul.mubr.bf16.gmra.mrb[24].mxu1 %v3010_v62 }
 0x3c8   : > { %7005 = vmatprep.mubr.msk.bf16.mxu1 %vm7560_vm1, %v8318_v8 }
 0x3cf   : > { %7006 = vmatmul.mubr.bf16.gmra.mrb[28].mxu1 %v3011_v52 }
 0x3d0   : > { %7009 = vmatprep.mubr.msk.bf16.mxu1 %vm7560_vm1, %v8318_v8 }
 0x3d7   : > { %7010 = vmatmul.mubr.bf16.gmra.mrb[32].mxu1 %v3012_v55 }
 0x46a   : > { %v3112_v17 = vpop.f32.mrb[0].mxu1 }
 0x46b   : > { %3201 = vst [vmem:[#allocation5] sm:$0xff] %v3112_v17  ;;  %v6979_v32 = vpop.f32.mrb[1].mxu1 }
 0x46c   : > { %v3115_v22 = vpop.f32.mrb[2].mxu1 }
 0x46d   : > { %3202 = vst [vmem:[#allocation5 + $0x8] sm:$0xff] %v3115_v22  ;;  %v6980_v14 = vpop.f32.mrb[3].mxu1  ;;  %v7359_v22 = vld [vmem:[%s9298_s5 + $0x90] sm:$0xff]  }
 0x472   : > { %v3120_v19 = vpop.f32.mrb[4].mxu1 }
 0x473   : > { %3203 = vst [vmem:[#allocation5 + $0x10] sm:$0xff] %v3120_v19  ;;  %v6983_v46 = vpop.f32.mrb[5].mxu1 }
 0x474   : > { %v3123_v21 = vpop.f32.mrb[6].mxu1  ;;  %v3219_v54 = vld [vmem:[#allocation5] ss:$2 sm:$0x1f] }
 0x475   : > { %3204 = vst [vmem:[#allocation5 + $0x18] sm:$0xff] %v3123_v21  ;;  %v6984_v47 = vpop.f32.mrb[7].mxu1  ;;  %v3221_v7 = vld [vmem:[#allocation5 + $0x1] ss:$2 sm:$0x1f] }
 0x476   : > { %v3222_v45 = vmax.f32 %v3219_v54, %v3221_v7  ;;  %v7362_v46 = vld [vmem:[%s9298_s5 + $0xd8] sm:$0xff]  }
 0x477   : > { %v7363_v7 = vld [vmem:[%s9298_s5 + $0x98] sm:$0xff]  }
 0x47a   : > { %v3224_v53 = vld [vmem:[#allocation5 + $0xe] ss:$2 sm:$0x1f]  ;;  %v3226_v0 = vld [vmem:[#allocation5 + $0xf] ss:$2 sm:$0x1f] }
 0x47b   : > { %v3227_v36 = vmax.f32 %v3224_v53, %v3226_v0  ;;  %v3128_v63 = vpop.f32.mrb[8].mxu1  ;;  %v7366_v0 = vld [vmem:[%s9298_s5 + $0xe0] sm:$0xff]  }
 0x47c   : > { %3205 = vst [vmem:[#allocation5 + $0x20] sm:$0xff] %v3128_v63  ;;  %v6987_v42 = vpop.f32.mrb[9].mxu1 }
 0x47d   : > { %v3228_v15 = vmax.f32 %v3222_v45, %v3227_v36  ;;  %v3131_v23 = vpop.f32.mrb[10].mxu1  ;;  %v7367_v42 = vld [vmem:[%s9298_s5 + $0xa0] sm:$0xff]  }
 0x47e   : > { %3206 = vst [vmem:[#allocation5 + $0x28] sm:$0xff] %v3131_v23  ;;  %v6988_v39 = vpop.f32.mrb[11].mxu1 }
 0x47f   : > { %v3229_v49 = vadd.f32 %v8682_v58, %v3228_v15  ;;  %v7370_v15 = vld [vmem:[%s9298_s5 + $0xe8] sm:$0xff]  }
 0x481   : > { %v3230_v12 = vmax.f32 %v3229_v49, 0.0 }
 0x482   : > { %v3136_v18 = vpop.f32.mrb[12].mxu1 }
 0x483   : > { %3231 = vst [vmem:[#allocation6] sm:$0x1] %v3230_v12  ;;  %3207 = vst [vmem:[#allocation5 + $0x30] sm:$0xff] %v3136_v18  ;;  %v6991_v59 = vpop.f32.mrb[13].mxu1  ;;  %v3233_v1 = vrot.slane %v3230_v12, 1  ;;  %v3239_v56 = vrot.slane %v3230_v12, 3 }
 0x484   : > { %v3236_v57 = vrot.slane %v3230_v12, 2  ;;  %v3139_v40 = vpop.f32.mrb[14].mxu1  ;;  %v3242_v26 = vrot.slane %v3230_v12, 4  ;;  %v3246_v16 = vld [vmem:[#allocation5 + $0x1c] ss:$2 sm:$0x1f] }
 0x485   : > { %3208 = vst [vmem:[#allocation5 + $0x38] sm:$0xff] %v3139_v40  ;;  %v6992_v6 = vpop.f32.mrb[15].mxu1  ;;  %3235 = vst [vmem:[#allocation6 + $0x8] sm:$0x1] %v3233_v1  ;;  %v7374_v40 = vld [vmem:[%s9298_s5 + $0xf0] sm:$0xff]  }
 0x486   : > { %3241 = vst [vmem:[#allocation6 + $0x18] sm:$0x1] %v3239_v56  ;;  %3238 = vst [vmem:[#allocation6 + $0x10] sm:$0x1] %v3236_v57  ;;  %v7371_v56 = vld [vmem:[%s9298_s5 + $0xa8] sm:$0xff]  }
 0x487   : > { %3244 = vst [vmem:[#allocation6 + $0x20] sm:$0x1] %v3242_v26  ;;  %v3248_v51 = vld [vmem:[#allocation5 + $0x1d] ss:$2 sm:$0x1f] }
 0x488   : > { %v3249_v24 = vmax.f32 %v3246_v16, %v3248_v51 }
 0x48a   : > { %v3251_v20 = vld [vmem:[#allocation5 + $0x2a] ss:$2 sm:$0x1f]  ;;  %v3253_v25 = vld [vmem:[#allocation5 + $0x2b] ss:$2 sm:$0x1f] }
 0x48b   : > { %v3254_v3 = vmax.f32 %v3251_v20, %v3253_v25  ;;  %v3144_v62 = vpop.f32.mrb[16].mxu1  ;;  %v3353_v50 = vld [vmem:[#allocation6] sm:$0xff] }
 0x48c   : > { %3209 = vst [vmem:[#allocation5 + $0x40] sm:$0xff] %v3144_v62  ;;  %v6995_v30 = vpop.f32.mrb[17].mxu1  ;;  %v3354_v11 = vld [vmem:[#allocation6 + $0x8] sm:$0xff]  ;;  %v3378_v33 = vpack.c.bf16 %v3353_v50, %v3353_v50  ;;  %v7378_v62 = vld [vmem:[%s9298_s5 + $0xf8] sm:$0xff]  }
 0x48d   : > { %v3255_v52 = vmax.f32 %v3249_v24, %v3254_v3  ;;  %v3147_v35 = vpop.f32.mrb[18].mxu1  ;;  %v3356_v55 = vld [vmem:[#allocation6 + $0x18] sm:$0xff]  ;;  %v3379_v37 = vpack.c.bf16 %v3354_v11, %v3354_v11  ;;  %v7375_v24 = vld [vmem:[%s9298_s5 + $0xb0] sm:$0xff]  }
 0x48e   : > { %3210 = vst [vmem:[#allocation5 + $0x48] sm:$0xff] %v3147_v35  ;;  %v6996_v9 = vpop.f32.mrb[19].mxu1  ;;  %v3381_v41 = vpack.c.bf16 %v3356_v55, %v3356_v55  ;;  %v7377_v55 = vld [vmem:[%s9298_s5 + $0x400] sm:$0xff]  }
 0x48f   : > { %v3256_v13 = vadd.f32 %v8682_v58, %v3255_v52  ;;  %5042 = vmatprep.mubr.bf16.mxu0 %v3379_v37  ;;  %v7379_v37 = vld [vmem:[%s9298_s5 + $0xb8] sm:$0xff]  }
 0x490   : > { %5043 = vmatmul.mubr.bf16.vlgmr.msra.gmra.mrb[100].mxu0 %v3378_v33 }
 0x491   : > { %v3257_v4 = vmax.f32 %v3256_v13, 0.0  ;;  %6369 = vmatpush3.bf16.msra.mxu0 %v7351_v10  ;;  %5082 = vmatprep.mubr.bf16.mxu0 %v3381_v41  ;;  %v7380_v10 = vld [vmem:[%s9298_s5 + $0x448] sm:$0xff]  }
 0x492   : > { %v3152_v29 = vpop.f32.mrb[20].mxu1  ;;  %6370 = vmatprep.subr.bf16.mxu0 %v7354_v28  ;;  %v7382_v28 = vld [vmem:[%s9298_s5 + $0x140] sm:$0xff]  }
 0x493   : > { %3258 = vst [vmem:[#allocation6 + $0x28] sm:$0x1] %v3257_v4  ;;  %v3273_v43 = vld [vmem:[#allocation5 + $0x38] ss:$2 sm:$0x1f]  ;;  %3211 = vst [vmem:[#allocation5 + $0x50] sm:$0xff] %v3152_v29 }
 0x494   : > { %v3275_v61 = vld [vmem:[#allocation5 + $0x39] ss:$2 sm:$0x1f]  ;;  %v6999_v5 = vpop.f32.mrb[21].mxu1  ;;  %v3263_v34 = vrot.slane %v3257_v4, 2  ;;  %v3260_v31 = vrot.slane %v3257_v4, 1 }
 0x495   : > { %v3269_v48 = vrot.slane %v3257_v4, 4  ;;  %v3278_v2 = vld [vmem:[#allocation5 + $0x46] ss:$2 sm:$0x1f]  ;;  %v3276_v38 = vmax.f32 %v3273_v43, %v3275_v61  ;;  %v3155_v32 = vpop.f32.mrb[22].mxu1  ;;  %6371 = vmatpush3.bf16.msra.mxu0 %v7355_v44  ;;  %v3266_v14 = vrot.slane %v3257_v4, 3 }
 0x496   : > { %v3280_v27 = vld [vmem:[#allocation5 + $0x47] ss:$2 sm:$0x1f]  ;;  %3265 = vst [vmem:[#allocation6 + $0x38] sm:$0x1] %v3263_v34  ;;  %3212 = vst [vmem:[#allocation5 + $0x58] sm:$0xff] %v3155_v32  ;;  %6372 = vmatprep.subr.bf16.mxu0 %v7358_v60 }
 0x497   : > { %v3281_v17 = vmax.f32 %v3278_v2, %v3280_v27  ;;  %3262 = vst [vmem:[#allocation6 + $0x30] sm:$0x1] %v3260_v31  ;;  %3271 = vst [vmem:[#allocation6 + $0x48] sm:$0x1] %v3269_v48  ;;  %v7000_v19 = vpop.f32.mrb[23].mxu1  ;;  %v3355_v4 = vld [vmem:[#allocation6 + $0x10] sm:$0xff] }
 0x498   : > { %3268 = vst [vmem:[#allocation6 + $0x40] sm:$0x1] %v3266_v14  ;;  %v7381_v29 = vld [vmem:[%s9298_s5 + $0x408] sm:$0xff]   ;;  %v7383_v43 = vld [vmem:[%s9298_s5 + $0x100] sm:$0xff]   ;;  %v3380_v31 = vpack.c.bf16 %v3355_v4, %v3355_v4  ;;  %v7384_v48 = vld [vmem:[%s9298_s5 + $0x450] sm:$0xff]  }
 0x499   : > { %v3282_v21 = vmax.f32 %v3276_v38, %v3281_v17  ;;  %6373 = vmatpush3.bf16.msra.mxu0 %v7359_v22  ;;  %v7386_v2 = vld [vmem:[%s9298_s5 + $0x148] sm:$0xff]   ;;  %v7385_v22 = vld [vmem:[%s9298_s5 + $0x410] sm:$0xff]   ;;  %v7388_v19 = vld [vmem:[%s9298_s5 + $0x458] sm:$0xff]  }
 0x49a   : > { %v3160_v54 = vpop.f32.mrb[24].mxu1  ;;  %6374 = vmatprep.subr.bf16.mxu0 %v7362_v46  ;;  %v3358_v44 = vld [vmem:[#allocation6 + $0x28] sm:$0xff]  ;;  %v7387_v14 = vld [vmem:[%s9298_s5 + $0x108] sm:$0xff]   ;;  %v7415_v4 = vld [vmem:[%s9298_s5 + $0x180] sm:$0xff]  }
 0x49b   : > { %v3283_v47 = vadd.f32 %v8682_v58, %v3282_v21  ;;  %3213 = vst [vmem:[#allocation5 + $0x60] sm:$0xff] %v3160_v54  ;;  %v7003_v53 = vpop.f32.mrb[25].mxu1  ;;  %v3383_v32 = vpack.c.bf16 %v3358_v44, %v3358_v44  ;;  %v7416_v44 = vld [vmem:[%s9298_s5 + $0x550] sm:$0xff]  }
 0x49c   : > { %v3163_v36 = vpop.f32.mrb[26].mxu1 }
 0x49d   : > { %v3284_v45 = vmax.f32 %v3283_v47, 0.0  ;;  %3214 = vst [vmem:[#allocation5 + $0x68] sm:$0xff] %v3163_v36  ;;  %v7004_v63 = vpop.f32.mrb[27].mxu1  ;;  %6375 = vmatpush3.bf16.msra.mxu0 %v7363_v7  ;;  %v3300_v18 = vld [vmem:[#allocation5 + $0x54] ss:$2 sm:$0x1f] }
 0x49e   : > { %6376 = vmatprep.subr.bf16.mxu0 %v7366_v0  ;;  %v3302_v59 = vld [vmem:[#allocation5 + $0x55] ss:$2 sm:$0x1f]  ;;  %v7389_v0 = vld [vmem:[%s9298_s5 + $0x418] sm:$0xff]   ;;  %v7392_v36 = vld [vmem:[%s9298_s5 + $0x460] sm:$0xff]  }
 0x49f   : > { %3285 = vst [vmem:[#allocation6 + $0x50] sm:$0x1] %v3284_v45  ;;  %v3293_v23 = vrot.slane %v3284_v45, 3  ;;  %v3290_v39 = vrot.slane %v3284_v45, 2  ;;  %v3287_v49 = vrot.slane %v3284_v45, 1  ;;  %v3296_v12 = vrot.slane %v3284_v45, 4 }
 0x4a0   : > { %v3303_v16 = vmax.f32 %v3300_v18, %v3302_v59  ;;  %v7390_v7 = vld [vmem:[%s9298_s5 + $0x150] sm:$0xff]   ;;  %v7398_v18 = vld [vmem:[%s9298_s5 + $0x160] sm:$0xff]  }
 0x4a1   : > { %3295 = vst [vmem:[#allocation6 + $0x68] sm:$0x1] %v3293_v23  ;;  %3292 = vst [vmem:[#allocation6 + $0x60] sm:$0x1] %v3290_v39  ;;  %6377 = vmatpush3.bf16.msra.mxu0 %v7367_v42  ;;  %v7391_v45 = vld [vmem:[%s9298_s5 + $0x110] sm:$0xff]  }
 0x4a2   : > { %3289 = vst [vmem:[#allocation6 + $0x58] sm:$0x1] %v3287_v49  ;;  %v3168_v1 = vpop.f32.mrb[28].mxu1  ;;  %3298 = vst [vmem:[#allocation6 + $0x70] sm:$0x1] %v3296_v12  ;;  %6378 = vmatprep.subr.bf16.mxu0 %v7370_v15  ;;  %v7394_v15 = vld [vmem:[%s9298_s5 + $0x158] sm:$0xff]  }
 0x4a3   : > { %3215 = vst [vmem:[#allocation5 + $0x70] sm:$0xff] %v3168_v1  ;;  %v7007_v57 = vpop.f32.mrb[29].mxu1  ;;  %v7393_v49 = vld [vmem:[%s9298_s5 + $0x420] sm:$0xff]   ;;  %v7395_v12 = vld [vmem:[%s9298_s5 + $0x118] sm:$0xff]  }
 0x4a4   : > { %v3305_v26 = vld [vmem:[#allocation5 + $0x62] ss:$2 sm:$0x1f]  ;;  %v3307_v6 = vld [vmem:[#allocation5 + $0x63] ss:$2 sm:$0x1f] }
 0x4a5   : > { %v3308_v51 = vmax.f32 %v3305_v26, %v3307_v6  ;;  %v3171_v20 = vpop.f32.mrb[30].mxu1  ;;  %6379 = vmatpush3.bf16.msra.mxu0 %v7371_v56  ;;  %v7399_v26 = vld [vmem:[%s9298_s5 + $0x120] sm:$0xff]   ;;  %v7400_v6 = vld [vmem:[%s9298_s5 + $0x470] sm:$0xff]  }
 0x4a6   : > { %3216 = vst [vmem:[#allocation5 + $0x78] sm:$0xff] %v3171_v20  ;;  %v7008_v25 = vpop.f32.mrb[31].mxu1  ;;  %6380 = vmatprep.subr.bf16.mxu0 %v7374_v40  ;;  %v7397_v40 = vld [vmem:[%s9298_s5 + $0x428] sm:$0xff]  }
 0x4a7   : > { %v3309_v3 = vmax.f32 %v3303_v16, %v3308_v51  ;;  %v7402_v16 = vld [vmem:[%s9298_s5 + $0x168] sm:$0xff]   ;;  %v7401_v51 = vld [vmem:[%s9298_s5 + $0x430] sm:$0xff]   ;;  %v7404_v25 = vld [vmem:[%s9298_s5 + $0x478] sm:$0xff]  }
 0x4a8   : > { %v3366_v30 = vld [vmem:[#allocation6 + $0x68] sm:$0xff]  ;;  %v3365_v50 = vld [vmem:[#allocation6 + $0x60] sm:$0xff] }
 0x4a9   : > { %v3310_v52 = vadd.f32 %v8682_v58, %v3309_v3  ;;  %v3391_v35 = vpack.c.bf16 %v3366_v30, %v3366_v30  ;;  %v3390_v11 = vpack.c.bf16 %v3365_v50, %v3365_v50  ;;  %6381 = vmatpush3.bf16.msra.mxu0 %v7375_v24  ;;  %v7403_v20 = vld [vmem:[%s9298_s5 + $0x128] sm:$0xff]   ;;  %v7406_v24 = vld [vmem:[%s9298_s5 + $0x170] sm:$0xff]   ;;  %v7405_v3 = vld [vmem:[%s9298_s5 + $0x438] sm:$0xff]  }
 0x4aa   : > { %v3176_v9 = vpop.f32.mrb[32].mxu1  ;;  %6382 = vmatprep.subr.bf16.mxu0 %v7378_v62  ;;  %v7407_v62 = vld [vmem:[%s9298_s5 + $0x130] sm:$0xff]   ;;  %v7408_v30 = vld [vmem:[%s9298_s5 + $0x540] sm:$0xff]  }
 0x4ab   : > { %v3311_v13 = vmax.f32 %v3310_v52, 0.0  ;;  %5282 = vmatprep.mubr.bf16.mxu1 %v3391_v35  ;;  %3217 = vst [vmem:[#allocation5 + $0x80] sm:$0xff] %v3176_v9  ;;  %v7011_v33 = vpop.f32.mrb[33].mxu1  ;;  %v7410_v52 = vld [vmem:[%s9298_s5 + $0x178] sm:$0xff]  }
 0x4ac   : > { %5283 = vmatmul.mubr.bf16.vlgmr.msra.gmra.mrb[36].mxu1 %v3390_v11  ;;  %v3179_v41 = vpop.f32.mrb[34].mxu1  ;;  %v7409_v11 = vld [vmem:[%s9298_s5 + $0x500] sm:$0xff]   ;;  %v7411_v9 = vld [vmem:[%s9298_s5 + $0x138] sm:$0xff]   ;;  %v3357_v33 = vld [vmem:[#allocation6 + $0x20] sm:$0xff] }
 0x4ad   : > { %3312 = vst [vmem:[#allocation6 + $0x78] sm:$0x1] %v3311_v13  ;;  %6523 = vmatpush3.bf16.msra.mxu1 %v7377_v55  ;;  %6383 = vmatpush3.bf16.msra.mxu0 %v7379_v37  ;;  %v7012_v60 = vpop.f32.mrb[35].mxu1  ;;  %v3317_v61 = vrot.slane %v3311_v13, 2  ;;  %v3314_v5 = vrot.slane %v3311_v13, 1  ;;  %v3323_v34 = vrot.slane %v3311_v13, 4 }
 0x4ae   : > { %6524 = vmatprep.subr.bf16.mxu1 %v7380_v10  ;;  %6390 = vmatprep.subr.bf16.mxu0 %v7382_v28  ;;  %v3320_v27 = vrot.slane %v3311_v13, 3  ;;  %v3327_v38 = vld [vmem:[#allocation5 + $0x70] ss:$2 sm:$0x1f]  ;;  %v7414_v13 = vld [vmem:[%s9298_s5 + $0x1c0] sm:$0xff]  }
 0x4af   : > { %v3329_v17 = vld [vmem:[#allocation5 + $0x71] ss:$2 sm:$0x1f]  ;;  %3319 = vst [vmem:[#allocation6 + $0x88] sm:$0x1] %v3317_v61  ;;  %v3360_v41 = vld [vmem:[#allocation6 + $0x38] sm:$0xff] }
 0x4b0   : > { %3316 = vst [vmem:[#allocation6 + $0x80] sm:$0x1] %v3314_v5  ;;  %3325 = vst [vmem:[#allocation6 + $0x98] sm:$0x1] %v3323_v34  ;;  %5083 = vmatmul.mubr.bf16.vlgmr.msra.gmra.mrb[104].mxu0 %v3380_v31  ;;  %v3330_v47 = vmax.f32 %v3327_v38, %v3329_v17  ;;  %v7412_v37 = vld [vmem:[%s9298_s5 + $0x548] sm:$0xff]   ;;  %v7417_v61 = vld [vmem:[%s9298_s5 + $0x510] sm:$0xff]  }
 0x4b1   : > { %6525 = vmatpush3.bf16.msra.mxu1 %v7381_v29  ;;  %3322 = vst [vmem:[#allocation6 + $0x90] sm:$0x1] %v3320_v27  ;;  %6391 = vmatpush3.bf16.msra.mxu0 %v7383_v43  ;;  %v7413_v28 = vld [vmem:[%s9298_s5 + $0x508] sm:$0xff]   ;;  %v3382_v29 = vpack.c.bf16 %v3357_v33, %v3357_v33  ;;  %v3385_v43 = vpack.c.bf16 %v3360_v41, %v3360_v41  ;;  %v7420_v34 = vld [vmem:[%s9298_s5 + $0x558] sm:$0xff]   ;;  %v7422_v31 = vld [vmem:[%s9298_s5 + $0x1d0] sm:$0xff]  }
 0x4b2   : > { %v3332_v46 = vld [vmem:[#allocation5 + $0x7e] ss:$2 sm:$0x1f]  ;;  %v3334_v21 = vld [vmem:[#allocation5 + $0x7f] ss:$2 sm:$0x1f]  ;;  %5122 = vmatprep.mubr.bf16.mxu0 %v3383_v32  ;;  %6526 = vmatprep.subr.bf16.mxu1 %v7384_v48 }
 0x4b3   : > { %v3335_v54 = vmax.f32 %v3332_v46, %v3334_v21  ;;  %6392 = vmatprep.subr.bf16.mxu0 %v7386_v2  ;;  %v7418_v60 = vld [vmem:[%s9298_s5 + $0x1c8] sm:$0xff]   ;;  %v7421_v48 = vld [vmem:[%s9298_s5 + $0x518] sm:$0xff]   ;;  %v7423_v2 = vld [vmem:[%s9298_s5 + $0x190] sm:$0xff]  }
 0x4b4   : > { %v7419_v5 = vld [vmem:[%s9298_s5 + $0x188] sm:$0xff]   ;;  %v7424_v27 = vld [vmem:[%s9298_s5 + $0x560] sm:$0xff]   ;;  %v7426_v38 = vld [vmem:[%s9298_s5 + $0x1d8] sm:$0xff]  }
 0x4b5   : > { %v3336_v53 = vmax.f32 %v3330_v47, %v3335_v54  ;;  %6527 = vmatpush3.bf16.msra.mxu1 %v7385_v22  ;;  %6393 = vmatpush3.bf16.msra.mxu0 %v7387_v14  ;;  %v7425_v17 = vld [vmem:[%s9298_s5 + $0x520] sm:$0xff]   ;;  %v7427_v32 = vld [vmem:[%s9298_s5 + $0x198] sm:$0xff]   ;;  %v7428_v22 = vld [vmem:[%s9298_s5 + $0x568] sm:$0xff]  }
 0x4b6   : > { %6528 = vmatprep.subr.bf16.mxu1 %v7388_v19  ;;  %6394 = vmatprep.subr.bf16.mxu0 %v7390_v7  ;;  %v3370_v42 = vld [vmem:[#allocation6 + $0x88] sm:$0xff]  ;;  %v7430_v14 = vld [vmem:[%s9298_s5 + $0x1e0] sm:$0xff]   ;;  %v7429_v19 = vld [vmem:[%s9298_s5 + $0x528] sm:$0xff]  }
 0x4b7   : > { %v3337_v63 = vadd.f32 %v8682_v58, %v3336_v53  ;;  %v3395_v23 = vpack.c.bf16 %v3370_v42, %v3370_v42  ;;  %v7396_v58 = vld [vmem:[%s9298_s5 + $0x468] sm:$0xff]   ;;  %v7431_v46 = vld [vmem:[%s9298_s5 + $0x1a0] sm:$0xff]   ;;  %v7432_v21 = vld [vmem:[%s9298_s5 + $0x570] sm:$0xff]  }
 0x4b8   : > { %v3369_v50 = vld [vmem:[#allocation6 + $0x80] sm:$0xff]  ;;  %v7433_v54 = vld [vmem:[%s9298_s5 + $0x530] sm:$0xff]   ;;  %v7436_v53 = vld [vmem:[%s9298_s5 + $0x578] sm:$0xff]  }
 0x4b9   : > { %v3338_v39 = vmax.f32 %v3337_v63, 0.0  ;;  %6529 = vmatpush3.bf16.msra.mxu1 %v7389_v0  ;;  %6395 = vmatpush3.bf16.msra.mxu0 %v7391_v45  ;;  %v3394_v55 = vpack.c.bf16 %v3369_v50, %v3369_v50  ;;  %v7434_v47 = vld [vmem:[%s9298_s5 + $0x1e8] sm:$0xff]   ;;  %v7438_v0 = vld [vmem:[%s9298_s5 + $0x1f0] sm:$0xff]   ;;  %v7437_v45 = vld [vmem:[%s9298_s5 + $0x538] sm:$0xff]  }
 0x4ba   : > { %6530 = vmatprep.subr.bf16.mxu1 %v7392_v36  ;;  %5362 = vmatprep.mubr.bf16.mxu1 %v3395_v23  ;;  %v7435_v7 = vld [vmem:[%s9298_s5 + $0x1a8] sm:$0xff]   ;;  %v7439_v36 = vld [vmem:[%s9298_s5 + $0x1b0] sm:$0xff]   ;;  %v7441_v42 = vld [vmem:[%s9298_s5 + $0x1f8] sm:$0xff]  }
 0x4bb   : > { %3339 = vst [vmem:[#allocation6 + $0xa0] sm:$0x1] %v3338_v39  ;;  %6396 = vmatprep.subr.bf16.mxu0 %v7394_v15  ;;  %v3341_v59 = vrot.slane %v3338_v39, 1  ;;  %v3350_v1 = vrot.slane %v3338_v39, 4  ;;  %v3347_v56 = vrot.slane %v3338_v39, 3  ;;  %v3344_v57 = vrot.slane %v3338_v39, 2 }
 0x4bc   : > { %v7440_v15 = vld [vmem:[%s9298_s5 + $0x600] sm:$0xff]   ;;  %v7442_v39 = vld [vmem:[%s9298_s5 + $0x1b8] sm:$0xff]   ;;  %v7459_v50 = vld [vmem:[%s9298_s5 + $0x268] sm:$0xff]  }
 0x4bd   : > { %6531 = vmatpush3.bf16.msra.mxu1 %v7393_v49  ;;  %3343 = vst [vmem:[#allocation6 + $0xa8] sm:$0x1] %v3341_v59  ;;  %3352 = vst [vmem:[#allocation6 + $0xc0] sm:$0x1] %v3350_v1  ;;  %6397 = vmatpush3.bf16.msra.mxu0 %v7395_v12  ;;  %v7444_v49 = vld [vmem:[%s9298_s5 + $0x240] sm:$0xff]   ;;  %v3359_v12 = vld [vmem:[#allocation6 + $0x30] sm:$0xff] }
 0x4be   : > { %3349 = vst [vmem:[#allocation6 + $0xb8] sm:$0x1] %v3347_v56  ;;  %3346 = vst [vmem:[#allocation6 + $0xb0] sm:$0x1] %v3344_v57  ;;  %6532 = vmatprep.subr.bf16.mxu1 %v7396_v58  ;;  %6398 = vmatprep.subr.bf16.mxu0 %v7398_v18  ;;  %v7443_v58 = vld [vmem:[%s9298_s5 + $0x608] sm:$0xff]   ;;  %v3362_v18 = vld [vmem:[#allocation6 + $0x48] sm:$0xff]  ;;  %v3384_v1 = vpack.c.bf16 %v3359_v12, %v3359_v12 }
 0x4bf   : > { %v7445_v59 = vld [vmem:[%s9298_s5 + $0x200] sm:$0xff]   ;;  %v7447_v56 = vld [vmem:[%s9298_s5 + $0x248] sm:$0xff]   ;;  %v3387_v57 = vpack.c.bf16 %v3362_v18, %v3362_v18  ;;  %v7465_v33 = vld [vmem:[%s9298_s5 + $0x238] sm:$0xff]  }
 0x4c0   : > { %v3361_v41 = vld [vmem:[#allocation6 + $0x40] sm:$0xff]  ;;  %v7495_v18 = vld [vmem:[%s9298_s5 + $0x3b0] sm:$0xff]  }
 0x4c1   : > { %6533 = vmatpush3.bf16.msra.mxu1 %v7397_v40  ;;  %6399 = vmatpush3.bf16.msra.mxu0 %v7399_v26  ;;  %v7446_v40 = vld [vmem:[%s9298_s5 + $0x610] sm:$0xff]   ;;  %v7448_v26 = vld [vmem:[%s9298_s5 + $0x208] sm:$0xff]  }
 0x4c2   : > { %6534 = vmatprep.subr.bf16.mxu1 %v7400_v6  ;;  %6400 = vmatprep.subr.bf16.mxu0 %v7402_v16  ;;  %v3373_v63 = vld [vmem:[#allocation6 + $0xa0] sm:$0xff]  ;;  %v7450_v6 = vld [vmem:[%s9298_s5 + $0x250] sm:$0xff]   ;;  %v7449_v16 = vld [vmem:[%s9298_s5 + $0x618] sm:$0xff]  }
 0x4c3   : > { %v3398_v23 = vpack.c.bf16 %v3373_v63, %v3373_v63  ;;  %v7487_v63 = vld [vmem:[%s9298_s5 + $0x390] sm:$0xff]   ;;  %v7493_v12 = vld [vmem:[%s9298_s5 + $0x3a8] sm:$0xff]  }
 0x4c4   : > { %v3374_v35 = vld [vmem:[#allocation6 + $0xa8] sm:$0xff] }
 0x4c5   : > { %6535 = vmatpush3.bf16.msra.mxu1 %v7401_v51  ;;  %6401 = vmatpush3.bf16.msra.mxu0 %v7403_v20  ;;  %v3399_v10 = vpack.c.bf16 %v3374_v35, %v3374_v35  ;;  %v7451_v51 = vld [vmem:[%s9298_s5 + $0x210] sm:$0xff]   ;;  %v7453_v20 = vld [vmem:[%s9298_s5 + $0x258] sm:$0xff]   ;;  %v7460_v35 = vld [vmem:[%s9298_s5 + $0x228] sm:$0xff]  }
 0x4c6   : > { %6536 = vmatprep.subr.bf16.mxu1 %v7404_v25  ;;  %6402 = vmatprep.subr.bf16.mxu0 %v7406_v24  ;;  %v7452_v25 = vld [vmem:[%s9298_s5 + $0x620] sm:$0xff]   ;;  %v7454_v24 = vld [vmem:[%s9298_s5 + $0x218] sm:$0xff]  }
 0x4c9   : > { %6537 = vmatpush3.bf16.msra.mxu1 %v7405_v3  ;;  %6403 = vmatpush3.bf16.msra.mxu0 %v7407_v62  ;;  %v7456_v3 = vld [vmem:[%s9298_s5 + $0x260] sm:$0xff]   ;;  %v7455_v62 = vld [vmem:[%s9298_s5 + $0x628] sm:$0xff]  }
 0x4ca   : > { %6566 = vmatprep.subr.bf16.mxu1 %v7408_v30  ;;  %6404 = vmatprep.subr.bf16.mxu0 %v7410_v52  ;;  %v7457_v30 = vld [vmem:[%s9298_s5 + $0x220] sm:$0xff]   ;;  %v7458_v52 = vld [vmem:[%s9298_s5 + $0x630] sm:$0xff]  }
 0x4cc   : > { %5363 = vmatmul.mubr.bf16.vlgmr.msra.gmra.mrb[40].mxu1 %v3394_v55  ;;  %v7461_v55 = vld [vmem:[%s9298_s5 + $0x638] sm:$0xff]  }
 0x4cd   : > { %6567 = vmatpush3.bf16.msra.mxu1 %v7409_v11  ;;  %5442 = vmatprep.mubr.bf16.mxu1 %v3399_v10  ;;  %v7462_v11 = vld [vmem:[%s9298_s5 + $0x270] sm:$0xff]   ;;  %v7464_v10 = vld [vmem:[%s9298_s5 + $0x278] sm:$0xff]  }
 0x4ce   : > { %6405 = vmatpush3.bf16.msra.mxu0 %v7411_v9  ;;  %6568 = vmatprep.subr.bf16.mxu1 %v7412_v37  ;;  %v7463_v9 = vld [vmem:[%s9298_s5 + $0x230] sm:$0xff]   ;;  %v3377_v37 = vld [vmem:[#allocation6 + $0xc0] sm:$0xff] }
 0x4cf   : > { %6412 = vmatprep.subr.bf16.mxu0 %v7414_v13  ;;  %v3402_v13 = vpack.c.bf16 %v3377_v37, %v3377_v37 }
 0x4d1   : > { %6569 = vmatpush3.bf16.msra.mxu1 %v7413_v28  ;;  %5123 = vmatmul.mubr.bf16.vlgmr.msra.gmra.mrb[108].mxu0 %v3382_v29  ;;  %v7466_v28 = vld [vmem:[%s9298_s5 + $0x2c0] sm:$0xff]  }
 0x4d2   : > { %6413 = vmatpush3.bf16.msra.mxu0 %v7415_v4  ;;  %5162 = vmatprep.mubr.bf16.mxu0 %v3385_v43  ;;  %v3364_v4 = vld [vmem:[#allocation6 + $0x58] sm:$0xff] }
 0x4d3   : > { %6570 = vmatprep.subr.bf16.mxu1 %v7416_v44  ;;  %6414 = vmatprep.subr.bf16.mxu0 %v7418_v60  ;;  %v7467_v29 = vld [vmem:[%s9298_s5 + $0x280] sm:$0xff]   ;;  %v3386_v44 = vpack.c.bf16 %v3361_v41, %v3361_v41  ;;  %v7468_v60 = vld [vmem:[%s9298_s5 + $0x2c8] sm:$0xff]   ;;  %v3389_v43 = vpack.c.bf16 %v3364_v4, %v3364_v4  ;;  %v7513_v41 = vld [vmem:[%s9298_s5 + $0x4b8] sm:$0xff]  }
 0x4d4   : > { %v7514_v4 = vld [vmem:[%s9298_s5 + $0x5c0] sm:$0xff]  }
 0x4d5   : > { %6571 = vmatpush3.bf16.msra.mxu1 %v7417_v61  ;;  %v7469_v61 = vld [vmem:[%s9298_s5 + $0x288] sm:$0xff]  }
 0x4d6   : > { %6415 = vmatpush3.bf16.msra.mxu0 %v7419_v5  ;;  %6572 = vmatprep.subr.bf16.mxu1 %v7420_v34  ;;  %v7470_v5 = vld [vmem:[%s9298_s5 + $0x2d0] sm:$0xff]  }
 0x4d7   : > { %6416 = vmatprep.subr.bf16.mxu0 %v7422_v31  ;;  %v7471_v34 = vld [vmem:[%s9298_s5 + $0x290] sm:$0xff]   ;;  %v7472_v31 = vld [vmem:[%s9298_s5 + $0x2d8] sm:$0xff]  }
 0x4d9   : > { %6573 = vmatpush3.bf16.msra.mxu1 %v7421_v48  ;;  %v7473_v48 = vld [vmem:[%s9298_s5 + $0x298] sm:$0xff]  }
 0x4da   : > { %6417 = vmatpush3.bf16.msra.mxu0 %v7423_v2  ;;  %6574 = vmatprep.subr.bf16.mxu1 %v7424_v27  ;;  %v7474_v2 = vld [vmem:[%s9298_s5 + $0x2e0] sm:$0xff]  }
 0x4db   : > { %6418 = vmatprep.subr.bf16.mxu0 %v7426_v38  ;;  %v7475_v27 = vld [vmem:[%s9298_s5 + $0x2a0] sm:$0xff]   ;;  %v7476_v38 = vld [vmem:[%s9298_s5 + $0x2e8] sm:$0xff]  }
 0x4dd   : > { %6575 = vmatpush3.bf16.msra.mxu1 %v7425_v17  ;;  %v7477_v17 = vld [vmem:[%s9298_s5 + $0x2a8] sm:$0xff]  }
 0x4de   : > { %6419 = vmatpush3.bf16.msra.mxu0 %v7427_v32  ;;  %6576 = vmatprep.subr.bf16.mxu1 %v7428_v22  ;;  %v7478_v32 = vld [vmem:[%s9298_s5 + $0x2f0] sm:$0xff]  }
 0x4df   : > { %6420 = vmatprep.subr.bf16.mxu0 %v7430_v14  ;;  %v7479_v22 = vld [vmem:[%s9298_s5 + $0x2b0] sm:$0xff]   ;;  %v7480_v14 = vld [vmem:[%s9298_s5 + $0x2f8] sm:$0xff]  }
 0x4e1   : > { %6577 = vmatpush3.bf16.msra.mxu1 %v7429_v19  ;;  %v7481_v19 = vld [vmem:[%s9298_s5 + $0x2b8] sm:$0xff]  }
 0x4e2   : > { %6421 = vmatpush3.bf16.msra.mxu0 %v7431_v46  ;;  %6578 = vmatprep.subr.bf16.mxu1 %v7432_v21  ;;  %v7482_v46 = vld [vmem:[%s9298_s5 + $0x3c0] sm:$0xff]   ;;  %v3363_v21 = vld [vmem:[#allocation6 + $0x50] sm:$0xff] }
 0x4e3   : > { %6422 = vmatprep.subr.bf16.mxu0 %v7434_v47  ;;  %v3368_v47 = vld [vmem:[#allocation6 + $0x78] sm:$0xff] }
 0x4e5   : > { %6579 = vmatpush3.bf16.msra.mxu1 %v7433_v54  ;;  %v7483_v54 = vld [vmem:[%s9298_s5 + $0x380] sm:$0xff]  }
 0x4e6   : > { %6423 = vmatpush3.bf16.msra.mxu0 %v7435_v7  ;;  %6580 = vmatprep.subr.bf16.mxu1 %v7436_v53  ;;  %v3388_v7 = vpack.c.bf16 %v3363_v21, %v3363_v21  ;;  %v7484_v53 = vld [vmem:[%s9298_s5 + $0x3c8] sm:$0xff]  }
 0x4e7   : > { %6424 = vmatprep.subr.bf16.mxu0 %v7438_v0  ;;  %v3393_v0 = vpack.c.bf16 %v3368_v47, %v3368_v47  ;;  %v7525_v47 = vld [vmem:[%s9298_s5 + $0x5a8] sm:$0xff]  }
 0x4e9   : > { %6581 = vmatpush3.bf16.msra.mxu1 %v7437_v45  ;;  %v7485_v45 = vld [vmem:[%s9298_s5 + $0x388] sm:$0xff]  }
 0x4ea   : > { %6425 = vmatpush3.bf16.msra.mxu0 %v7439_v36  ;;  %7013 = vmatprep.subr.bf16.mxu1 %v8318_v8  ;;  %v7486_v36 = vld [vmem:[%s9298_s5 + $0x3d0] sm:$0xff]  }
 0x4eb   : > { %6426 = vmatprep.subr.bf16.mxu0 %v7441_v42  ;;  %v7488_v42 = vld [vmem:[%s9298_s5 + $0x3d8] sm:$0xff]  }
 0x4ec   : > { %5443 = vmatmul.mubr.bf16.vlgmr.msra.gmra.mrb[44].mxu1 %v3398_v23  ;;  %v7490_v23 = vld [vmem:[%s9298_s5 + $0x3e0] sm:$0xff]  }
 0x4ed   : > { %7014 = vmatpush3.bf16.msra.mxu1 %v7440_v15  ;;  %7029 = vmatprep.mubr.msk.bf16.mxu1 %vm7560_vm1, %v8318_v8  ;;  %v7489_v15 = vld [vmem:[%s9298_s5 + $0x398] sm:$0xff]  }
 0x4ee   : > { %6427 = vmatpush3.bf16.msra.mxu0 %v7442_v39  ;;  %7015 = vmatprep.subr.bf16.mxu1 %v8318_v8  ;;  %v7491_v39 = vld [vmem:[%s9298_s5 + $0x3a0] sm:$0xff]  }
 0x4ef   : > { %6434 = vmatprep.subr.bf16.mxu0 %v7444_v49  ;;  %v7492_v49 = vld [vmem:[%s9298_s5 + $0x3e8] sm:$0xff]  }
 0x4f1   : > { %7016 = vmatpush3.bf16.msra.mxu1 %v7443_v58  ;;  %5163 = vmatmul.mubr.bf16.vlgmr.msra.gmra.mrb[112].mxu0 %v3384_v1  ;;  %v7494_v58 = vld [vmem:[%s9298_s5 + $0x3f0] sm:$0xff]   ;;  %v7497_v1 = vld [vmem:[%s9298_s5 + $0x3b8] sm:$0xff]  }
 0x4f2   : > { %6435 = vmatpush3.bf16.msra.mxu0 %v7445_v59  ;;  %5202 = vmatprep.mubr.bf16.mxu0 %v3387_v57  ;;  %v7496_v59 = vld [vmem:[%s9298_s5 + $0x3f8] sm:$0xff]  }
 0x4f3   : > { %7017 = vmatprep.subr.bf16.mxu1 %v8318_v8  ;;  %6436 = vmatprep.subr.bf16.mxu0 %v7447_v56  ;;  %v7498_v56 = vld [vmem:[%s9298_s5 + $0x4c0] sm:$0xff]   ;;  %v3367_v57 = vld [vmem:[#allocation6 + $0x70] sm:$0xff] }
 0x4f5   : > { %7018 = vmatpush3.bf16.msra.mxu1 %v7446_v40  ;;  %v3372_v40 = vld [vmem:[#allocation6 + $0x98] sm:$0xff] }
 0x4f6   : > { %6437 = vmatpush3.bf16.msra.mxu0 %v7448_v26  ;;  %7019 = vmatprep.subr.bf16.mxu1 %v8318_v8  ;;  %v7499_v26 = vld [vmem:[%s9298_s5 + $0x480] sm:$0xff]  }
 0x4f7   : > { %6438 = vmatprep.subr.bf16.mxu0 %v7450_v6  ;;  %v3392_v6 = vpack.c.bf16 %v3367_v57, %v3367_v57 }
 0x4f9   : > { %7020 = vmatpush3.bf16.msra.mxu1 %v7449_v16  ;;  %v7500_v16 = vld [vmem:[%s9298_s5 + $0x4c8] sm:$0xff]  }
 0x4fa   : > { %6439 = vmatpush3.bf16.msra.mxu0 %v7451_v51  ;;  %7021 = vmatprep.subr.bf16.mxu1 %v8318_v8  ;;  %v3397_v51 = vpack.c.bf16 %v3372_v40, %v3372_v40 }
 0x4fb   : > { %6440 = vmatprep.subr.bf16.mxu0 %v7453_v20  ;;  %v7501_v20 = vld [vmem:[%s9298_s5 + $0x488] sm:$0xff]  }
 0x4fd   : > { %7022 = vmatpush3.bf16.msra.mxu1 %v7452_v25  ;;  %v7502_v25 = vld [vmem:[%s9298_s5 + $0x4d0] sm:$0xff]  }
 0x4fe   : > { %6441 = vmatpush3.bf16.msra.mxu0 %v7454_v24  ;;  %7023 = vmatprep.subr.bf16.mxu1 %v8318_v8  ;;  %v7503_v24 = vld [vmem:[%s9298_s5 + $0x490] sm:$0xff]  }
 0x4ff   : > { %6442 = vmatprep.subr.bf16.mxu0 %v7456_v3  ;;  %v7504_v3 = vld [vmem:[%s9298_s5 + $0x4d8] sm:$0xff]  }
 0x501   : > { %7024 = vmatpush3.bf16.msra.mxu1 %v7455_v62  ;;  %v7505_v62 = vld [vmem:[%s9298_s5 + $0x498] sm:$0xff]  }
 0x502   : > { %6443 = vmatpush3.bf16.msra.mxu0 %v7457_v30  ;;  %7025 = vmatprep.subr.bf16.mxu1 %v8318_v8  ;;  %v7506_v30 = vld [vmem:[%s9298_s5 + $0x4e0] sm:$0xff]  }
 0x503   : > { %6444 = vmatprep.subr.bf16.mxu0 %v7459_v50  ;;  %v7507_v50 = vld [vmem:[%s9298_s5 + $0x4a0] sm:$0xff]  }
 0x505   : > { %7026 = vmatpush3.bf16.msra.mxu1 %v7458_v52  ;;  %v7508_v52 = vld [vmem:[%s9298_s5 + $0x4e8] sm:$0xff]  }
 0x506   : > { %6445 = vmatpush3.bf16.msra.mxu0 %v7460_v35  ;;  %7027 = vmatprep.subr.bf16.mxu1 %v8318_v8  ;;  %v7509_v35 = vld [vmem:[%s9298_s5 + $0x4a8] sm:$0xff]  }
 0x507   : > { %6446 = vmatprep.subr.bf16.mxu0 %v7462_v11  ;;  %v7510_v11 = vld [vmem:[%s9298_s5 + $0x4f0] sm:$0xff]  }
 0x509   : > { %7028 = vmatpush3.bf16.msra.mxu1 %v7461_v55 }
 0x50a   : > { %6447 = vmatpush3.bf16.msra.mxu0 %v7463_v9  ;;  %7053 = vmatprep.subr.bf16.mxu1 %v8318_v8 }
 0x50b   : > { %6448 = vmatprep.subr.bf16.mxu0 %v7464_v10 }
 0x50c   : > { %7030 = vmatmul.mubr.bf16.vlgmr.msra.gmra.mrb[48].mxu1 %v3402_v13  ;;  %v7511_v13 = vld [vmem:[%s9298_s5 + $0x4b0] sm:$0xff]  }
 0x50d   : > { %7069 = vmatprep.mubr.msk.bf16.mxu1 %vm7560_vm1, %v8318_v8 }
 0x50e   : > { %6449 = vmatpush3.bf16.msra.mxu0 %v7465_v33 }
 0x50f   : > { %6456 = vmatprep.subr.bf16.mxu0 %v7466_v28  ;;  %v7512_v28 = vld [vmem:[%s9298_s5 + $0x4f8] sm:$0xff]  }
 0x511   : > { %5203 = vmatmul.mubr.bf16.vlgmr.msra.gmra.mrb[116].mxu0 %v3386_v44  ;;  %v3376_v44 = vld [vmem:[#allocation6 + $0xb8] sm:$0xff] }
 0x512   : > { %6457 = vmatpush3.bf16.msra.mxu0 %v7467_v29  ;;  %5242 = vmatprep.mubr.bf16.mxu0 %v3389_v43  ;;  %v3371_v29 = vld [vmem:[#allocation6 + $0x90] sm:$0xff] }
 0x513   : > { %6458 = vmatprep.subr.bf16.mxu0 %v7468_v60  ;;  %v7515_v60 = vld [vmem:[%s9298_s5 + $0x580] sm:$0xff]   ;;  %v3396_v43 = vpack.c.bf16 %v3371_v29, %v3371_v29 }
 0x516   : > { %6459 = vmatpush3.bf16.msra.mxu0 %v7469_v61  ;;  %v7516_v61 = vld [vmem:[%s9298_s5 + $0x5c8] sm:$0xff]  }
 0x517   : > { %6460 = vmatprep.subr.bf16.mxu0 %v7470_v5  ;;  %v3401_v5 = vpack.c.bf16 %v3376_v44, %v3376_v44 }
 0x51a   : > { %6461 = vmatpush3.bf16.msra.mxu0 %v7471_v34  ;;  %v7517_v34 = vld [vmem:[%s9298_s5 + $0x588] sm:$0xff]  }
 0x51b   : > { %6462 = vmatprep.subr.bf16.mxu0 %v7472_v31  ;;  %v7518_v31 = vld [vmem:[%s9298_s5 + $0x5d0] sm:$0xff]  }
 0x51e   : > { %6463 = vmatpush3.bf16.msra.mxu0 %v7473_v48  ;;  %v7519_v48 = vld [vmem:[%s9298_s5 + $0x590] sm:$0xff]  }
 0x51f   : > { %6464 = vmatprep.subr.bf16.mxu0 %v7474_v2  ;;  %v7520_v2 = vld [vmem:[%s9298_s5 + $0x5d8] sm:$0xff]  }
 0x522   : > { %6465 = vmatpush3.bf16.msra.mxu0 %v7475_v27  ;;  %v7521_v27 = vld [vmem:[%s9298_s5 + $0x598] sm:$0xff]  }
 0x523   : > { %6466 = vmatprep.subr.bf16.mxu0 %v7476_v38  ;;  %v7522_v38 = vld [vmem:[%s9298_s5 + $0x5e0] sm:$0xff]  }
 0x526   : > { %6467 = vmatpush3.bf16.msra.mxu0 %v7477_v17  ;;  %v7523_v17 = vld [vmem:[%s9298_s5 + $0x5a0] sm:$0xff]  }
 0x527   : > { %6468 = vmatprep.subr.bf16.mxu0 %v7478_v32 }
 0x52a   : > { %6469 = vmatpush3.bf16.msra.mxu0 %v7479_v22  ;;  %v7524_v22 = vld [vmem:[%s9298_s5 + $0x5e8] sm:$0xff]  }
 0x52b   : > { %6470 = vmatprep.subr.bf16.mxu0 %v7480_v14 }
 0x52e   : > { %6471 = vmatpush3.bf16.msra.mxu0 %v7481_v19 }
 0x52f   : > { %6500 = vmatprep.subr.bf16.mxu0 %v7482_v46 }
 0x531   : > { %5243 = vmatmul.mubr.bf16.vlgmr.msra.gmra.mrb[120].mxu0 %v3388_v7  ;;  %v7526_v7 = vld [vmem:[%s9298_s5 + $0x5f0] sm:$0xff]  }
 0x532   : > { %6501 = vmatpush3.bf16.msra.mxu0 %v7483_v54  ;;  %5322 = vmatprep.mubr.bf16.mxu0 %v3393_v0  ;;  %v5982_v54 = vld [vmem:[%s9299_s6] ss:$0 sm:$0xff] }
 0x533   : > { %6502 = vmatprep.subr.bf16.mxu0 %v7484_v53 }
 0x536   : > { %6503 = vmatpush3.bf16.msra.mxu0 %v7485_v45 }
 0x537   : > { %6504 = vmatprep.subr.bf16.mxu0 %v7486_v36 }
 0x53a   : > { %6505 = vmatpush3.bf16.msra.mxu0 %v7487_v63 }
 0x53b   : > { %6506 = vmatprep.subr.bf16.mxu0 %v7488_v42  ;;  %v7527_v42 = vld [vmem:[%s9298_s5 + $0x5b0] sm:$0xff]  }
 0x53e   : > { %6507 = vmatpush3.bf16.msra.mxu0 %v7489_v15 }
 0x53f   : > { %6508 = vmatprep.subr.bf16.mxu0 %v7490_v23  ;;  %v7528_v23 = vld [vmem:[%s9298_s5 + $0x5f8] sm:$0xff]  }
 0x542   : > { %6509 = vmatpush3.bf16.msra.mxu0 %v7491_v39 }
 0x543   : > { %6510 = vmatprep.subr.bf16.mxu0 %v7492_v49  ;;  %v7529_v49 = vld [vmem:[%s9298_s5 + $0x5b8] sm:$0xff]  }
 0x546   : > { %6511 = vmatpush3.bf16.msra.mxu0 %v7493_v12  ;;  %v3375_v12 = vld [vmem:[#allocation6 + $0xb0] sm:$0xff] }
 0x547   : > { %6512 = vmatprep.subr.bf16.mxu0 %v7494_v58  ;;  %v3400_v58 = vpack.c.bf16 %v3375_v12, %v3375_v12 }
 0x54a   : > { %6513 = vmatpush3.bf16.msra.mxu0 %v7495_v18 }
 0x54b   : > { %6514 = vmatprep.subr.bf16.mxu0 %v7496_v59 }
 0x54e   : > { %6515 = vmatpush3.bf16.msra.mxu0 %v7497_v1 }
 0x54f   : > { %6544 = vmatprep.subr.bf16.mxu0 %v7498_v56 }
 0x551   : > { %5323 = vmatmul.mubr.bf16.vlgmr.msra.gmra.mrb[124].mxu0 %v3392_v6 }
 0x552   : > { %6545 = vmatpush3.bf16.msra.mxu0 %v7499_v26  ;;  %5402 = vmatprep.mubr.bf16.mxu0 %v3397_v51 }
 0x553   : > { %6546 = vmatprep.subr.bf16.mxu0 %v7500_v16 }
 0x556   : > { %6547 = vmatpush3.bf16.msra.mxu0 %v7501_v20 }
 0x557   : > { %6548 = vmatprep.subr.bf16.mxu0 %v7502_v25 }
 0x55a   : > { %6549 = vmatpush3.bf16.msra.mxu0 %v7503_v24 }
 0x55b   : > { %6550 = vmatprep.subr.bf16.mxu0 %v7504_v3 }
 0x55e   : > { %6551 = vmatpush3.bf16.msra.mxu0 %v7505_v62 }
 0x55f   : > { %6552 = vmatprep.subr.bf16.mxu0 %v7506_v30 }
 0x562   : > { %6553 = vmatpush3.bf16.msra.mxu0 %v7507_v50 }
 0x563   : > { %6554 = vmatprep.subr.bf16.mxu0 %v7508_v52  ;;  %v6362_v55 = vpop.f32.mrb[100].mxu0 }
 0x564   : > { %v6363_v9 = vpop.f32.mrb[101].mxu0 }
 0x565   : > { %v6364_v37 = vadd.f32 %v6363_v9, %v6362_v55  ;;  %v6365_v10 = vpop.f32.mrb[102].mxu0 }
 0x566   : > { %6555 = vmatpush3.bf16.msra.mxu0 %v7509_v35  ;;  %v6366_v33 = vpop.f32.mrb[103].mxu0  ;;  %v7531_v10 = vld [vmem:[%s9300_s7 + $0x8] sm:$0xff]  }
 0x567   : > { %6556 = vmatprep.subr.bf16.mxu0 %v7510_v11  ;;  %v5045_v45 = vadd.f32 %v6364_v37, %v5982_v54  ;;  %v7530_v37 = vld [vmem:[%s9300_s7] sm:$0xff]   ;;  %v7533_v33 = vld [vmem:[%s9300_s7 + $0x18] sm:$0xff]  }
 0x56a   : > { %6557 = vmatpush3.bf16.msra.mxu0 %v7511_v13  ;;  %v7532_v13 = vld [vmem:[%s9300_s7 + $0x10] sm:$0xff]  }
 0x56b   : > { %6558 = vmatprep.subr.bf16.mxu0 %v7512_v28  ;;  %v7534_v28 = vld [vmem:[%s9300_s7 + $0x20] sm:$0xff]  }
 0x56e   : > { %6559 = vmatpush3.bf16.msra.mxu0 %v7513_v41 }
 0x56f   : > { %6588 = vmatprep.subr.bf16.mxu0 %v7514_v4 }
 0x571   : > { %5403 = vmatmul.mubr.bf16.vlgmr.msra.gmra.mrb[128].mxu0 %v3396_v43  ;;  %v7535_v43 = vld [vmem:[%s9300_s7 + $0x28] sm:$0xff]  }
 0x572   : > { %6589 = vmatpush3.bf16.msra.mxu0 %v7515_v60  ;;  %5482 = vmatprep.mubr.bf16.mxu0 %v3401_v5 }
 0x573   : > { %6590 = vmatprep.subr.bf16.mxu0 %v7516_v61 }
 0x576   : > { %6591 = vmatpush3.bf16.msra.mxu0 %v7517_v34 }
 0x577   : > { %6592 = vmatprep.subr.bf16.mxu0 %v7518_v31 }
 0x57a   : > { %6593 = vmatpush3.bf16.msra.mxu0 %v7519_v48 }
 0x57b   : > { %6594 = vmatprep.subr.bf16.mxu0 %v7520_v2  ;;  %v7536_v2 = vld [vmem:[%s9300_s7 + $0x30] sm:$0xff]  }
 0x57e   : > { %6595 = vmatpush3.bf16.msra.mxu0 %v7521_v27  ;;  %v7537_v27 = vld [vmem:[%s9300_s7 + $0x38] sm:$0xff]  }
 0x57f   : > { %v6494_v32 = vpop.f32.mrb[36].mxu1  ;;  %6596 = vmatprep.subr.bf16.mxu0 %v7522_v38  ;;  %v7538_v38 = vld [vmem:[%s9302_s9] sm:$0xff]  }
 0x580   : > { %v6495_v14 = vpop.f32.mrb[37].mxu1  ;;  %7054 = vmatpush3.bf16.msra.mxu1 %v7538_v38 }
 0x581   : > { %v9185_v19 = vadd.f32 %v6495_v14, %v6494_v32  ;;  %v6497_v46 = vpop.f32.mrb[38].mxu1  ;;  %7055 = vmatprep.subr.bf16.mxu1 %v8318_v8  ;;  %v7540_v32 = vld [vmem:[%s9302_s9 + $0x10] sm:$0xff]   ;;  %v7542_v14 = vld [vmem:[%s9302_s9 + $0x20] sm:$0xff]  }
 0x582   : > { %v6498_v21 = vpop.f32.mrb[39].mxu1  ;;  %6597 = vmatpush3.bf16.msra.mxu0 %v7523_v17  ;;  %v7539_v17 = vld [vmem:[%s9302_s9 + $0x8] sm:$0xff]  }
 0x583   : > { %6598 = vmatprep.subr.bf16.mxu0 %v7524_v22  ;;  %v6384_v53 = vpop.f32.mrb[104].mxu0  ;;  %v7541_v22 = vld [vmem:[%s9302_s9 + $0x18] sm:$0xff]   ;;  %v7543_v46 = vld [vmem:[%s9302_s9 + $0x28] sm:$0xff]  }
 0x584   : > { %v6385_v0 = vpop.f32.mrb[105].mxu0  ;;  %7056 = vmatpush3.bf16.msra.mxu1 %v7539_v17 }
 0x585   : > { %v6386_v36 = vadd.f32 %v6385_v0, %v6384_v53  ;;  %v6387_v63 = vpop.f32.mrb[106].mxu0  ;;  %7057 = vmatprep.subr.bf16.mxu1 %v8318_v8 }
 0x586   : > { %6599 = vmatpush3.bf16.msra.mxu0 %v7525_v47  ;;  %v6388_v15 = vpop.f32.mrb[107].mxu0 }
 0x587   : > { %6600 = vmatprep.subr.bf16.mxu0 %v7526_v7  ;;  %v5085_v39 = vadd.f32 %v6386_v36, %v5045_v45 }
 0x588   : > { %7058 = vmatpush3.bf16.msra.mxu1 %v7540_v32 }
 0x589   : > { %7059 = vmatprep.subr.bf16.mxu1 %v8318_v8 }
 0x58a   : > { %6601 = vmatpush3.bf16.msra.mxu0 %v7527_v42 }
 0x58b   : > { %6602 = vmatprep.subr.bf16.mxu0 %v7528_v23 }
 0x58c   : > { %7060 = vmatpush3.bf16.msra.mxu1 %v7541_v22 }
 0x58d   : > { %7061 = vmatprep.subr.bf16.mxu1 %v8318_v8 }
 0x58e   : > { %6603 = vmatpush3.bf16.msra.mxu0 %v7529_v49 }
 0x58f   : > { %7033 = vmatprep.subr.bf16.mxu0 %v8318_v8 }
 0x590   : > { %7062 = vmatpush3.bf16.msra.mxu1 %v7542_v14 }
 0x591   : > { %5483 = vmatmul.mubr.bf16.vlgmr.msra.gmra.mrb[132].mxu0 %v3400_v58  ;;  %7063 = vmatprep.subr.bf16.mxu1 %v8318_v8 }
 0x592   : > { %7049 = vmatprep.mubr.msk.bf16.mxu0 %vm7560_vm1, %v8318_v8  ;;  %7034 = vmatpush3.bf16.msra.mxu0 %v7530_v37 }
 0x593   : > { %7035 = vmatprep.subr.bf16.mxu0 %v8318_v8 }
 0x594   : > { %7064 = vmatpush3.bf16.msra.mxu1 %v7543_v46 }
 0x595   : > { %7065 = vmatprep.subr.bf16.mxu1 %v8318_v8 }
 0x596   : > { %7036 = vmatpush3.bf16.msra.mxu0 %v7531_v10 }
 0x597   : > { %7037 = vmatprep.subr.bf16.mxu0 %v8318_v8 }
 0x59a   : > { %7038 = vmatpush3.bf16.msra.mxu0 %v7532_v13 }
 0x59b   : > { %7039 = vmatprep.subr.bf16.mxu0 %v8318_v8 }
 0x59e   : > { %7040 = vmatpush3.bf16.msra.mxu0 %v7533_v33 }
 0x59f   : > { %v6538_v18 = vpop.f32.mrb[40].mxu1  ;;  %7041 = vmatprep.subr.bf16.mxu0 %v8318_v8 }
 0x5a0   : > { %v6539_v59 = vpop.f32.mrb[41].mxu1 }
 0x5a1   : > { %v9208_v1 = vadd.f32 %v6539_v59, %v6538_v18  ;;  %v6541_v56 = vpop.f32.mrb[42].mxu1 }
 0x5a2   : > { %v6542_v57 = vpop.f32.mrb[43].mxu1  ;;  %7042 = vmatpush3.bf16.msra.mxu0 %v7534_v28 }
 0x5a3   : > { %7043 = vmatprep.subr.bf16.mxu0 %v8318_v8 }
 0x5a4   : > { %v6406_v40 = vpop.f32.mrb[108].mxu0 }
 0x5a5   : > { %v6407_v26 = vpop.f32.mrb[109].mxu0 }
 0x5a6   : > { %v6408_v6 = vadd.f32 %v6407_v26, %v6406_v40  ;;  %v6409_v16 = vpop.f32.mrb[110].mxu0  ;;  %7044 = vmatpush3.bf16.msra.mxu0 %v7535_v43 }
 0x5a7   : > { %v6410_v51 = vpop.f32.mrb[111].mxu0  ;;  %7045 = vmatprep.subr.bf16.mxu0 %v8318_v8 }
 0x5a8   : > { %v5125_v20 = vadd.f32 %v6408_v6, %v5085_v39 }
 0x5aa   : > { %7046 = vmatpush3.bf16.msra.mxu0 %v7536_v2 }
 0x5ab   : > { %7047 = vmatprep.subr.bf16.mxu0 %v8318_v8 }
 0x5ae   : > { %7048 = vmatpush3.bf16.msra.mxu0 %v7537_v27 }
 0x5bf   : > { %v6582_v25 = vpop.f32.mrb[44].mxu1 }
 0x5c0   : > { %v6583_v24 = vpop.f32.mrb[45].mxu1 }
 0x5c1   : > { %v9210_v3 = vadd.f32 %v6583_v24, %v6582_v25  ;;  %v6585_v62 = vpop.f32.mrb[46].mxu1 }
 0x5c2   : > { %v6586_v30 = vpop.f32.mrb[47].mxu1 }
 0x5c3   : > { %v6183_v30 = vld [vmem:[%s9301_s8] ss:$0 sm:$0xff] }
 0x5c4   : > { %v6428_v50 = vpop.f32.mrb[112].mxu0 }
 0x5c5   : > { %v6429_v52 = vpop.f32.mrb[113].mxu0 }
 0x5c6   : > { %v6430_v35 = vadd.f32 %v6429_v52, %v6428_v50  ;;  %v6431_v11 = vpop.f32.mrb[114].mxu0 }
 0x5c7   : > { %v6432_v55 = vpop.f32.mrb[115].mxu0 }
 0x5c8   : > { %v5165_v9 = vadd.f32 %v6430_v35, %v5125_v20 }
 0x5df   : > { %v9232_v41 = vpop.f32.mrb[48].mxu1 }
 0x5e0   : > { %v7031_v4 = vpop.f32.mrb[49].mxu1 }
 0x5e1   : > { %v5527_v29 = vpop.f32.mrb[50].mxu1 }
 0x5e2   : > { %v7032_v44 = vpop.f32.mrb[51].mxu1 }
 0x5e4   : > { %v6450_v60 = vpop.f32.mrb[116].mxu0 }
 0x5e5   : > { %v6451_v61 = vpop.f32.mrb[117].mxu0 }
 0x5e6   : > { %v6452_v5 = vadd.f32 %v6451_v61, %v6450_v60  ;;  %v6453_v34 = vpop.f32.mrb[118].mxu0 }
 0x5e7   : > { %v6454_v31 = vpop.f32.mrb[119].mxu0 }
 0x5e8   : > { %v5205_v48 = vadd.f32 %v6452_v5, %v5165_v9 }
 0x604   : > { %v6472_v21 = vpop.f32.mrb[120].mxu0 }
 0x605   : > { %v6473_v47 = vpop.f32.mrb[121].mxu0 }
 0x606   : > { %v6474_v54 = vadd.f32 %v6473_v47, %v6472_v21  ;;  %v6475_v7 = vpop.f32.mrb[122].mxu0 }
 0x607   : > { %v6476_v53 = vpop.f32.mrb[123].mxu0 }
 0x608   : > { %v5245_v0 = vadd.f32 %v6474_v54, %v5205_v48 }
 0x60a   : > { %v5285_v45 = vadd.f32 %v9185_v19, %v5245_v0 }
 0x624   : > { %v6516_v36 = vpop.f32.mrb[124].mxu0 }
 0x625   : > { %v6517_v63 = vpop.f32.mrb[125].mxu0 }
 0x626   : > { %v6518_v42 = vadd.f32 %v6517_v63, %v6516_v36  ;;  %v6519_v15 = vpop.f32.mrb[126].mxu0 }
 0x627   : > { %v6520_v23 = vpop.f32.mrb[127].mxu0 }
 0x628   : > { %v5325_v39 = vadd.f32 %v6518_v42, %v5285_v45 }
 0x62a   : > { %v5365_v49 = vadd.f32 %v9208_v1, %v5325_v39  ;;  %v7544_v1 = vld [vmem:[%s9302_s9 + $0x30] sm:$0xff]  }
 0x62b   : > { %7066 = vmatpush3.bf16.msra.mxu1 %v7544_v1 }
 0x62c   : > { %7067 = vmatprep.subr.bf16.mxu1 %v8318_v8  ;;  %v6192_v8 = vld [vmem:[%s9303_s10] ss:$0 sm:$0xff] }
 0x644   : > { %v6560_v12 = vpop.f32.mrb[128].mxu0 }
 0x645   : > { %v6561_v58 = vpop.f32.mrb[129].mxu0 }
 0x646   : > { %v6562_v18 = vadd.f32 %v6561_v58, %v6560_v12  ;;  %v6563_v59 = vpop.f32.mrb[130].mxu0 }
 0x647   : > { %v6564_v56 = vpop.f32.mrb[131].mxu0 }
 0x648   : > { %v5405_v57 = vadd.f32 %v6562_v18, %v5365_v49 }
 0x64a   : > { %v5445_v40 = vadd.f32 %v9210_v3, %v5405_v57  ;;  %v7545_v3 = vld [vmem:[%s9302_s9 + $0x38] sm:$0xff]  }
 0x64b   : > { %7068 = vmatpush3.bf16.msra.mxu1 %v7545_v3 }
 0x664   : > { %v6604_v26 = vpop.f32.mrb[132].mxu0 }
 0x665   : > { %v6605_v6 = vpop.f32.mrb[133].mxu0 }
 0x666   : > { %v6606_v16 = vadd.f32 %v6605_v6, %v6604_v26  ;;  %v6607_v19 = vpop.f32.mrb[134].mxu0 }
 0x667   : > { %v6608_v51 = vpop.f32.mrb[135].mxu0 }
 0x668   : > { %v5485_v20 = vadd.f32 %v6606_v16, %v5445_v40 }
 0x66a   : > { %v5525_v25 = vadd.f32 %v9232_v41, %v5485_v20 }
 0x66c   : > { %v5530_v24 = vmax.f32 %v5525_v25, 0.0 }
 0x66e   : > { %v5531_v62 = vpack.c.bf16 %v5530_v24, %v5530_v24 }
 0x670   : > { %7050 = vmatmul.mubr.bf16.vlgmr.msra.gmra.mrb[136].mxu0 %v5531_v62 }
 0x743   : > { %v5637_v50 = vpop.f32.mrb[136].mxu0 }
 0x744   : > { %v5638_v52 = vadd.f32 %v6183_v30, %v5637_v50  ;;  %v7051_v35 = vpop.f32.mrb[137].mxu0 }
 0x745   : > { %v5640_v11 = vpop.f32.mrb[138].mxu0 }
 0x746   : > { %v5643_v55 = vmax.f32 %v5638_v52, 0.0  ;;  %v7052_v9 = vpop.f32.mrb[139].mxu0 }
 0x748   : > { %v5644_v37 = vpack.c.bf16 %v5643_v55, %v5643_v55 }
 0x74a   : > { %7070 = vmatmul.mubr.bf16.vlgmr.msra.gmra.mrb[52].mxu1 %v5644_v37 }
 0x81d   : > { %v5750_v10 = vpop.f32.mrb[52].mxu1 }
 0x81e   : > { %v5751_v13 = vadd.f32 %v6192_v8, %v5750_v10  ;;  %v7071_v33 = vpop.f32.mrb[53].mxu1 }
 0x81f   : > { %v5753_v28 = vpop.f32.mrb[54].mxu1 }
 0x820   : > { %v5756_v41 = vmax.f32 %v5751_v13, 0.0  ;;  %v7072_v4 = vpop.f32.mrb[55].mxu1 }
 0x822   : > { %5757 = vst [vmem:[%s384_s25] sm:$0xff] %v5756_v41 }
 0x823 PF: > { %s21_s17 = sadd.s32 1, %s7553_s17  }
 0x824   : > { %p18_p4 = scmp.ge.s32.totalorder %s21_s17, 4  }
 0x826   :  { %20 = sbr.rel (!%p18_p4) target bundleno = 1 (0x1), region = 117 }

</bundles_post_ra>
